<compile_context>
chip_gen: v6e
topology: v6e:2x2x1
jax: 0.10.0
libtpu: 0.0.40
codegen_flags: <defaults>
</compile_context>

<pallas_src>
import functools

import jax
import jax.numpy as jnp
from jax import lax
from jax.experimental import pallas as pl
from jax.experimental.pallas import tpu as pltpu

_INV_SQRT2 = 0.7071067811865475


def _ffn_kernel(x_ref, gamma_ref, beta_ref,
                w1v_ref, w1g_ref, b1v_ref, b1g_ref,
                w2_ref, b2_ref,
                o_ref,
                xn_ref, acc_ref):
    k = pl.program_id(1)

    @pl.when(k == 0)
    def _():
        # ---- LayerNorm (eps=1e-5, biased variance, elementwise affine), f32 ----
        x = x_ref[...].astype(jnp.float32)                      # (TM, D)
        mean = jnp.mean(x, axis=-1, keepdims=True)
        xc = x - mean
        var = jnp.mean(xc * xc, axis=-1, keepdims=True)
        xn = xc * lax.rsqrt(var + 1e-5)
        xn = xn * gamma_ref[...].astype(jnp.float32) + beta_ref[...].astype(jnp.float32)
        xn_ref[...] = xn.astype(xn_ref.dtype)                   # cache as bf16 for MXU
        acc_ref[...] = jnp.zeros_like(acc_ref)

    xn = xn_ref[...]                                            # (TM, D) bf16

    # ---- GeGLU on one hidden tile: bf16 GEMMs, f32 accumulation ----
    val = jnp.dot(xn, w1v_ref[...], preferred_element_type=jnp.float32)
    val = val + b1v_ref[...].astype(jnp.float32)                # (TM, TH)
    gate = jnp.dot(xn, w1g_ref[...], preferred_element_type=jnp.float32)
    gate = gate + b1g_ref[...].astype(jnp.float32)              # (TM, TH)
    # exact (erf-based) GELU to match torch.nn.GELU() default
    act = val * (0.5 * gate * (1.0 + lax.erf(gate * _INV_SQRT2)))

    # ---- output projection, accumulated over hidden tiles ----
    acc_ref[...] += jnp.dot(act.astype(jnp.bfloat16), w2_ref[...],
                            preferred_element_type=jnp.float32)

    @pl.when(k == pl.num_programs(1) - 1)
    def _():
        o_ref[...] = (acc_ref[...] + b2_ref[...].astype(jnp.float32)).astype(o_ref.dtype)


def _round_up(x, m):
    return (x + m - 1) // m * m


def _pick_hidden_tile(d_hidden):
    for t in (2048, 1024, 512, 256, 128):
        if d_hidden % t == 0:
            return t
    return d_hidden


@functools.partial(jax.jit, static_argnames=("tm", "th"))
def _feedforward_2d(x2d, gamma, beta, w1v, w1g, b1v, b1g, w2, b2, *, tm, th):
    """x2d: [N, D]; N % tm == 0, (4*D) % th == 0. Returns [N, D]."""
    n, d = x2d.shape
    d_hidden = w2.shape[0]
    grid = (n // tm, d_hidden // th)

    # VMEM budget: double-buffered tiles + scratch, 2x headroom, capped for
    # v7x's 64 MiB/TC ceiling.
    xb = x2d.dtype.itemsize
    bytes_needed = 2 * (
        2 * tm * d * xb                # x + out tiles
        + 2 * d * th * 2 + th * d * 2  # w1v + w1g + w2 (bf16)
        + 2 * th * 4                   # b1 halves
        + 3 * d * 4                    # gamma, beta, b2
    ) + tm * d * (2 + 4)               # xn (bf16) + acc (f32) scratch
    vmem_limit = int(min(64 * 1024 * 1024, max(32 * 1024 * 1024, 2 * bytes_needed)))

    return pl.pallas_call(
        _ffn_kernel,
        out_shape=jax.ShapeDtypeStruct((n, d), x2d.dtype),
        grid_spec=pltpu.PrefetchScalarGridSpec(
            num_scalar_prefetch=0,
            grid=grid,
            in_specs=[
                pl.BlockSpec((tm, d), lambda i, k: (i, 0)),     # x rows
                pl.BlockSpec((1, d), lambda i, k: (0, 0)),      # LN gamma
                pl.BlockSpec((1, d), lambda i, k: (0, 0)),      # LN beta
                pl.BlockSpec((d, th), lambda i, k: (0, k)),     # W1 value half (D, TH)
                pl.BlockSpec((d, th), lambda i, k: (0, k)),     # W1 gate half  (D, TH)
                pl.BlockSpec((1, th), lambda i, k: (0, k)),     # b1 value half
                pl.BlockSpec((1, th), lambda i, k: (0, k)),     # b1 gate half
                pl.BlockSpec((th, d), lambda i, k: (k, 0)),     # W2 row slab (TH, D)
                pl.BlockSpec((1, d), lambda i, k: (0, 0)),      # b2
            ],
            out_specs=pl.BlockSpec((tm, d), lambda i, k: (i, 0)),
            scratch_shapes=[
                pltpu.VMEM((tm, d), jnp.bfloat16),   # cached LayerNorm output
                pltpu.VMEM((tm, d), jnp.float32),    # f32 output accumulator
            ],
        ),
        compiler_params=pltpu.CompilerParams(
            dimension_semantics=("parallel", "arbitrary"),
            vmem_limit_bytes=vmem_limit),
    )(x2d, gamma, beta, w1v, w1g, b1v, b1g, w2, b2)


def feedforward(x, params, tm=256, th=None):
    """Mirrors FeedForward.forward. x: [B, C, H, W] (NCHW) or [..., D]."""
    gamma, beta, w1, b1, w2, b2 = params
    is_4d = (x.ndim == 4)
    if is_4d:
        # TODO(synk): keep activations NHWC end-to-end upstream to avoid this HBM round-trip.
        x = jnp.transpose(x, (0, 2, 3, 1))            # b c h w -> b h w c
    orig_shape = x.shape
    d = x.shape[-1]
    d_hidden = w2.shape[0]
    x2d = x.reshape(-1, d)
    n = x2d.shape[0]

    if th is None:
        th = _pick_hidden_tile(d_hidden)
    th = min(th, d_hidden)
    assert d_hidden % th == 0

    tm = min(tm, _round_up(n, 8))
    n_pad = _round_up(n, tm)
    if n_pad != n:
        x2d = jnp.pad(x2d, ((0, n_pad - n), (0, 0)))

    # Split fused GeGLU projection into value/gate halves; bf16 GEMM operands.
    w1v = w1[:, :d_hidden].astype(jnp.bfloat16)
    w1g = w1[:, d_hidden:].astype(jnp.bfloat16)
    b1v = b1[:, :d_hidden]
    b1g = b1[:, d_hidden:]
    w2b = w2.astype(jnp.bfloat16)

    out2d = _feedforward_2d(x2d, gamma, beta, w1v, w1g, b1v, b1g, w2b, b2,
                            tm=tm, th=th)
    out2d = out2d[:n]
    out = out2d.reshape(orig_shape)
    if is_4d:
        out = jnp.transpose(out, (0, 3, 1, 2))        # b h w c -> b c h w
    return out


def init_params(key, embed_dim):
    """Deterministic synthetic parameters matching the PyTorch module shapes.

    nn.Linear(d_in, d_out) stores weight as (d_out, d_in); we keep them
    transposed, i.e. (d_in, d_out), so the kernel does x @ W.
    """
    d = embed_dim
    k1, k2, k3, k4 = jax.random.split(key, 4)
    gamma = jnp.ones((1, d), jnp.float32)
    beta = jnp.zeros((1, d), jnp.float32)
    lim1 = 1.0 / jnp.sqrt(d)
    w1 = jax.random.uniform(k1, (d, 8 * d), jnp.float32, -lim1, lim1)
    b1 = jax.random.uniform(k2, (1, 8 * d), jnp.float32, -lim1, lim1)
    lim2 = 1.0 / jnp.sqrt(4 * d)
    w2 = jax.random.uniform(k3, (4 * d, d), jnp.float32, -lim2, lim2)
    b2 = jax.random.uniform(k4, (1, d), jnp.float32, -lim2, lim2)
    return gamma, beta, w1, b1, w2, b2


def _reference(x, params):
    """Pure-JAX f32 reference of FeedForward.forward."""
    gamma, beta, w1, b1, w2, b2 = params
    xt = jnp.transpose(x, (0, 2, 3, 1)).astype(jnp.float32)
    mean = jnp.mean(xt, axis=-1, keepdims=True)
    var = jnp.mean((xt - mean) ** 2, axis=-1, keepdims=True)
    xn = (xt - mean) / jnp.sqrt(var + 1e-5) * gamma[0] + beta[0]
    h = xn @ w1 + b1[0]
    val, gate = jnp.split(h, 2, axis=-1)
    a = val * (0.5 * gate * (1.0 + lax.erf(gate * _INV_SQRT2)))
    out = a @ w2 + b2[0]
    return jnp.transpose(out, (0, 3, 1, 2))


if __name__ == "__main__":
    embed_dim = 128
    B, H, W = 2, 16, 16                   # N = B*H*W = 512 tokens, D = 128
    key = jax.random.PRNGKey(0)
    kx, kp = jax.random.split(key)
    x = jax.random.normal(kx, (B, embed_dim, H, W), jnp.float32)   # NCHW
    params = init_params(kp, embed_dim)

    # th=256 exercises the hidden-dim accumulation (4*D = 512 -> 2 hidden steps).
    out = feedforward(x, params, tm=256, th=256)
    out = jax.block_until_ready(out)

    ref = _reference(x, params)
    assert out.shape == x.shape
    # bf16 GEMM inputs with f32 accumulation -> relaxed tolerance vs f32 ref.
    assert jnp.allclose(out, ref, atol=3e-2, rtol=3e-2), "mismatch vs reference"
    print("KERNEL_OK")
</pallas_src>

<mosaic_0001>
module attributes {stable_mosaic.version = 11 : i64} {
  func.func @_ffn_kernel(%arg0: i32, %arg1: i32, %arg2: memref<256x128xf32, #tpu.memory_space<vmem>>, %arg3: memref<1x128xf32, #tpu.memory_space<vmem>>, %arg4: memref<1x128xf32, #tpu.memory_space<vmem>>, %arg5: memref<128x256xbf16, #tpu.memory_space<vmem>>, %arg6: memref<128x256xbf16, #tpu.memory_space<vmem>>, %arg7: memref<1x256xf32, #tpu.memory_space<vmem>>, %arg8: memref<1x256xf32, #tpu.memory_space<vmem>>, %arg9: memref<256x128xbf16, #tpu.memory_space<vmem>>, %arg10: memref<1x128xf32, #tpu.memory_space<vmem>>, %arg11: memref<256x128xf32, #tpu.memory_space<vmem>>, %arg12: memref<256x128xbf16, #tpu.memory_space<vmem>>, %arg13: memref<256x128xf32, #tpu.memory_space<vmem>>) attributes {dimension_semantics = [#tpu.dimension_semantics<parallel>, #tpu.dimension_semantics<arbitrary>], iteration_bounds = array<i64: 2, 2>, scalar_prefetch = 0 : i64, scratch_operands = 2 : i64, tpu.core_type = #tpu.core_type<tc>, window_params = [{transform_indices = @transform_0, window_bounds = array<i64: 256, 128>}, {pipeline_mode = #tpu.pipeline_mode<synchronous>, transform_indices = @transform_1, window_bounds = array<i64: 1, 128>}, {pipeline_mode = #tpu.pipeline_mode<synchronous>, transform_indices = @transform_2, window_bounds = array<i64: 1, 128>}, {transform_indices = @transform_3, window_bounds = array<i64: 128, 256>}, {transform_indices = @transform_4, window_bounds = array<i64: 128, 256>}, {transform_indices = @transform_5, window_bounds = array<i64: 1, 256>}, {transform_indices = @transform_6, window_bounds = array<i64: 1, 256>}, {transform_indices = @transform_7, window_bounds = array<i64: 256, 128>}, {pipeline_mode = #tpu.pipeline_mode<synchronous>, transform_indices = @transform_8, window_bounds = array<i64: 1, 128>}, {transform_indices = @transform_9, window_bounds = array<i64: 256, 128>}]} {
    %c0_i32 = arith.constant 0 : i32
    %0 = arith.cmpi eq, %arg1, %c0_i32 : i32
    %1 = arith.extui %0 : i1 to i32
    %c0_i32_0 = arith.constant 0 : i32
    %2 = arith.cmpi ne, %1, %c0_i32_0 : i32
    scf.if %2 {
      %c0_22 = arith.constant 0 : index
      %c0_23 = arith.constant 0 : index
      %32 = vector.load %arg2[%c0_22, %c0_23] : memref<256x128xf32, #tpu.memory_space<vmem>>, vector<256x128xf32>
      %cst_24 = arith.constant dense<0.000000e+00> : vector<256xf32>
      %33 = vector.multi_reduction <add>, %32, %cst_24 [1] : vector<256x128xf32> to vector<256xf32>
      %34 = vector.shape_cast %33 : vector<256xf32> to vector<256x1xf32>
      %cst_25 = arith.constant 1.280000e+02 : f32
      %35 = vector.broadcast %cst_25 : f32 to vector<256x1xf32>
      %36 = arith.divf %34, %35 : vector<256x1xf32>
      %37 = vector.broadcast %36 : vector<256x1xf32> to vector<256x128xf32>
      %38 = arith.subf %32, %37 : vector<256x128xf32>
      %39 = arith.mulf %38, %38 : vector<256x128xf32>
      %cst_26 = arith.constant dense<0.000000e+00> : vector<256xf32>
      %40 = vector.multi_reduction <add>, %39, %cst_26 [1] : vector<256x128xf32> to vector<256xf32>
      %41 = vector.shape_cast %40 : vector<256xf32> to vector<256x1xf32>
      %cst_27 = arith.constant 1.280000e+02 : f32
      %42 = vector.broadcast %cst_27 : f32 to vector<256x1xf32>
      %43 = arith.divf %41, %42 : vector<256x1xf32>
      %cst_28 = arith.constant 9.99999974E-6 : f32
      %44 = vector.broadcast %cst_28 : f32 to vector<256x1xf32>
      %45 = arith.addf %43, %44 : vector<256x1xf32>
      %46 = math.rsqrt %45 : vector<256x1xf32>
      %47 = vector.broadcast %46 : vector<256x1xf32> to vector<256x128xf32>
      %48 = arith.mulf %38, %47 : vector<256x128xf32>
      %c0_29 = arith.constant 0 : index
      %c0_30 = arith.constant 0 : index
      %49 = vector.load %arg3[%c0_29, %c0_30] : memref<1x128xf32, #tpu.memory_space<vmem>>, vector<1x128xf32>
      %50 = vector.broadcast %49 : vector<1x128xf32> to vector<256x128xf32>
      %51 = arith.mulf %48, %50 : vector<256x128xf32>
      %c0_31 = arith.constant 0 : index
      %c0_32 = arith.constant 0 : index
      %52 = vector.load %arg4[%c0_31, %c0_32] : memref<1x128xf32, #tpu.memory_space<vmem>>, vector<1x128xf32>
      %53 = vector.broadcast %52 : vector<1x128xf32> to vector<256x128xf32>
      %54 = arith.addf %51, %53 : vector<256x128xf32>
      %55 = arith.truncf %54 : vector<256x128xf32> to vector<256x128xbf16>
      %c0_33 = arith.constant 0 : index
      %c0_34 = arith.constant 0 : index
      %56 = vector.load %arg12[%c0_33, %c0_34] : memref<256x128xbf16, #tpu.memory_space<vmem>>, vector<256x128xbf16>
      tpu.vector_store %arg12[%c0_33, %c0_34], %55 {strides = array<i32>} : memref<256x128xbf16, #tpu.memory_space<vmem>>, vector<256x128xbf16>,
      %cst_35 = arith.constant 0.000000e+00 : f32
      %57 = vector.broadcast %cst_35 : f32 to vector<256x128xf32>
      %c0_36 = arith.constant 0 : index
      %c0_37 = arith.constant 0 : index
      %58 = vector.load %arg13[%c0_36, %c0_37] : memref<256x128xf32, #tpu.memory_space<vmem>>, vector<256x128xf32>
      tpu.vector_store %arg13[%c0_36, %c0_37], %57 {strides = array<i32>} : memref<256x128xf32, #tpu.memory_space<vmem>>, vector<256x128xf32>,
    } else {
    }
    %c0 = arith.constant 0 : index
    %c0_1 = arith.constant 0 : index
    %3 = vector.load %arg12[%c0, %c0_1] : memref<256x128xbf16, #tpu.memory_space<vmem>>, vector<256x128xbf16>
    %c0_2 = arith.constant 0 : index
    %c0_3 = arith.constant 0 : index
    %4 = vector.load %arg5[%c0_2, %c0_3] : memref<128x256xbf16, #tpu.memory_space<vmem>>, vector<128x256xbf16>
    %cst = arith.constant dense<0.000000e+00> : vector<256x256xf32>
    %5 = tpu.matmul %3, %4, %cst {dimension_numbers = #tpu.dot_dimension_numbers<[1], [0], [0], [1], [0, 0, 1, 1], [], []>} : vector<256x128xbf16>, vector<128x256xbf16>, vector<256x256xf32> -> vector<256x256xf32>
    %c0_4 = arith.constant 0 : index
    %c0_5 = arith.constant 0 : index
    %6 = vector.load %arg7[%c0_4, %c0_5] : memref<1x256xf32, #tpu.memory_space<vmem>>, vector<1x256xf32>
    %7 = vector.broadcast %6 : vector<1x256xf32> to vector<256x256xf32>
    %8 = arith.addf %5, %7 : vector<256x256xf32>
    %c0_6 = arith.constant 0 : index
    %c0_7 = arith.constant 0 : index
    %9 = vector.load %arg6[%c0_6, %c0_7] : memref<128x256xbf16, #tpu.memory_space<vmem>>, vector<128x256xbf16>
    %cst_8 = arith.constant dense<0.000000e+00> : vector<256x256xf32>
    %10 = tpu.matmul %3, %9, %cst_8 {dimension_numbers = #tpu.dot_dimension_numbers<[1], [0], [0], [1], [0, 0, 1, 1], [], []>} : vector<256x128xbf16>, vector<128x256xbf16>, vector<256x256xf32> -> vector<256x256xf32>
    %c0_9 = arith.constant 0 : index
    %c0_10 = arith.constant 0 : index
    %11 = vector.load %arg8[%c0_9, %c0_10] : memref<1x256xf32, #tpu.memory_space<vmem>>, vector<1x256xf32>
    %12 = vector.broadcast %11 : vector<1x256xf32> to vector<256x256xf32>
    %13 = arith.addf %10, %12 : vector<256x256xf32>
    %cst_11 = arith.constant 5.000000e-01 : f32
    %14 = vector.broadcast %cst_11 : f32 to vector<256x256xf32>
    %15 = arith.mulf %14, %13 : vector<256x256xf32>
    %cst_12 = arith.constant 0.707106769 : f32
    %16 = vector.broadcast %cst_12 : f32 to vector<256x256xf32>
    %17 = arith.mulf %13, %16 : vector<256x256xf32>
    %18 = math.erf %17 : vector<256x256xf32>
    %cst_13 = arith.constant 1.000000e+00 : f32
    %19 = vector.broadcast %cst_13 : f32 to vector<256x256xf32>
    %20 = arith.addf %19, %18 : vector<256x256xf32>
    %21 = arith.mulf %15, %20 : vector<256x256xf32>
    %22 = arith.mulf %8, %21 : vector<256x256xf32>
    %c0_14 = arith.constant 0 : index
    %c0_15 = arith.constant 0 : index
    %23 = vector.load %arg13[%c0_14, %c0_15] : memref<256x128xf32, #tpu.memory_space<vmem>>, vector<256x128xf32>
    %24 = arith.truncf %22 : vector<256x256xf32> to vector<256x256xbf16>
    %c0_16 = arith.constant 0 : index
    %c0_17 = arith.constant 0 : index
    %25 = vector.load %arg9[%c0_16, %c0_17] : memref<256x128xbf16, #tpu.memory_space<vmem>>, vector<256x128xbf16>
    %cst_18 = arith.constant dense<0.000000e+00> : vector<256x128xf32>
    %26 = tpu.matmul %24, %25, %cst_18 {dimension_numbers = #tpu.dot_dimension_numbers<[1], [0], [0], [1], [0, 0, 1, 1], [], []>} : vector<256x256xbf16>, vector<256x128xbf16>, vector<256x128xf32> -> vector<256x128xf32>
    %27 = arith.addf %23, %26 : vector<256x128xf32>
    %c0_19 = arith.constant 0 : index
    %c0_20 = arith.constant 0 : index
    %28 = vector.load %arg13[%c0_19, %c0_20] : memref<256x128xf32, #tpu.memory_space<vmem>>, vector<256x128xf32>
    tpu.vector_store %arg13[%c0_19, %c0_20], %27 {strides = array<i32>} : memref<256x128xf32, #tpu.memory_space<vmem>>, vector<256x128xf32>,
    %c1_i32 = arith.constant 1 : i32
    %29 = arith.cmpi eq, %arg1, %c1_i32 : i32
    %30 = arith.extui %29 : i1 to i32
    %c0_i32_21 = arith.constant 0 : i32
    %31 = arith.cmpi ne, %30, %c0_i32_21 : i32
    scf.if %31 {
      %c0_22 = arith.constant 0 : index
      %c0_23 = arith.constant 0 : index
      %32 = vector.load %arg13[%c0_22, %c0_23] : memref<256x128xf32, #tpu.memory_space<vmem>>, vector<256x128xf32>
      %c0_24 = arith.constant 0 : index
      %c0_25 = arith.constant 0 : index
      %33 = vector.load %arg10[%c0_24, %c0_25] : memref<1x128xf32, #tpu.memory_space<vmem>>, vector<1x128xf32>
      %34 = vector.broadcast %33 : vector<1x128xf32> to vector<256x128xf32>
      %35 = arith.addf %32, %34 : vector<256x128xf32>
      %c0_26 = arith.constant 0 : index
      %c0_27 = arith.constant 0 : index
      %36 = vector.load %arg11[%c0_26, %c0_27] : memref<256x128xf32, #tpu.memory_space<vmem>>, vector<256x128xf32>
      tpu.vector_store %arg11[%c0_26, %c0_27], %35 {strides = array<i32>} : memref<256x128xf32, #tpu.memory_space<vmem>>, vector<256x128xf32>,
    } else {
    }
    return
  }
  func.func @transform_0(%arg0: i32, %arg1: i32) -> (i32, i32) {
    %c0_i32 = arith.constant 0 : i32
    %c0_i32_0 = arith.constant 0 : i32
    return %arg0, %c0_i32 : i32, i32
  }
  func.func @transform_1(%arg0: i32, %arg1: i32) -> (i32, i32) {
    %c0_i32 = arith.constant 0 : i32
    %c0_i32_0 = arith.constant 0 : i32
    %c0_i32_1 = arith.constant 0 : i32
    return %c0_i32, %c0_i32_0 : i32, i32
  }
  func.func @transform_2(%arg0: i32, %arg1: i32) -> (i32, i32) {
    %c0_i32 = arith.constant 0 : i32
    %c0_i32_0 = arith.constant 0 : i32
    %c0_i32_1 = arith.constant 0 : i32
    return %c0_i32, %c0_i32_0 : i32, i32
  }
  func.func @transform_3(%arg0: i32, %arg1: i32) -> (i32, i32) {
    %c0_i32 = arith.constant 0 : i32
    %c0_i32_0 = arith.constant 0 : i32
    return %c0_i32, %arg1 : i32, i32
  }
  func.func @transform_4(%arg0: i32, %arg1: i32) -> (i32, i32) {
    %c0_i32 = arith.constant 0 : i32
    %c0_i32_0 = arith.constant 0 : i32
    return %c0_i32, %arg1 : i32, i32
  }
  func.func @transform_5(%arg0: i32, %arg1: i32) -> (i32, i32) {
    %c0_i32 = arith.constant 0 : i32
    %c0_i32_0 = arith.constant 0 : i32
    return %c0_i32, %arg1 : i32, i32
  }
  func.func @transform_6(%arg0: i32, %arg1: i32) -> (i32, i32) {
    %c0_i32 = arith.constant 0 : i32
    %c0_i32_0 = arith.constant 0 : i32
    return %c0_i32, %arg1 : i32, i32
  }
  func.func @transform_7(%arg0: i32, %arg1: i32) -> (i32, i32) {
    %c0_i32 = arith.constant 0 : i32
    %c0_i32_0 = arith.constant 0 : i32
    return %arg1, %c0_i32 : i32, i32
  }
  func.func @transform_8(%arg0: i32, %arg1: i32) -> (i32, i32) {
    %c0_i32 = arith.constant 0 : i32
    %c0_i32_0 = arith.constant 0 : i32
    %c0_i32_1 = arith.constant 0 : i32
    return %c0_i32, %c0_i32_0 : i32, i32
  }
  func.func @transform_9(%arg0: i32, %arg1: i32) -> (i32, i32) {
    %c0_i32 = arith.constant 0 : i32
    %c0_i32_0 = arith.constant 0 : i32
    return %arg0, %c0_i32 : i32, i32
  }
}

</mosaic_0001>

<bundles_post_ra>
// kernel: _feedforward_2d.1
= control target key start
LH: loop header
LB: loop body
LE: loop exit
PB: predicated region body
PF: predicated region fallthrough
CT: control target
= control target key end

     0   :  { %s5709_s0 = inlined_call_operand.hbm [shape: f32[512,128], index: 0, kind: input, shape index: {}]   ;;  %s5710_s1 = inlined_call_operand.vmem [shape: f32[1,128], index: 1, kind: input, shape index: {}]   ;;  %s5711_s2 = inlined_call_operand.hbm [shape: f32[1,128], index: 2, kind: input, shape index: {}]   ;;  %s5712_s3 = inlined_call_operand.hbm [shape: bf16[128,512], index: 3, kind: input, shape index: {}]   ;;  %s5713_s4 = inlined_call_operand.hbm [shape: bf16[128,512], index: 4, kind: input, shape index: {}]   ;;  %s5714_s5 = inlined_call_operand.vmem [shape: f32[1,512], index: 5, kind: input, shape index: {}]   ;;  %s5715_s6 = inlined_call_operand.vmem [shape: f32[1,512], index: 6, kind: input, shape index: {}]   ;;  %s5716_s7 = inlined_call_operand.hbm [shape: bf16[512,128], index: 7, kind: input, shape index: {}]   ;;  %s5717_s8 = inlined_call_operand.vmem [shape: f32[1,128], index: 8, kind: input, shape index: {}]   ;;  %s5718_s9 = inlined_call_operand.hbm [shape: f32[512,128], index: 9, kind: output, shape index: {}]  }
   0x1   :  { %5728 = sst [smem:[#allocation46_spill]] %s5709_s0 }
   0x2   :  { %5729 = sst [smem:[#allocation47_spill]] %s5710_s1 }
   0x3   :  { %5730 = sst [smem:[#allocation48_spill]] %s5712_s3 }
   0x4   :  { %5731 = sst [smem:[#allocation49_spill]] %s5714_s5 }
   0x5   :  { %5732 = sst [smem:[#allocation50_spill]] %s5715_s6 }
   0x6   :  { %5733 = sst [smem:[#allocation51_spill]] %s5717_s8 }
   0x7   :  { %5734 = sst [smem:[#allocation52_spill]] %s5718_s9 }
   0x8   :  { %14 = vsyncpa [#allocation5], 0 }
   0x9   :  { %16 = vsyncpa [#allocation5 + $0x1], 0 }
   0xa   :  { %17 = vsyncpa [#allocation8], 0 }
   0xb   :  { %18 = vsyncpa [#allocation6], 0 }
   0xc   :  { %20 = vsyncpa [#allocation6 + $0x1], 0  ;;  %s4148_s30 = smov 0   ;;  %s4150_s10 = smov 0  }
   0xd   :  { %s4152_s11 = smov 0   ;;  %s4154_s12 = smov 0  }
   0xe   :  { %s4156_s13 = smov 0   ;;  %s4158_s14 = smov 0  }
   0xf   :  { %s4160_s15 = smov 0   ;;  %s4162_s16 = smov 0  }
  0x10   :  { %s4164_s17 = smov 0   ;;  %s4166_s18 = smov 0  }
  0x11   :  { %s4168_s19 = smov 0  }
  0x12 LB: > { %5735 = sst [smem:[#allocation17_spill]] %s4069_s16  ;;  %s35_s20 = sadd.s32 1, %s4073_s17  ;;  %s4081_s19 = sphi %s4168_s19, %s26_s19   ;;  %s4077_s18 = sphi %s4166_s18, %s5817_s18   ;;  %s4073_s17 = sphi %s4164_s17, %s5825_s17   ;;  %s4069_s16 = sphi %s4162_s16, %s5815_s16   ;;  %s4065_s15 = sphi %s4160_s15, %s5824_s15   ;;  %s4061_s14 = sphi %s4158_s14, %s5823_s14   ;;  %s4057_s13 = sphi %s4156_s13, %s5822_s13   ;;  %s4053_s12 = sphi %s4154_s12, %s5821_s12   ;;  %s4049_s11 = sphi %s4152_s11, %s5820_s11   ;;  %s4045_s10 = sphi %s4150_s10, %s5819_s10   ;;  %s4041_s30 = sphi %s4148_s30, %s5818_s30  }
  0x13   : > { %5736 = sst [smem:[#allocation18_spill]] %s4077_s18  ;;  %s38_s21 = sadd.s32 1, %s4077_s18 }
  0x14   : > { %p36_p0 = scmp.ge.s32.totalorder %s35_s20, 2  ;;  %s45_s22 = sadd.s32 1, %s4061_s14 }
  0x15   : > { %p52_p1 = scmp.ne.s32.totalorder %s4061_s14, %s4057_s13  ;;  %p53_p2 = scmp.eq.s32.totalorder %s4081_s19, 0 }
  0x16   : > { %s5827_s20 = smov (%p36_p0, %s35_s20), 0  ;;  %s5829_s21 = smov (!%p36_p0, %s38_s21), %s4077_s18 }
  0x17   : > { %5737 = sst [smem:[#allocation19_spill]] %s5827_s20  ;;  %p4215_p3 = por %p53_p2, %p52_p1 }
  0x18   : > { %s110_s24 = ssub.s32 %s4073_s17, %s5827_s20  ;;  %p40_p4 = scmp.ge.s32.totalorder %s5829_s21, 2 }
  0x19   : > { %p111_p5 = scmp.eq.s32.totalorder %s110_s24, 0  ;;  %s113_s25 = sadd.s32 1, %s4049_s11 }
  0x1a   : > { %p120_p6 = scmp.ne.s32.totalorder %s4049_s11, %s4045_s10  ;;  %s5831_s21 = smov (%p40_p4, %s5829_s21), 0 }
  0x1b   : > { %5739 = sst [smem:[#allocation20_spill]] %s5831_s21  ;;  %s42_s27 = ssub.s32 %s4077_s18, %s5831_s21 }
  0x1c   : > { %s4227_s26 = scalar_select %p111_p5, %s4049_s11, %s113_s25  }
  0x1d   : > { %p4231_p7 = por %p120_p6, %p53_p2  ;;  %p43_p8 = scmp.eq.s32.totalorder %s42_s27, 0 }
  0x1e   : > { %p3442_p9 = scmp.lt.s32.totalorder %s4081_s19, 4  ;;  %s318_s29 = sand.u32 1, %s4081_s19  }
  0x1f   : > { %s4238_s20 = scalar_select %p43_p8, %s4061_s14, %s45_s22  }
  0x20   : > { %s320_s24 = sand.u32 1, %s4061_s14   ;;  %s3146_s16 = sshll.u32 %s4077_s18, 12 }
  0x21   : > { %5741 = sst [smem:[#allocation21_spill]] %s4238_s20  ;;  %s3019_s9 = sshll.u32 %s320_s24, 8 }
  0x22   : > { %s5742_s0 = sld [smem:[#allocation46_spill]]  ;;  %s322_s5 = scalar_lea.vmem [#allocation4], %s3019_s9 }
  0x23   : > { %s329_s25 = sshll.u32 %s322_s5, 4  ;;  %p4249_p10 = pnand %p3442_p9, %p4215_p3  ;;  %s330_s25 = int_to_ptr.vmem [resolvable:$true] %s329_s25 }
  0x24   : > { %s4253_s27 = scalar_lea.sflag [#allocation5], %s318_s29  ;;  %s3828_s22 = scalar_lea.vmem %s330_s25, 4096 }
  0x25   : > { %p3817_p11 = pneg %p4249_p10  ;;  %p3829_p12 = scmp.ne.s32.totalorder %s330_s25, %s3828_s22 }
  0x26   : > { %s4083_s1 = smov [#allocation4]  }
  0x27   : > { %p3831_p13 = pnand %p3829_p12, %p3817_p11  ;;  %s3833_s8 = sshll.u32 %s4083_s1, 4  ;;  %s3834_s8 = int_to_ptr.vmem [resolvable:$false] %s3833_s8 }
  0x28   : > { %s328_s6 = scalar_lea.hbm %s5742_s0, %s3146_s16  ;;  %s3835_s5 = scalar_lea.vmem %s3834_s8, 8192 }
  0x29   : > { %p3832_p0 = pneg %p3831_p13  ;;  %p3836_p2 = scmp.lt.s32.totalorder %s330_s25, %s3834_s8 }
  0x2a   : > { %p3837_p4 = scmp.lt.s32.totalorder %s3835_s5, %s3828_s22 }
  0x2c   : > { %p3838_p3 = por %p3837_p4, %p3836_p2 }
  0x2e   : > { %p3839_p5 = pnand %p3838_p3, %p3832_p0 }
  0x30   : > { %3842 = shalt.err (!%p3839_p5)
}
  0x31   : > { %s4084_s9 = smov 128   ;;  %s4085_s16 = smov 8  }
  0x32   : > { %3427 = dma.hbm_to_vmem [thread:$0]  (!%p4249_p10), %s328_s6, 4096, %s330_s25, %s4253_s27, %s4084_s9, %s4084_s9, %s4085_s16  }
  0x33   : > { %p4267_p6 = pnand %p3442_p9, %p4231_p7  ;;  %s341_s29 = sand.u32 1, %s4049_s11  }
  0x34   : > { %s4272_s24 = sshll.u32 %s341_s29, 7  ;;  %s3147_s22 = sshll.u32 %s4073_s17, 7 }
  0x35   : > { %s5745_s3 = sld [smem:[#allocation48_spill]]  ;;  %s343_s5 = scalar_lea.vmem [#allocation9], %s4272_s24 }
  0x36   : > { %s350_s0 = sshll.u32 %s343_s5, 4  ;;  %p5723_p8 = pneg %p4267_p6  ;;  %s351_s0 = int_to_ptr.vmem [resolvable:$true] %s350_s0 }
  0x37   : > { %s3856_s6 = scalar_lea.vmem %s351_s0, 2048  ;;  %s4086_s28 = smov [#allocation9]  }
  0x38   : > { %p3857_p7 = scmp.ne.s32.totalorder %s351_s0, %s3856_s6  ;;  %s3861_s25 = sshll.u32 %s4086_s28, 4  ;;  %s3862_s25 = int_to_ptr.vmem [resolvable:$false] %s3861_s25 }
  0x39   : > { %s3863_s29 = scalar_lea.vmem %s3862_s25, 4096  ;;  %p3864_p11 = scmp.lt.s32.totalorder %s351_s0, %s3862_s25 }
  0x3a   : > { %p3859_p9 = pnand %p3857_p7, %p5723_p8  ;;  %p3865_p12 = scmp.lt.s32.totalorder %s3863_s29, %s3856_s6 }
  0x3b   : > { %s349_s21 = scalar_lea.hbm %s5745_s3, %s3147_s22 }
  0x3c   : > { %p3860_p10 = pneg %p3859_p9  ;;  %p3866_p13 = por %p3865_p12, %p3864_p11 }
  0x3e   : > { %p3867_p0 = pnand %p3866_p13, %p3860_p10 }
  0x40   : > { %3870 = shalt.err (!%p3867_p0)
}
  0x41   : > { %s4087_s1 = smov 256   ;;  %s370_s28 = scalar_lea.hbm %s5713_s4, %s3147_s22 }
  0x42   : > { %3430 = dma.hbm_to_vmem [thread:$0]  (!%p4267_p6), %s349_s21, 2048, %s351_s0, %s4253_s27, %s4087_s1, %s4084_s9, %s4085_s16  }
  0x43   : > { %s364_s3 = scalar_lea.vmem [#allocation10], %s4272_s24  ;;  %s4088_s25 = smov [#allocation10]  }
  0x44   : > { %s371_s18 = sshll.u32 %s364_s3, 4  ;;  %s3889_s29 = sshll.u32 %s4088_s25, 4  ;;  %s372_s18 = int_to_ptr.vmem [resolvable:$true] %s371_s18  ;;  %s3890_s29 = int_to_ptr.vmem [resolvable:$false] %s3889_s29 }
  0x45   : > { %s3884_s6 = scalar_lea.vmem %s372_s18, 2048  ;;  %s3891_s20 = scalar_lea.vmem %s3890_s29, 4096 }
  0x46   : > { %p3885_p2 = scmp.ne.s32.totalorder %s372_s18, %s3884_s6  ;;  %p3892_p5 = scmp.lt.s32.totalorder %s372_s18, %s3890_s29 }
  0x47   : > { %p3893_p7 = scmp.lt.s32.totalorder %s3891_s20, %s3884_s6 }
  0x48   : > { %p3887_p4 = pnand %p3885_p2, %p5723_p8 }
  0x49   : > { %p3894_p9 = por %p3893_p7, %p3892_p5 }
  0x4a   : > { %p3888_p3 = pneg %p3887_p4 }
  0x4c   : > { %p3895_p10 = pnand %p3894_p9, %p3888_p3 }
  0x4e   : > { %3898 = shalt.err (!%p3895_p10)
}
  0x4f   : > { %3433 = dma.hbm_to_vmem [thread:$0]  (!%p4267_p6), %s370_s28, 2048, %s372_s18, %s4253_s27, %s4087_s1, %s4084_s9, %s4085_s16  }
  0x50   : > { %s4302_s0 = sadd.s32 4294967295, %s4081_s19   ;;  %s3015_s3 = sadd.s32 4294967294, %s4081_s19  }
  0x51   : > { %p58_p11 = scmp.ne.s32.totalorder %s4057_s13, %s4053_s12  ;;  %p5726_p12 = scmp.eq.s32.totalorder %s4302_s0, 0 }
  0x52   : > { %p126_p13 = scmp.ne.s32.totalorder %s4045_s10, %s4041_s30  ;;  %p275_p0 = scmp.eq.s32.totalorder %s4302_s0, 3 }
  0x53   : > { %p4313_p2 = por %p5726_p12, %p58_p11  ;;  %p281_p4 = scmp.eq.s32.totalorder %s3015_s3, 3 }
  0x54   : > { %p4319_p3 = por %p126_p13, %p5726_p12  ;;  %p4326_p5 = por %p275_p0, %p52_p1 }
  0x55   : > { %p4330_p7 = por %p281_p4, %p58_p11  ;;  %p3016_p9 = scmp.ge.s32.totalorder %s4081_s19, 1 }
  0x56   : > { %s5747_s18 = scalar_select %p4319_p3, 1, 0 }
  0x57   : > { %s5748_s9 = scalar_select %p4326_p5, 1, 0 }
  0x58   : > { %s5749_s30 = scalar_select %p4330_p7, 1, 0 }
  0x59   : > { %p288_p10 = scmp.lt.s32.totalorder %s4081_s19, 5  ;;  %s4089_s22 = smov [#allocation7]  }
  0x5a   : > { %s304_s21 = sshll.u32 %s4089_s22, 4  ;;  %s3149_s1 = sshll.u32 %s4073_s17, 11  ;;  %s305_s21 = int_to_ptr.vmem [resolvable:$true] %s304_s21 }
  0x5b   : > { %p4336_p8 = pnand %p3016_p9, %p288_p10  ;;  %s4346_s28 = scalar_lea.hbm %s5716_s7, %s3149_s1 }
  0x5c   : > { %s401_s6 = scalar_lea.vmem [#allocation11], %s4272_s24  ;;  %s3910_s29 = scalar_lea.vmem %s305_s21, 16 }
  0x5d   : > { %p3420_p13 = pneg %p4336_p8  ;;  %s408_s25 = sshll.u32 %s401_s6, 4  ;;  %s4351_s25 = int_to_ptr.vmem [resolvable:$true] %s408_s25 }
  0x5e   : > { %p3911_p0 = scmp.ne.s32.totalorder %s305_s21, %s3910_s29  ;;  %s3917_s3 = scalar_lea.vmem %s305_s21, 32 }
  0x5f   : > { %p3421_p1 = pnand %p3420_p13, %p5726_p12  ;;  %p3918_p10 = scmp.lt.s32.totalorder %s305_s21, %s305_s21 }
  0x60   : > { %p3919_p7 = scmp.lt.s32.totalorder %s3917_s3, %s3910_s29 }
  0x61   : > { %p3901_p11 = pneg %p3421_p1 }
  0x62   : > { %p3920_p5 = por %p3919_p7, %p3918_p10 }
  0x63   : > { %p3913_p4 = pnand %p3911_p0, %p3901_p11 }
  0x65   : > { %p3914_p9 = pneg %p3913_p4 }
  0x67   : > { %p3921_p3 = pnand %p3920_p5, %p3914_p9 }
  0x69   : > { %3924 = shalt.err (!%p3921_p3)
}
  0x6a   : > { %3423 = dma.hbm_to_vmem [thread:$0]  (!%p3421_p1), %s5711_s2, 16, %s305_s21, [#allocation8]  }
  0x6b   : > { %s3938_s24 = scalar_lea.vmem %s4351_s25, 2048  ;;  %p5751_p12 = pneg %p4267_p6 }
  0x6c   : > { %p3939_p13 = scmp.ne.s32.totalorder %s4351_s25, %s3938_s24  ;;  %s4090_s8 = smov [#allocation11]  }
  0x6d   : > { %s3943_s5 = sshll.u32 %s4090_s8, 4  ;;  %s3944_s5 = int_to_ptr.vmem [resolvable:$false] %s3943_s5 }
  0x6e   : > { %p3941_p11 = pnand %p3939_p13, %p5751_p12  ;;  %s3945_s6 = scalar_lea.vmem %s3944_s5, 4096 }
  0x6f   : > { %p3946_p5 = scmp.lt.s32.totalorder %s4351_s25, %s3944_s5  ;;  %p3947_p3 = scmp.lt.s32.totalorder %s3945_s6, %s3938_s24 }
  0x70   : > { %p3942_p0 = pneg %p3941_p11 }
  0x71   : > { %p3948_p7 = por %p3947_p3, %p3946_p5 }
  0x73   : > { %p3949_p4 = pnand %p3948_p7, %p3942_p0 }
  0x75   : > { %3952 = shalt.err (!%p3949_p4)
}
  0x76   : > { %s4091_s29 = smov 64   ;;  %s4092_s21 = smov 4  }
  0x77   : > { %3436 = dma.hbm_to_vmem [thread:$0]  (!%p4267_p6), %s4346_s28, 2048, %s4351_s25, %s4253_s27, %s4091_s29, %s4091_s29, %s4092_s21  }
  0x78   : > { %420 = sbr.rel (%p4336_p8) target bundleno = 1217 (0x4c1), region = 56 }
  0x7d   : > { %s422_s3 = sand.u32 1, %s4302_s0   ;;  %s5727_s22 = sand.u32 1, %s4057_s13  }
  0x7e   : > { %s3032_s1 = sshll.u32 %s5727_s22, 8  ;;  %s423_s24 = scalar_lea.sflag [#allocation5], %s422_s3 }
  0x7f   : > { %s4373_s8 = scalar_lea.vmem [#allocation4], %s3032_s1 }
  0x80   : > { %4024 = dma.done.wait (%p4313_p2), %s423_s24, 4096  }
  0x81   : > { %4026 = vsyncadd (%p4313_p2), %s423_s24, 4294963200  ;;  %p5752_p6 = scmp.eq.s32.totalorder %s4302_s0, 0 }
  0x83   : > { %4028 = dma.done.wait (%p5752_p6), [#allocation8], 16   ;;  %p5753_p8 = pmov %p5752_p6 }
  0x84   : > { %s437_s27 = sand.u32 1, %s4045_s10   ;;  %p5754_p12 = scmp.ne.s32.totalorder %s5747_s18, 0 }
  0x85   : > { %4030 = vsyncadd (%p5753_p8), [#allocation8], 4294967280  ;;  %s3034_s23 = sshll.u32 %s437_s27, 7 }
  0x86   : > { %s4384_s16 = scalar_lea.vmem [#allocation9], %s3034_s23 }
  0x87   : > { %4032 = dma.done.wait (%p5754_p12), %s423_s24, 6144  }
  0x88   : > { %4034 = vsyncadd (%p5754_p12), %s423_s24, 4294961152  ;;  %s3038_s20 = sshll.u32 %s4065_s15, 1  ;;  %s5755_s25 = sld [smem:[#allocation49_spill]] }
  0x89   : > { %p519_p2 = scmp.lt.s32.totalorder %s3038_s20, 3  ;;  %s5756_s21 = sld [smem:[#allocation50_spill]] }
  0x8a   : > { %s4401_s27 = scalar_lea.vmem [#allocation10], %s3034_s23  ;;  %s4403_s22 = scalar_lea.vmem [#allocation11], %s3034_s23 }
  0x8b   : > { %s5833_s20 = smov (!%p519_p2, %s3038_s20), 3  ;;  %s4405_s18 = scalar_lea.vmem [#allocation12], %s3032_s1 }
  0x8c   : > { %p3040_p1 = scmp.ne.s32.totalorder %s4065_s15, 0 }
  0x8e   : > { %s521_s5 = scalar_lea.vmem %s5755_s25, %s5833_s20  ;;  %534 = sbr.rel (%p3040_p1) target bundleno = 521 (0x209), region = 80 }
  0x8f   : > { %s526_s3 = scalar_lea.vmem %s5756_s21, %s5833_s20 }
  0x93   : > { %v4409_v0 = vld [vmem:[%s4373_s8] sm:$0xff]  ;;  %v4412_v1 = vld [vmem:[%s4373_s8 + $0x10] sm:$0xff]  ;;  %v4417_v2 = vld [vmem:[%s4373_s8 + $0x8] sm:$0xff] }
  0x94   : > { %567 = vadd.xlane.f32.xlu0 %v4409_v0  ;;  %571 = vadd.xlane.f32.xlu1 %v4412_v1  ;;  %v4420_v3 = vld [vmem:[%s4373_s8 + $0x18] sm:$0xff]  ;;  %v4425_v4 = vld [vmem:[%s4373_s8 + $0x20] sm:$0xff]  ;;  %v4428_v5 = vld [vmem:[%s4373_s8 + $0x28] sm:$0xff] }
  0x95   : > { %v4433_v6 = vld [vmem:[%s4373_s8 + $0x30] sm:$0xff]  ;;  %v4436_v7 = vld [vmem:[%s4373_s8 + $0x38] sm:$0xff]  ;;  %v4441_v8 = vld [vmem:[%s4373_s8 + $0x40] sm:$0xff] }
  0x96   : > { %v4444_v9 = vld [vmem:[%s4373_s8 + $0x48] sm:$0xff]  ;;  %v4449_v10 = vld [vmem:[%s4373_s8 + $0x50] sm:$0xff]  ;;  %v4452_v11 = vld [vmem:[%s4373_s8 + $0x58] sm:$0xff] }
  0x97   : > { %v4457_v12 = vld [vmem:[%s4373_s8 + $0x60] sm:$0xff]  ;;  %v4460_v13 = vld [vmem:[%s4373_s8 + $0x68] sm:$0xff]  ;;  %v4465_v14 = vld [vmem:[%s4373_s8 + $0x70] sm:$0xff] }
  0x98   : > { %569 = vadd.xlane.f32.xlu0 %v4417_v2  ;;  %573 = vadd.xlane.f32.xlu1 %v4420_v3  ;;  %v4468_v15 = vld [vmem:[%s4373_s8 + $0x78] sm:$0xff]  ;;  %v4473_v16 = vld [vmem:[%s4373_s8 + $0x80] sm:$0xff]  ;;  %v4476_v17 = vld [vmem:[%s4373_s8 + $0x88] sm:$0xff] }
  0x99   : > { %v4481_v18 = vld [vmem:[%s4373_s8 + $0x90] sm:$0xff]  ;;  %v4484_v19 = vld [vmem:[%s4373_s8 + $0x98] sm:$0xff]  ;;  %v4489_v20 = vld [vmem:[%s4373_s8 + $0xa0] sm:$0xff] }
  0x9a   : > { %v4492_v21 = vld [vmem:[%s4373_s8 + $0xa8] sm:$0xff]  ;;  %v4497_v22 = vld [vmem:[%s4373_s8 + $0xb0] sm:$0xff]  ;;  %v4500_v23 = vld [vmem:[%s4373_s8 + $0xb8] sm:$0xff] }
  0x9b   : > { %v4505_v24 = vld [vmem:[%s4373_s8 + $0xc0] sm:$0xff]  ;;  %v4508_v25 = vld [vmem:[%s4373_s8 + $0xc8] sm:$0xff]  ;;  %v4513_v26 = vld [vmem:[%s4373_s8 + $0xd0] sm:$0xff] }
  0x9c   : > { %575 = vadd.xlane.f32.xlu0 %v4425_v4  ;;  %577 = vadd.xlane.f32.xlu1 %v4428_v5  ;;  %v4516_v27 = vld [vmem:[%s4373_s8 + $0xd8] sm:$0xff]  ;;  %v4521_v28 = vld [vmem:[%s4373_s8 + $0xe0] sm:$0xff]  ;;  %v4524_v29 = vld [vmem:[%s4373_s8 + $0xe8] sm:$0xff] }
  0x9d   : > { %v4529_v30 = vld [vmem:[%s4373_s8 + $0xf0] sm:$0xff]  ;;  %v4532_v31 = vld [vmem:[%s4373_s8 + $0xf8] sm:$0xff]  ;;  %s5757_s8 = sld [smem:[#allocation47_spill]] }
  0xa0   : > { %579 = vadd.xlane.f32.xlu0 %v4433_v6  ;;  %581 = vadd.xlane.f32.xlu1 %v4436_v7 }
  0xa4   : > { %583 = vadd.xlane.f32.xlu0 %v4441_v8  ;;  %585 = vadd.xlane.f32.xlu1 %v4444_v9 }
  0xa8   : > { %587 = vadd.xlane.f32.xlu0 %v4449_v10  ;;  %589 = vadd.xlane.f32.xlu1 %v4452_v11 }
  0xac   : > { %591 = vadd.xlane.f32.xlu0 %v4457_v12  ;;  %593 = vadd.xlane.f32.xlu1 %v4460_v13 }
  0xb0   : > { %595 = vadd.xlane.f32.xlu0 %v4465_v14  ;;  %597 = vadd.xlane.f32.xlu1 %v4468_v15 }
  0xb4   : > { %599 = vadd.xlane.f32.xlu0 %v4473_v16  ;;  %601 = vadd.xlane.f32.xlu1 %v4476_v17 }
  0xb8   : > { %603 = vadd.xlane.f32.xlu0 %v4481_v18  ;;  %605 = vadd.xlane.f32.xlu1 %v4484_v19 }
  0xbc   : > { %607 = vadd.xlane.f32.xlu0 %v4489_v20  ;;  %609 = vadd.xlane.f32.xlu1 %v4492_v21 }
  0xc0   : > { %611 = vadd.xlane.f32.xlu0 %v4497_v22  ;;  %613 = vadd.xlane.f32.xlu1 %v4500_v23 }
  0xc4   : > { %615 = vadd.xlane.f32.xlu0 %v4505_v24  ;;  %617 = vadd.xlane.f32.xlu1 %v4508_v25 }
  0xc8   : > { %619 = vadd.xlane.f32.xlu0 %v4513_v26  ;;  %621 = vadd.xlane.f32.xlu1 %v4516_v27 }
  0xcc   : > { %623 = vadd.xlane.f32.xlu0 %v4521_v28  ;;  %625 = vadd.xlane.f32.xlu1 %v4524_v29 }
  0xd0   : > { %627 = vadd.xlane.f32.xlu0 %v4529_v30  ;;  %629 = vadd.xlane.f32.xlu1 %v4532_v31 }
 0x11d   : > { %v568_v32 = vpop.xlane.xlu0 %567  ;;  %v572_v33 = vpop.xlane.xlu1 %571 }
 0x11e   : > { %v632_v34 = vmul.f32 0.0078125, %v568_v32  ;;  %v634_v35 = vmul.f32 0.0078125, %v572_v33 }
 0x120   : > { %v4537_v36 = vsub.f32 %v4409_v0, %v632_v34  ;;  %v4540_v37 = vsub.f32 %v4412_v1, %v634_v35 }
 0x121   : > { %v570_v38 = vpop.xlane.xlu0 %569  ;;  %v574_v39 = vpop.xlane.xlu1 %573 }
 0x122   : > { %v633_v40 = vmul.f32 0.0078125, %v570_v38  ;;  %v696_v41 = vmul.f32 %v4537_v36, %v4537_v36  ;;  %v635_v42 = vmul.f32 0.0078125, %v574_v39  ;;  %v698_v45 = vmul.f32 %v4540_v37, %v4540_v37 }
 0x124   : > { %v4545_v43 = vsub.f32 %v4417_v2, %v633_v40  ;;  %728 = vadd.xlane.f32.xlu0 %v696_v41  ;;  %v4548_v44 = vsub.f32 %v4420_v3, %v635_v42 }
 0x125   : > { %v576_v46 = vpop.xlane.xlu0 %575  ;;  %v578_v47 = vpop.xlane.xlu1 %577 }
 0x126   : > { %v636_v48 = vmul.f32 0.0078125, %v576_v46  ;;  %v697_v49 = vmul.f32 %v4545_v43, %v4545_v43  ;;  %v637_v50 = vmul.f32 0.0078125, %v578_v47  ;;  %v699_v53 = vmul.f32 %v4548_v44, %v4548_v44 }
 0x128   : > { %v4555_v51 = vsub.f32 %v4425_v4, %v636_v48  ;;  %732 = vadd.xlane.f32.xlu0 %v698_v45  ;;  %730 = vadd.xlane.f32.xlu1 %v697_v49  ;;  %v4558_v52 = vsub.f32 %v4428_v5, %v637_v50 }
 0x129   : > { %v580_v54 = vpop.xlane.xlu0 %579  ;;  %v582_v55 = vpop.xlane.xlu1 %581 }
 0x12a   : > { %v638_v56 = vmul.f32 0.0078125, %v580_v54  ;;  %v700_v57 = vmul.f32 %v4555_v51, %v4555_v51  ;;  %v639_v58 = vmul.f32 0.0078125, %v582_v55  ;;  %v701_v61 = vmul.f32 %v4558_v52, %v4558_v52 }
 0x12c   : > { %v4565_v59 = vsub.f32 %v4433_v6, %v638_v56  ;;  %734 = vadd.xlane.f32.xlu1 %v699_v53  ;;  %736 = vadd.xlane.f32.xlu0 %v700_v57  ;;  %v4568_v60 = vsub.f32 %v4436_v7, %v639_v58 }
 0x12d   : > { %v584_v62 = vpop.xlane.xlu0 %583  ;;  %v586_v63 = vpop.xlane.xlu1 %585 }
 0x12e   : > { %v640_v0 = vmul.f32 0.0078125, %v584_v62  ;;  %v702_v1 = vmul.f32 %v4565_v59, %v4565_v59  ;;  %v641_v2 = vmul.f32 0.0078125, %v586_v63  ;;  %v703_v5 = vmul.f32 %v4568_v60, %v4568_v60 }
 0x130   : > { %v4575_v3 = vsub.f32 %v4441_v8, %v640_v0  ;;  %738 = vadd.xlane.f32.xlu1 %v701_v61  ;;  %740 = vadd.xlane.f32.xlu0 %v702_v1  ;;  %v4578_v4 = vsub.f32 %v4444_v9, %v641_v2 }
 0x131   : > { %v588_v6 = vpop.xlane.xlu0 %587  ;;  %v590_v7 = vpop.xlane.xlu1 %589 }
 0x132   : > { %v642_v32 = vmul.f32 0.0078125, %v588_v6  ;;  %v704_v33 = vmul.f32 %v4575_v3, %v4575_v3  ;;  %v643_v34 = vmul.f32 0.0078125, %v590_v7  ;;  %v705_v9 = vmul.f32 %v4578_v4, %v4578_v4 }
 0x134   : > { %v4585_v35 = vsub.f32 %v4449_v10, %v642_v32  ;;  %742 = vadd.xlane.f32.xlu1 %v703_v5  ;;  %744 = vadd.xlane.f32.xlu0 %v704_v33  ;;  %v4588_v8 = vsub.f32 %v4452_v11, %v643_v34 }
 0x135   : > { %v592_v38 = vpop.xlane.xlu0 %591  ;;  %v594_v39 = vpop.xlane.xlu1 %593 }
 0x136   : > { %v644_v40 = vmul.f32 0.0078125, %v592_v38  ;;  %v706_v41 = vmul.f32 %v4585_v35, %v4585_v35  ;;  %v645_v42 = vmul.f32 0.0078125, %v594_v39  ;;  %v707_v11 = vmul.f32 %v4588_v8, %v4588_v8 }
 0x138   : > { %v4595_v45 = vsub.f32 %v4457_v12, %v644_v40  ;;  %746 = vadd.xlane.f32.xlu1 %v705_v9  ;;  %748 = vadd.xlane.f32.xlu0 %v706_v41  ;;  %v4598_v10 = vsub.f32 %v4460_v13, %v645_v42 }
 0x139   : > { %v596_v46 = vpop.xlane.xlu0 %595  ;;  %v598_v47 = vpop.xlane.xlu1 %597 }
 0x13a   : > { %v646_v48 = vmul.f32 0.0078125, %v596_v46  ;;  %v708_v49 = vmul.f32 %v4595_v45, %v4595_v45  ;;  %v647_v50 = vmul.f32 0.0078125, %v598_v47  ;;  %v709_v13 = vmul.f32 %v4598_v10, %v4598_v10 }
 0x13c   : > { %v4605_v53 = vsub.f32 %v4465_v14, %v646_v48  ;;  %750 = vadd.xlane.f32.xlu1 %v707_v11  ;;  %752 = vadd.xlane.f32.xlu0 %v708_v49  ;;  %v4608_v12 = vsub.f32 %v4468_v15, %v647_v50 }
 0x13d   : > { %v600_v54 = vpop.xlane.xlu0 %599  ;;  %v602_v55 = vpop.xlane.xlu1 %601 }
 0x13e   : > { %v648_v56 = vmul.f32 0.0078125, %v600_v54  ;;  %v710_v57 = vmul.f32 %v4605_v53, %v4605_v53  ;;  %v649_v58 = vmul.f32 0.0078125, %v602_v55  ;;  %v711_v15 = vmul.f32 %v4608_v12, %v4608_v12 }
 0x140   : > { %v4615_v61 = vsub.f32 %v4473_v16, %v648_v56  ;;  %754 = vadd.xlane.f32.xlu1 %v709_v13  ;;  %756 = vadd.xlane.f32.xlu0 %v710_v57  ;;  %v4618_v14 = vsub.f32 %v4476_v17, %v649_v58 }
 0x141   : > { %v604_v62 = vpop.xlane.xlu0 %603  ;;  %v606_v63 = vpop.xlane.xlu1 %605 }
 0x142   : > { %v650_v0 = vmul.f32 0.0078125, %v604_v62  ;;  %v712_v1 = vmul.f32 %v4615_v61, %v4615_v61  ;;  %v651_v2 = vmul.f32 0.0078125, %v606_v63  ;;  %v713_v17 = vmul.f32 %v4618_v14, %v4618_v14 }
 0x144   : > { %v4625_v5 = vsub.f32 %v4481_v18, %v650_v0  ;;  %758 = vadd.xlane.f32.xlu1 %v711_v15  ;;  %760 = vadd.xlane.f32.xlu0 %v712_v1  ;;  %v4628_v16 = vsub.f32 %v4484_v19, %v651_v2 }
 0x145   : > { %v608_v6 = vpop.xlane.xlu0 %607  ;;  %v610_v7 = vpop.xlane.xlu1 %609 }
 0x146   : > { %v652_v32 = vmul.f32 0.0078125, %v608_v6  ;;  %v714_v33 = vmul.f32 %v4625_v5, %v4625_v5  ;;  %v653_v34 = vmul.f32 0.0078125, %v610_v7  ;;  %v715_v19 = vmul.f32 %v4628_v16, %v4628_v16 }
 0x148   : > { %v4635_v9 = vsub.f32 %v4489_v20, %v652_v32  ;;  %762 = vadd.xlane.f32.xlu1 %v713_v17  ;;  %764 = vadd.xlane.f32.xlu0 %v714_v33  ;;  %v4638_v18 = vsub.f32 %v4492_v21, %v653_v34 }
 0x149   : > { %v612_v38 = vpop.xlane.xlu0 %611  ;;  %v614_v39 = vpop.xlane.xlu1 %613 }
 0x14a   : > { %v654_v40 = vmul.f32 0.0078125, %v612_v38  ;;  %v716_v41 = vmul.f32 %v4635_v9, %v4635_v9  ;;  %v655_v42 = vmul.f32 0.0078125, %v614_v39  ;;  %v717_v21 = vmul.f32 %v4638_v18, %v4638_v18 }
 0x14c   : > { %v4645_v11 = vsub.f32 %v4497_v22, %v654_v40  ;;  %766 = vadd.xlane.f32.xlu1 %v715_v19  ;;  %768 = vadd.xlane.f32.xlu0 %v716_v41  ;;  %v4648_v20 = vsub.f32 %v4500_v23, %v655_v42  ;;  %v4093_v40 = vmov 0.0  }
 0x14d   : > { %v616_v46 = vpop.xlane.xlu0 %615  ;;  %v618_v47 = vpop.xlane.xlu1 %617  ;;  %1158 = vst [vmem:[#allocation3 + $0xb0] sm:$0xff] %v4093_v40  ;;  %1159 = vst [vmem:[#allocation3] sm:$0xff] %v4093_v40 }
 0x14e   : > { %v656_v48 = vmul.f32 0.0078125, %v616_v46  ;;  %v718_v49 = vmul.f32 %v4645_v11, %v4645_v11  ;;  %v657_v50 = vmul.f32 0.0078125, %v618_v47  ;;  %v719_v23 = vmul.f32 %v4648_v20, %v4648_v20  ;;  %1160 = vst [vmem:[#allocation3 + $0xd8] sm:$0xff] %v4093_v40  ;;  %1161 = vst [vmem:[#allocation3 + $0x18] sm:$0xff] %v4093_v40 }
 0x14f   : > { %1162 = vst [vmem:[#allocation3 + $0x50] sm:$0xff] %v4093_v40  ;;  %1163 = vst [vmem:[#allocation3 + $0x68] sm:$0xff] %v4093_v40 }
 0x150   : > { %v4655_v13 = vsub.f32 %v4505_v24, %v656_v48  ;;  %770 = vadd.xlane.f32.xlu1 %v717_v21  ;;  %772 = vadd.xlane.f32.xlu0 %v718_v49  ;;  %v4658_v22 = vsub.f32 %v4508_v25, %v657_v50  ;;  %1164 = vst [vmem:[#allocation3 + $0x30] sm:$0xff] %v4093_v40  ;;  %1165 = vst [vmem:[#allocation3 + $0x48] sm:$0xff] %v4093_v40 }
 0x151   : > { %v620_v54 = vpop.xlane.xlu0 %619  ;;  %v622_v55 = vpop.xlane.xlu1 %621  ;;  %1166 = vst [vmem:[#allocation3 + $0x80] sm:$0xff] %v4093_v40  ;;  %1167 = vst [vmem:[#allocation3 + $0x88] sm:$0xff] %v4093_v40 }
 0x152   : > { %v658_v56 = vmul.f32 0.0078125, %v620_v54  ;;  %v720_v57 = vmul.f32 %v4655_v13, %v4655_v13  ;;  %v659_v58 = vmul.f32 0.0078125, %v622_v55  ;;  %v721_v25 = vmul.f32 %v4658_v22, %v4658_v22  ;;  %1168 = vst [vmem:[#allocation3 + $0xe8] sm:$0xff] %v4093_v40  ;;  %1169 = vst [vmem:[#allocation3 + $0xb8] sm:$0xff] %v4093_v40 }
 0x153   : > { %1170 = vst [vmem:[#allocation3 + $0x60] sm:$0xff] %v4093_v40  ;;  %1171 = vst [vmem:[#allocation3 + $0xf0] sm:$0xff] %v4093_v40 }
 0x154   : > { %v4665_v15 = vsub.f32 %v4513_v26, %v658_v56  ;;  %774 = vadd.xlane.f32.xlu1 %v719_v23  ;;  %776 = vadd.xlane.f32.xlu0 %v720_v57  ;;  %v4668_v24 = vsub.f32 %v4516_v27, %v659_v58  ;;  %1172 = vst [vmem:[#allocation3 + $0x8] sm:$0xff] %v4093_v40  ;;  %1173 = vst [vmem:[#allocation3 + $0x78] sm:$0xff] %v4093_v40 }
 0x155   : > { %v624_v62 = vpop.xlane.xlu0 %623  ;;  %v626_v63 = vpop.xlane.xlu1 %625  ;;  %1174 = vst [vmem:[#allocation3 + $0x38] sm:$0xff] %v4093_v40  ;;  %1175 = vst [vmem:[#allocation3 + $0x58] sm:$0xff] %v4093_v40 }
 0x156   : > { %v660_v0 = vmul.f32 0.0078125, %v624_v62  ;;  %v722_v1 = vmul.f32 %v4665_v15, %v4665_v15  ;;  %v661_v2 = vmul.f32 0.0078125, %v626_v63  ;;  %v723_v27 = vmul.f32 %v4668_v24, %v4668_v24  ;;  %1176 = vst [vmem:[#allocation3 + $0x40] sm:$0xff] %v4093_v40  ;;  %1177 = vst [vmem:[#allocation3 + $0xc8] sm:$0xff] %v4093_v40 }
 0x157   : > { %1178 = vst [vmem:[#allocation3 + $0xe0] sm:$0xff] %v4093_v40  ;;  %1179 = vst [vmem:[#allocation3 + $0x90] sm:$0xff] %v4093_v40 }
 0x158   : > { %v4675_v17 = vsub.f32 %v4521_v28, %v660_v0  ;;  %778 = vadd.xlane.f32.xlu1 %v721_v25  ;;  %780 = vadd.xlane.f32.xlu0 %v722_v1  ;;  %v4678_v26 = vsub.f32 %v4524_v29, %v661_v2  ;;  %1180 = vst [vmem:[#allocation3 + $0x70] sm:$0xff] %v4093_v40  ;;  %1181 = vst [vmem:[#allocation3 + $0xc0] sm:$0xff] %v4093_v40 }
 0x159   : > { %v628_v6 = vpop.xlane.xlu0 %627  ;;  %v630_v7 = vpop.xlane.xlu1 %629  ;;  %1182 = vst [vmem:[#allocation3 + $0xa8] sm:$0xff] %v4093_v40  ;;  %1183 = vst [vmem:[#allocation3 + $0xd0] sm:$0xff] %v4093_v40 }
 0x15a   : > { %v662_v32 = vmul.f32 0.0078125, %v628_v6  ;;  %v724_v33 = vmul.f32 %v4675_v17, %v4675_v17  ;;  %v663_v34 = vmul.f32 0.0078125, %v630_v7  ;;  %v725_v29 = vmul.f32 %v4678_v26, %v4678_v26  ;;  %1184 = vst [vmem:[#allocation3 + $0x10] sm:$0xff] %v4093_v40  ;;  %1185 = vst [vmem:[#allocation3 + $0x28] sm:$0xff] %v4093_v40 }
 0x15b   : > { %1186 = vst [vmem:[#allocation3 + $0xa0] sm:$0xff] %v4093_v40  ;;  %1187 = vst [vmem:[#allocation3 + $0xf8] sm:$0xff] %v4093_v40 }
 0x15c   : > { %v4685_v19 = vsub.f32 %v4529_v30, %v662_v32  ;;  %782 = vadd.xlane.f32.xlu1 %v723_v27  ;;  %784 = vadd.xlane.f32.xlu0 %v724_v33  ;;  %v4688_v28 = vsub.f32 %v4532_v31, %v663_v34  ;;  %1188 = vst [vmem:[#allocation3 + $0x20] sm:$0xff] %v4093_v40  ;;  %1189 = vst [vmem:[#allocation3 + $0x98] sm:$0xff] %v4093_v40  ;;  %v4699_v33 = vld [vmem:[%s5757_s8] ss:$0 sm:$0xff] }
 0x15e   : > { %v726_v38 = vmul.f32 %v4685_v19, %v4685_v19  ;;  %v727_v39 = vmul.f32 %v4688_v28, %v4688_v28 }
 0x160   : > { %786 = vadd.xlane.f32.xlu1 %v725_v29  ;;  %788 = vadd.xlane.f32.xlu0 %v726_v38 }
 0x164   : > { %790 = vadd.xlane.f32.xlu1 %v727_v39 }
 0x1ad   : > { %v729_v30 = vpop.xlane.xlu0 %728 }
 0x1ae   : > { %v792_v31 = vmul.f32 0.0078125, %v729_v30 }
 0x1b0   : > { %v824_v41 = vadd.f32 1e-05, %v792_v31 }
 0x1b1   : > { %v731_v42 = vpop.xlane.xlu1 %730  ;;  %v733_v21 = vpop.xlane.xlu0 %732 }
 0x1b2   : > { %3543 = vrsqrt.f32 %v824_v41  ;;  %v793_v46 = vmul.f32 0.0078125, %v731_v42  ;;  %v794_v47 = vmul.f32 0.0078125, %v733_v21 }
 0x1b4   : > { %v825_v48 = vadd.f32 1e-05, %v793_v46  ;;  %v826_v49 = vadd.f32 1e-05, %v794_v47  ;;  %v4703_v46 = vld [vmem:[#allocation7] ss:$0 sm:$0xff] }
 0x1b5   : > { %v735_v50 = vpop.xlane.xlu1 %734  ;;  %v737_v23 = vpop.xlane.xlu0 %736 }
 0x1b6   : > { %3545 = vrsqrt.f32 %v825_v48  ;;  %v795_v54 = vmul.f32 0.0078125, %v735_v50  ;;  %v796_v55 = vmul.f32 0.0078125, %v737_v23 }
 0x1b7   : > { %3547 = vrsqrt.f32 %v826_v49 }
 0x1b8   : > { %v827_v56 = vadd.f32 1e-05, %v795_v54  ;;  %v828_v57 = vadd.f32 1e-05, %v796_v55 }
 0x1b9   : > { %v739_v58 = vpop.xlane.xlu1 %738  ;;  %v741_v25 = vpop.xlane.xlu0 %740 }
 0x1ba   : > { %3549 = vrsqrt.f32 %v827_v56  ;;  %v797_v62 = vmul.f32 0.0078125, %v739_v58  ;;  %v798_v63 = vmul.f32 0.0078125, %v741_v25 }
 0x1bb   : > { %3551 = vrsqrt.f32 %v828_v57 }
 0x1bc   : > { %v829_v0 = vadd.f32 1e-05, %v797_v62  ;;  %v830_v1 = vadd.f32 1e-05, %v798_v63 }
 0x1bd   : > { %v743_v2 = vpop.xlane.xlu1 %742  ;;  %v745_v27 = vpop.xlane.xlu0 %744 }
 0x1be   : > { %3553 = vrsqrt.f32 %v829_v0  ;;  %v799_v6 = vmul.f32 0.0078125, %v743_v2  ;;  %v800_v7 = vmul.f32 0.0078125, %v745_v27 }
 0x1bf   : > { %v3544_v32 = vpop.eup %3543  ;;  %3555 = vrsqrt.f32 %v830_v1 }
 0x1c0   : > { %v888_v34 = vmul.f32 %v3544_v32, %v4537_v36  ;;  %v831_v29 = vadd.f32 1e-05, %v799_v6  ;;  %v832_v38 = vadd.f32 1e-05, %v800_v7 }
 0x1c1   : > { %v747_v39 = vpop.xlane.xlu1 %746  ;;  %v749_v40 = vpop.xlane.xlu0 %748 }
 0x1c2   : > { %3557 = vrsqrt.f32 %v831_v29  ;;  %v801_v30 = vmul.f32 0.0078125, %v747_v39  ;;  %v802_v31 = vmul.f32 0.0078125, %v749_v40  ;;  %v927_v42 = vmul.f32 %v4699_v33, %v888_v34 }
 0x1c3   : > { %v3546_v41 = vpop.eup %3545  ;;  %3559 = vrsqrt.f32 %v832_v38 }
 0x1c4   : > { %v3548_v21 = vpop.eup %3547  ;;  %v889_v47 = vmul.f32 %v3546_v41, %v4545_v43  ;;  %v833_v48 = vadd.f32 1e-05, %v801_v30  ;;  %v834_v49 = vadd.f32 1e-05, %v802_v31  ;;  %v966_v58 = vadd.f32 %v4703_v46, %v927_v42 }
 0x1c5   : > { %v890_v36 = vmul.f32 %v3548_v21, %v4540_v37  ;;  %v751_v50 = vpop.xlane.xlu1 %750  ;;  %v753_v23 = vpop.xlane.xlu0 %752 }
 0x1c6   : > { %v928_v54 = vmul.f32 %v4699_v33, %v889_v47  ;;  %3561 = vrsqrt.f32 %v833_v48  ;;  %v803_v55 = vmul.f32 0.0078125, %v751_v50  ;;  %v804_v56 = vmul.f32 0.0078125, %v753_v23 }
 0x1c7   : > { %v3550_v57 = vpop.eup %3549  ;;  %v929_v25 = vmul.f32 %v4699_v33, %v890_v36  ;;  %3563 = vrsqrt.f32 %v834_v49 }
 0x1c8   : > { %v3552_v62 = vpop.eup %3551  ;;  %v967_v43 = vadd.f32 %v4703_v46, %v928_v54  ;;  %v891_v63 = vmul.f32 %v3550_v57, %v4548_v44  ;;  %v835_v0 = vadd.f32 1e-05, %v803_v55  ;;  %v836_v37 = vadd.f32 1e-05, %v804_v56 }
 0x1c9   : > { %v892_v1 = vmul.f32 %v3552_v62, %v4555_v51  ;;  %v755_v2 = vpop.xlane.xlu1 %754  ;;  %v757_v27 = vpop.xlane.xlu0 %756  ;;  %v968_v44 = vadd.f32 %v4703_v46, %v929_v25 }
 0x1ca   : > { %v3186_v6 = vpack.c.bf16 %v967_v43, %v966_v58  ;;  %v930_v7 = vmul.f32 %v4699_v33, %v891_v63  ;;  %3565 = vrsqrt.f32 %v835_v0  ;;  %v805_v32 = vmul.f32 0.0078125, %v755_v2 }
 0x1cb   : > { %v3554_v34 = vpop.eup %3553  ;;  %v931_v29 = vmul.f32 %v4699_v33, %v892_v1  ;;  %3567 = vrsqrt.f32 %v836_v37  ;;  %v806_v38 = vmul.f32 0.0078125, %v757_v27 }
 0x1cc   : > { %v3556_v39 = vpop.eup %3555  ;;  %3187 = vst [vmem:[#allocation2] sm:$0xff] %v3186_v6   ;;  %v969_v40 = vadd.f32 %v4703_v46, %v930_v7  ;;  %v893_v51 = vmul.f32 %v3554_v34, %v4558_v52  ;;  %v837_v30 = vadd.f32 1e-05, %v805_v32 }
 0x1cd   : > { %v894_v31 = vmul.f32 %v3556_v39, %v4565_v59  ;;  %v838_v41 = vadd.f32 1e-05, %v806_v38  ;;  %v759_v42 = vpop.xlane.xlu1 %758  ;;  %v761_v21 = vpop.xlane.xlu0 %760  ;;  %v970_v50 = vadd.f32 %v4703_v46, %v931_v29 }
 0x1ce   : > { %v3191_v47 = vpack.c.bf16 %v969_v40, %v968_v44  ;;  %v932_v48 = vmul.f32 %v4699_v33, %v893_v51  ;;  %3569 = vrsqrt.f32 %v837_v30  ;;  %v807_v49 = vmul.f32 0.0078125, %v759_v42 }
 0x1cf   : > { %v3558_v36 = vpop.eup %3557  ;;  %3571 = vrsqrt.f32 %v838_v41  ;;  %v808_v23 = vmul.f32 0.0078125, %v761_v21  ;;  %v933_v55 = vmul.f32 %v4699_v33, %v894_v31 }
 0x1d0   : > { %v3560_v54 = vpop.eup %3559  ;;  %3263 = vst [vmem:[#allocation2 + $0x8] sm:$0xff] %v3191_v47   ;;  %v971_v52 = vadd.f32 %v4703_v46, %v932_v48  ;;  %v895_v59 = vmul.f32 %v3558_v36, %v4568_v60  ;;  %v839_v56 = vadd.f32 1e-05, %v807_v49 }
 0x1d1   : > { %v896_v57 = vmul.f32 %v3560_v54, %v4575_v3  ;;  %v840_v58 = vadd.f32 1e-05, %v808_v23  ;;  %v763_v25 = vpop.xlane.xlu1 %762  ;;  %v765_v62 = vpop.xlane.xlu0 %764  ;;  %v972_v60 = vadd.f32 %v4703_v46, %v933_v55 }
 0x1d2   : > { %v3196_v43 = vpack.c.bf16 %v971_v52, %v970_v50  ;;  %v934_v63 = vmul.f32 %v4699_v33, %v895_v59  ;;  %3573 = vrsqrt.f32 %v839_v56  ;;  %v809_v0 = vmul.f32 0.0078125, %v763_v25 }
 0x1d3   : > { %v3562_v37 = vpop.eup %3561  ;;  %v935_v1 = vmul.f32 %v4699_v33, %v896_v57  ;;  %3575 = vrsqrt.f32 %v840_v58  ;;  %v810_v2 = vmul.f32 0.0078125, %v765_v62 }
 0x1d4   : > { %v3564_v27 = vpop.eup %3563  ;;  %3264 = vst [vmem:[#allocation2 + $0x10] sm:$0xff] %v3196_v43   ;;  %v973_v6 = vadd.f32 %v4703_v46, %v934_v63  ;;  %v897_v3 = vmul.f32 %v3562_v37, %v4578_v4  ;;  %v841_v7 = vadd.f32 1e-05, %v809_v0 }
 0x1d5   : > { %v898_v32 = vmul.f32 %v3564_v27, %v4585_v35  ;;  %v842_v34 = vadd.f32 1e-05, %v810_v2  ;;  %v767_v29 = vpop.xlane.xlu1 %766  ;;  %v769_v38 = vpop.xlane.xlu0 %768  ;;  %v974_v30 = vadd.f32 %v4703_v46, %v935_v1 }
 0x1d6   : > { %v3201_v39 = vpack.c.bf16 %v973_v6, %v972_v60  ;;  %v936_v44 = vmul.f32 %v4699_v33, %v897_v3  ;;  %3577 = vrsqrt.f32 %v841_v7  ;;  %v811_v40 = vmul.f32 0.0078125, %v767_v29 }
 0x1d7   : > { %v3566_v51 = vpop.eup %3565  ;;  %3579 = vrsqrt.f32 %v842_v34  ;;  %v812_v31 = vmul.f32 0.0078125, %v769_v38  ;;  %v937_v42 = vmul.f32 %v4699_v33, %v898_v32 }
 0x1d8   : > { %v3568_v41 = vpop.eup %3567  ;;  %3265 = vst [vmem:[#allocation2 + $0x18] sm:$0xff] %v3201_v39   ;;  %v975_v4 = vadd.f32 %v4703_v46, %v936_v44  ;;  %v899_v35 = vmul.f32 %v3566_v51, %v4588_v8  ;;  %v843_v21 = vadd.f32 1e-05, %v811_v40 }
 0x1d9   : > { %v900_v47 = vmul.f32 %v3568_v41, %v4595_v45  ;;  %v844_v48 = vadd.f32 1e-05, %v812_v31  ;;  %v771_v49 = vpop.xlane.xlu1 %770  ;;  %v773_v36 = vpop.xlane.xlu0 %772  ;;  %v976_v8 = vadd.f32 %v4703_v46, %v937_v42 }
 0x1da   : > { %v3206_v50 = vpack.c.bf16 %v975_v4, %v974_v30  ;;  %v938_v23 = vmul.f32 %v4699_v33, %v899_v35  ;;  %3581 = vrsqrt.f32 %v843_v21  ;;  %v813_v54 = vmul.f32 0.0078125, %v771_v49 }
 0x1db   : > { %v3570_v52 = vpop.eup %3569  ;;  %v939_v55 = vmul.f32 %v4699_v33, %v900_v47  ;;  %3583 = vrsqrt.f32 %v844_v48  ;;  %v814_v59 = vmul.f32 0.0078125, %v773_v36 }
 0x1dc   : > { %v3572_v56 = vpop.eup %3571  ;;  %3266 = vst [vmem:[#allocation2 + $0x20] sm:$0xff] %v3206_v50   ;;  %v977_v57 = vadd.f32 %v4703_v46, %v938_v23  ;;  %v901_v45 = vmul.f32 %v3570_v52, %v4598_v10  ;;  %v845_v58 = vadd.f32 1e-05, %v813_v54 }
 0x1dd   : > { %v902_v25 = vmul.f32 %v3572_v56, %v4605_v53  ;;  %v846_v62 = vadd.f32 1e-05, %v814_v59  ;;  %v775_v43 = vpop.xlane.xlu1 %774  ;;  %v777_v63 = vpop.xlane.xlu0 %776  ;;  %v978_v27 = vadd.f32 %v4703_v46, %v939_v55 }
 0x1de   : > { %v3211_v0 = vpack.c.bf16 %v977_v57, %v976_v8  ;;  %v940_v37 = vmul.f32 %v4699_v33, %v901_v45  ;;  %3585 = vrsqrt.f32 %v845_v58  ;;  %v815_v1 = vmul.f32 0.0078125, %v775_v43 }
 0x1df   : > { %v3574_v2 = vpop.eup %3573  ;;  %3587 = vrsqrt.f32 %v846_v62  ;;  %v816_v60 = vmul.f32 0.0078125, %v777_v63  ;;  %v941_v3 = vmul.f32 %v4699_v33, %v902_v25 }
 0x1e0   : > { %v3576_v6 = vpop.eup %3575  ;;  %3267 = vst [vmem:[#allocation2 + $0x28] sm:$0xff] %v3211_v0   ;;  %v979_v10 = vadd.f32 %v4703_v46, %v940_v37  ;;  %v903_v53 = vmul.f32 %v3574_v2, %v4608_v12  ;;  %v847_v7 = vadd.f32 1e-05, %v815_v1 }
 0x1e1   : > { %v904_v32 = vmul.f32 %v3576_v6, %v4615_v61  ;;  %v848_v34 = vadd.f32 1e-05, %v816_v60  ;;  %v779_v29 = vpop.xlane.xlu1 %778  ;;  %v781_v38 = vpop.xlane.xlu0 %780  ;;  %v980_v12 = vadd.f32 %v4703_v46, %v941_v3 }
 0x1e2   : > { %v3216_v39 = vpack.c.bf16 %v979_v10, %v978_v27  ;;  %v942_v44 = vmul.f32 %v4699_v33, %v903_v53  ;;  %3589 = vrsqrt.f32 %v847_v7  ;;  %v817_v40 = vmul.f32 0.0078125, %v779_v29 }
 0x1e3   : > { %v3578_v51 = vpop.eup %3577  ;;  %v943_v30 = vmul.f32 %v4699_v33, %v904_v32  ;;  %3591 = vrsqrt.f32 %v848_v34  ;;  %v818_v31 = vmul.f32 0.0078125, %v781_v38 }
 0x1e4   : > { %v3580_v41 = vpop.eup %3579  ;;  %3268 = vst [vmem:[#allocation2 + $0x30] sm:$0xff] %v3216_v39   ;;  %v981_v4 = vadd.f32 %v4703_v46, %v942_v44  ;;  %v905_v61 = vmul.f32 %v3578_v51, %v4618_v14  ;;  %v849_v42 = vadd.f32 1e-05, %v817_v40 }
 0x1e5   : > { %v906_v35 = vmul.f32 %v3580_v41, %v4625_v5  ;;  %v850_v21 = vadd.f32 1e-05, %v818_v31  ;;  %v783_v47 = vpop.xlane.xlu1 %782  ;;  %v785_v48 = vpop.xlane.xlu0 %784  ;;  %v982_v54 = vadd.f32 %v4703_v46, %v943_v30 }
 0x1e6   : > { %v3221_v49 = vpack.c.bf16 %v981_v4, %v980_v12  ;;  %v944_v36 = vmul.f32 %v4699_v33, %v905_v61  ;;  %3593 = vrsqrt.f32 %v849_v42  ;;  %v819_v50 = vmul.f32 0.0078125, %v783_v47 }
 0x1e7   : > { %v3582_v23 = vpop.eup %3581  ;;  %3595 = vrsqrt.f32 %v850_v21  ;;  %v820_v52 = vmul.f32 0.0078125, %v785_v48  ;;  %v945_v59 = vmul.f32 %v4699_v33, %v906_v35 }
 0x1e8   : > { %v3584_v55 = vpop.eup %3583  ;;  %3269 = vst [vmem:[#allocation2 + $0x38] sm:$0xff] %v3221_v49   ;;  %v983_v14 = vadd.f32 %v4703_v46, %v944_v36  ;;  %v907_v5 = vmul.f32 %v3582_v23, %v4628_v16  ;;  %v851_v56 = vadd.f32 1e-05, %v819_v50 }
 0x1e9   : > { %v908_v8 = vmul.f32 %v3584_v55, %v4635_v9  ;;  %v852_v57 = vadd.f32 1e-05, %v820_v52  ;;  %v787_v45 = vpop.xlane.xlu1 %786  ;;  %v789_v58 = vpop.xlane.xlu0 %788  ;;  %v984_v16 = vadd.f32 %v4703_v46, %v945_v59 }
 0x1ea   : > { %v3226_v25 = vpack.c.bf16 %v983_v14, %v982_v54  ;;  %v946_v62 = vmul.f32 %v4699_v33, %v907_v5  ;;  %3597 = vrsqrt.f32 %v851_v56  ;;  %v821_v43 = vmul.f32 0.0078125, %v787_v45 }
 0x1eb   : > { %v3586_v63 = vpop.eup %3585  ;;  %v947_v0 = vmul.f32 %v4699_v33, %v908_v8  ;;  %3599 = vrsqrt.f32 %v852_v57  ;;  %v822_v37 = vmul.f32 0.0078125, %v789_v58 }
 0x1ec   : > { %v3588_v1 = vpop.eup %3587  ;;  %3270 = vst [vmem:[#allocation2 + $0x40] sm:$0xff] %v3226_v25   ;;  %v985_v2 = vadd.f32 %v4703_v46, %v946_v62  ;;  %v909_v9 = vmul.f32 %v3586_v63, %v4638_v18  ;;  %v853_v27 = vadd.f32 1e-05, %v821_v43 }
 0x1ed   : > { %v910_v60 = vmul.f32 %v3588_v1, %v4645_v11  ;;  %v854_v6 = vadd.f32 1e-05, %v822_v37  ;;  %v791_v10 = vpop.xlane.xlu1 %790  ;;  %v986_v34 = vadd.f32 %v4703_v46, %v947_v0 }
 0x1ee   : > { %v3231_v3 = vpack.c.bf16 %v985_v2, %v984_v16  ;;  %v948_v53 = vmul.f32 %v4699_v33, %v909_v9  ;;  %3601 = vrsqrt.f32 %v853_v27  ;;  %v823_v7 = vmul.f32 0.0078125, %v791_v10 }
 0x1ef   : > { %v3590_v32 = vpop.eup %3589  ;;  %3603 = vrsqrt.f32 %v854_v6  ;;  %v949_v18 = vmul.f32 %v4699_v33, %v910_v60 }
 0x1f0   : > { %v3592_v29 = vpop.eup %3591  ;;  %3271 = vst [vmem:[#allocation2 + $0x48] sm:$0xff] %v3231_v3   ;;  %v987_v38 = vadd.f32 %v4703_v46, %v948_v53  ;;  %v911_v39 = vmul.f32 %v3590_v32, %v4648_v20  ;;  %v855_v11 = vadd.f32 1e-05, %v823_v7 }
 0x1f1   : > { %v912_v44 = vmul.f32 %v3592_v29, %v4655_v13  ;;  %v988_v41 = vadd.f32 %v4703_v46, %v949_v18 }
 0x1f2   : > { %v3236_v40 = vpack.c.bf16 %v987_v38, %v986_v34  ;;  %v950_v51 = vmul.f32 %v4699_v33, %v911_v39  ;;  %3605 = vrsqrt.f32 %v855_v11 }
 0x1f3   : > { %v3594_v30 = vpop.eup %3593  ;;  %v951_v4 = vmul.f32 %v4699_v33, %v912_v44 }
 0x1f4   : > { %v3596_v31 = vpop.eup %3595  ;;  %3272 = vst [vmem:[#allocation2 + $0x50] sm:$0xff] %v3236_v40   ;;  %v989_v12 = vadd.f32 %v4703_v46, %v950_v51  ;;  %v913_v61 = vmul.f32 %v3594_v30, %v4658_v22 }
 0x1f5   : > { %v914_v20 = vmul.f32 %v3596_v31, %v4665_v15  ;;  %v990_v47 = vadd.f32 %v4703_v46, %v951_v4 }
 0x1f6   : > { %v3241_v42 = vpack.c.bf16 %v989_v12, %v988_v41  ;;  %v952_v13 = vmul.f32 %v4699_v33, %v913_v61 }
 0x1f7   : > { %v3598_v35 = vpop.eup %3597  ;;  %v953_v49 = vmul.f32 %v4699_v33, %v914_v20 }
 0x1f8   : > { %v3600_v21 = vpop.eup %3599  ;;  %3273 = vst [vmem:[#allocation2 + $0x58] sm:$0xff] %v3241_v42   ;;  %v991_v48 = vadd.f32 %v4703_v46, %v952_v13  ;;  %v915_v36 = vmul.f32 %v3598_v35, %v4668_v24 }
 0x1f9   : > { %v916_v50 = vmul.f32 %v3600_v21, %v4675_v17  ;;  %v992_v52 = vadd.f32 %v4703_v46, %v953_v49 }
 0x1fa   : > { %v3246_v23 = vpack.c.bf16 %v991_v48, %v990_v47  ;;  %v954_v22 = vmul.f32 %v4699_v33, %v915_v36 }
 0x1fb   : > { %v3602_v15 = vpop.eup %3601  ;;  %v955_v14 = vmul.f32 %v4699_v33, %v916_v50 }
 0x1fc   : > { %v3604_v54 = vpop.eup %3603  ;;  %3274 = vst [vmem:[#allocation2 + $0x60] sm:$0xff] %v3246_v23   ;;  %v993_v55 = vadd.f32 %v4703_v46, %v954_v22  ;;  %v917_v59 = vmul.f32 %v3602_v15, %v4678_v26 }
 0x1fd   : > { %v918_v5 = vmul.f32 %v3604_v54, %v4685_v19  ;;  %v994_v8 = vadd.f32 %v4703_v46, %v955_v14 }
 0x1fe   : > { %v3251_v56 = vpack.c.bf16 %v993_v55, %v992_v52  ;;  %v956_v24 = vmul.f32 %v4699_v33, %v917_v59 }
 0x1ff   : > { %v3606_v17 = vpop.eup %3605  ;;  %v957_v45 = vmul.f32 %v4699_v33, %v918_v5 }
 0x200   : > { %3275 = vst [vmem:[#allocation2 + $0x68] sm:$0xff] %v3251_v56   ;;  %v995_v57 = vadd.f32 %v4703_v46, %v956_v24  ;;  %v919_v58 = vmul.f32 %v3606_v17, %v4688_v28 }
 0x201   : > { %v996_v26 = vadd.f32 %v4703_v46, %v957_v45 }
 0x202   : > { %v3256_v25 = vpack.c.bf16 %v995_v57, %v994_v8  ;;  %v958_v62 = vmul.f32 %v4699_v33, %v919_v58 }
 0x204   : > { %3276 = vst [vmem:[#allocation2 + $0x70] sm:$0xff] %v3256_v25   ;;  %v997_v19 = vadd.f32 %v4703_v46, %v958_v62 }
 0x206   : > { %v3261_v43 = vpack.c.bf16 %v997_v19, %v996_v26 }
 0x208   : > { %3277 = vst [vmem:[#allocation2 + $0x78] sm:$0xff] %v3261_v43  }
 0x209 PF: > { %v3607_v63 = vld [vmem:[%s4384_s16 + $0x74] ss:$8 sps:$4 sm:$0xff]   ;;  %v3609_v0 = vld [vmem:[%s4384_s16 + $0x70] ss:$8 sps:$4 sm:$0xff]   ;;  %v4094_v28 = vmov 0   ;;  %v4828_v11 = vld [vmem:[#allocation2 + $0x48] sm:$0xff]  }
 0x20a   : > { %1538 = vmatprep.mubr.bf16.mxu1 %v4094_v28  ;;  %1458 = vmatprep.mubr.bf16.mxu0 %v4094_v28  ;;  %v3610_v33 = vld [vmem:[%s4384_s16 + $0x64] ss:$8 sps:$4 sm:$0xff]   ;;  %v3612_v46 = vld [vmem:[%s4384_s16 + $0x60] ss:$8 sps:$4 sm:$0xff]   ;;  %v3613_v37 = vld [vmem:[%s4384_s16 + $0x54] ss:$8 sps:$4 sm:$0xff]  }
 0x20b   : > { %3390 = vmatprep.subr.bf16.mxu1 %v3607_v63  ;;  %1426 = vmatprep.subr.bf16.mxu0 %v3607_v63  ;;  %v3615_v1 = vld [vmem:[%s4384_s16 + $0x50] ss:$8 sps:$4 sm:$0xff]   ;;  %v3616_v16 = vld [vmem:[%s4384_s16 + $0x44] ss:$8 sps:$4 sm:$0xff]   ;;  %v3618_v2 = vld [vmem:[%s4384_s16 + $0x40] ss:$8 sps:$4 sm:$0xff]  }
 0x20c   : > { %3398 = vmatpush1.bf16.msra.mxu1 %v3609_v0  ;;  %1427 = vmatpush1.bf16.msra.mxu0 %v3609_v0  ;;  %v3619_v9 = vld [vmem:[%s4384_s16 + $0x34] ss:$8 sps:$4 sm:$0xff]   ;;  %v3621_v27 = vld [vmem:[%s4384_s16 + $0x30] ss:$8 sps:$4 sm:$0xff]   ;;  %v3622_v60 = vld [vmem:[%s4384_s16 + $0x24] ss:$8 sps:$4 sm:$0xff]   ;;  %v1240_v0 = vlaneseq }
 0x20d   : > { %3391 = vmatprep.subr.bf16.mxu1 %v3610_v33  ;;  %1428 = vmatprep.subr.bf16.mxu0 %v3610_v33  ;;  %v3624_v6 = vld [vmem:[%s4384_s16 + $0x20] ss:$8 sps:$4 sm:$0xff]   ;;  %v3625_v10 = vld [vmem:[%s4384_s16 + $0x14] ss:$8 sps:$4 sm:$0xff]   ;;  %v3627_v3 = vld [vmem:[%s4384_s16 + $0x10] ss:$8 sps:$4 sm:$0xff]  }
 0x20e   : > { %v3628_v53 = vld [vmem:[%s4384_s16 + $0x4] ss:$8 sps:$4 sm:$0xff]   ;;  %v3630_v7 = vld [vmem:[%s4384_s16] ss:$8 sps:$4 sm:$0xff]   ;;  %v3634_v32 = vld [vmem:[%s4401_s27 + $0x74] ss:$8 sps:$4 sm:$0xff]  }
 0x20f   : > { %v4818_v34 = vld [vmem:[#allocation2 + $0x40] sm:$0xff]   ;;  %v3632_v29 = vld [vmem:[%s4401_s27 + $0x70] ss:$8 sps:$4 sm:$0xff]   ;;  %v4834_v30 = vld [vmem:[#allocation2 + $0x8] sm:$0xff]   ;;  %v4918_v33 = vshrl.u32 %v1240_v0, 7  ;;  %p3139_p9 = scmp.ne.s32.totalorder %s4065_s15, 1 }
 0x210   : > { %3399 = vmatpush1.bf16.msra.mxu1 %v3612_v46  ;;  %1429 = vmatpush1.bf16.msra.mxu0 %v3612_v46  ;;  %v3638_v38 = vld [vmem:[%s4401_s27 + $0x64] ss:$8 sps:$4 sm:$0xff]   ;;  %v3636_v39 = vld [vmem:[%s4401_s27 + $0x60] ss:$8 sps:$4 sm:$0xff]   ;;  %v3642_v44 = vld [vmem:[%s4401_s27 + $0x54] ss:$8 sps:$4 sm:$0xff]  }
 0x211   : > { %3392 = vmatprep.subr.bf16.mxu1 %v3613_v37  ;;  %1430 = vmatprep.subr.bf16.mxu0 %v3613_v37  ;;  %v4822_v18 = vld [vmem:[#allocation2] sm:$0xff]   ;;  %v3640_v40 = vld [vmem:[%s4401_s27 + $0x50] ss:$8 sps:$4 sm:$0xff]   ;;  %v4864_v23 = vld [vmem:[#allocation2 + $0x68] sm:$0xff]   ;;  %v1242_v46 = vsub.s32 0, %v4918_v33  ;;  %s5808_s6 = sld [smem:[#allocation51_spill]] (!%p3139_p9) }
 0x212   : > { %v3646_v51 = vld [vmem:[%s4401_s27 + $0x44] ss:$8 sps:$4 sm:$0xff]   ;;  %v3644_v31 = vld [vmem:[%s4401_s27 + $0x40] ss:$8 sps:$4 sm:$0xff]   ;;  %v3650_v41 = vld [vmem:[%s4401_s27 + $0x34] ss:$8 sps:$4 sm:$0xff]  }
 0x213   : > { %v4841_v12 = vld [vmem:[#allocation2 + $0x50] sm:$0xff]   ;;  %v3652_v42 = vld [vmem:[%s4401_s27 + $0x20] ss:$8 sps:$4 sm:$0xff]   ;;  %v4851_v35 = vld [vmem:[#allocation2 + $0x58] sm:$0xff]  }
 0x214   : > { %3400 = vmatpush1.bf16.msra.mxu1 %v3615_v1  ;;  %1431 = vmatpush1.bf16.msra.mxu0 %v3615_v1  ;;  %v3648_v4 = vld [vmem:[%s4401_s27 + $0x30] ss:$8 sps:$4 sm:$0xff]   ;;  %v3654_v61 = vld [vmem:[%s4401_s27 + $0x24] ss:$8 sps:$4 sm:$0xff]   ;;  %v3658_v13 = vld [vmem:[%s4401_s27 + $0x14] ss:$8 sps:$4 sm:$0xff]  }
 0x215   : > { %3393 = vmatprep.subr.bf16.mxu1 %v3616_v16  ;;  %1432 = vmatprep.subr.bf16.mxu0 %v3616_v16  ;;  %v3665_v20 = vld [vmem:[#allocation2 + $0x10] sm:$0xff]   ;;  %v3666_v48 = vld [vmem:[#allocation2 + $0x18] sm:$0xff]   ;;  %v3660_v49 = vld [vmem:[%s4401_s27] ss:$8 sps:$4 sm:$0xff]   ;;  %v1246_v1 = vsub.s32 1, %v4918_v33 }
 0x216   : > { %v3656_v21 = vld [vmem:[%s4401_s27 + $0x10] ss:$8 sps:$4 sm:$0xff]   ;;  %v3662_v47 = vld [vmem:[%s4401_s27 + $0x4] ss:$8 sps:$4 sm:$0xff]   ;;  %v1238_v37 = vld [vmem:[%s521_s5] sm:$0x3] }
 0x217   : > { %v4859_v36 = vld [vmem:[#allocation2 + $0x60] sm:$0xff]   ;;  %v3668_v22 = vld [vmem:[#allocation2 + $0x28] sm:$0xff]   ;;  %v4869_v15 = vld [vmem:[#allocation2 + $0x70] sm:$0xff]   ;;  %v4930_v16 = vrot.slane %v1238_v37, %v1242_v46 }
 0x218   : > { %3401 = vmatpush1.bf16.msra.mxu1 %v3618_v2  ;;  %1433 = vmatpush1.bf16.msra.mxu0 %v3618_v2  ;;  %v3667_v50 = vld [vmem:[#allocation2 + $0x20] sm:$0xff]   ;;  %v3669_v54 = vld [vmem:[#allocation2 + $0x30] sm:$0xff]   ;;  %v4874_v52 = vld [vmem:[#allocation2 + $0x78] sm:$0xff]  }
 0x219   : > { %3394 = vmatprep.subr.bf16.mxu1 %v3619_v9  ;;  %1434 = vmatprep.subr.bf16.mxu0 %v3619_v9  ;;  %v3670_v55 = vld [vmem:[#allocation2 + $0x38] sm:$0xff]   ;;  %v3675_v24 = vld [vmem:[%s4403_s22 + $0x68] sm:$0xff]   ;;  %v3677_v8 = vld [vmem:[%s4403_s22 + $0x60] sm:$0xff]  }
 0x21a   : > { %v3671_v14 = vld [vmem:[%s4403_s22 + $0x78] sm:$0xff]   ;;  %v3673_v5 = vld [vmem:[%s4403_s22 + $0x70] sm:$0xff]   ;;  %v3676_v17 = vld [vmem:[%s4403_s22 + $0x28] sm:$0xff]  }
 0x21b   : > { %v3672_v59 = vld [vmem:[%s4403_s22 + $0x38] sm:$0xff]   ;;  %v3674_v56 = vld [vmem:[%s4403_s22 + $0x30] sm:$0xff]   ;;  %v3678_v57 = vld [vmem:[%s4403_s22 + $0x20] sm:$0xff]  }
 0x21c   : > { %3402 = vmatpush1.bf16.msra.mxu1 %v3621_v27  ;;  %1435 = vmatpush1.bf16.msra.mxu0 %v3621_v27  ;;  %v3679_v45 = vld [vmem:[%s4403_s22 + $0x58] sm:$0xff]   ;;  %v3681_v25 = vld [vmem:[%s4403_s22 + $0x50] sm:$0xff]   ;;  %v3683_v26 = vld [vmem:[%s4403_s22 + $0x48] sm:$0xff]  }
 0x21d   : > { %3395 = vmatprep.subr.bf16.mxu1 %v3622_v60  ;;  %1436 = vmatprep.subr.bf16.mxu0 %v3622_v60  ;;  %v3680_v58 = vld [vmem:[%s4403_s22 + $0x18] sm:$0xff]   ;;  %v3682_v62 = vld [vmem:[%s4403_s22 + $0x10] sm:$0xff]   ;;  %v3684_v19 = vld [vmem:[%s4403_s22 + $0x8] sm:$0xff]  }
 0x21e   : > { %v3685_v43 = vld [vmem:[%s4403_s22 + $0x40] sm:$0xff]  }
 0x21f   : > { %v3686_v63 = vld [vmem:[%s4403_s22] sm:$0xff]  }
 0x220   : > { %3403 = vmatpush1.bf16.msra.mxu1 %v3624_v6  ;;  %1437 = vmatpush1.bf16.msra.mxu0 %v3624_v6 }
 0x221   : > { %3396 = vmatprep.subr.bf16.mxu1 %v3625_v10  ;;  %1438 = vmatprep.subr.bf16.mxu0 %v3625_v10 }
 0x224   : > { %3404 = vmatpush1.bf16.msra.mxu1 %v3627_v3  ;;  %1439 = vmatpush1.bf16.msra.mxu0 %v3627_v3 }
 0x225   : > { %3397 = vmatprep.subr.bf16.mxu1 %v3628_v53  ;;  %1440 = vmatprep.subr.bf16.mxu0 %v3628_v53 }
 0x228   : > { %3405 = vmatpush1.bf16.msra.mxu1 %v3630_v7  ;;  %1441 = vmatpush1.bf16.msra.mxu0 %v3630_v7 }
 0x229   : > { %1727 = vmatprep.subr.bf16.mxu1 %v3634_v32  ;;  %3278 = vmatprep.subr.bf16.mxu0 %v3671_v14 }
 0x22b   : > { %1539 = vmatmul.mubr.bf16.vlgmr.msra.gmra.mxu1 %v4818_v34  ;;  %1459 = vmatmul.mubr.bf16.vlgmr.msra.gmra.mxu0 %v4822_v18 }
 0x22c   : > { %1728 = vmatpush1.bf16.msra.mxu1 %v3632_v29  ;;  %1548 = vmatprep.mubr.bf16.mxu1 %v4094_v28 }
 0x22d   : > { %1729 = vmatprep.subr.bf16.mxu1 %v3638_v38  ;;  %1468 = vmatprep.mubr.bf16.mxu0 %v4094_v28 }
 0x22e   : > { %3279 = vmatpush3.bf16.msra.mxu0 %v3672_v59 }
 0x22f   : > { %3280 = vmatprep.subr.bf16.mxu0 %v3673_v5 }
 0x230   : > { %1730 = vmatpush1.bf16.msra.mxu1 %v3636_v39 }
 0x231   : > { %1731 = vmatprep.subr.bf16.mxu1 %v3642_v44 }
 0x232   : > { %3281 = vmatpush3.bf16.msra.mxu0 %v3674_v56 }
 0x233   : > { %1549 = vmatmul.mubr.bf16.gmra.mxu1 %v4828_v11  ;;  %1469 = vmatmul.mubr.bf16.gmra.mxu0 %v4834_v30 }
 0x234   : > { %1558 = vmatprep.mubr.bf16.mxu1 %v4094_v28  ;;  %1732 = vmatpush1.bf16.msra.mxu1 %v3640_v40 }
 0x235   : > { %1733 = vmatprep.subr.bf16.mxu1 %v3646_v51  ;;  %1478 = vmatprep.mubr.bf16.mxu0 %v4094_v28 }
 0x236   : > { %3282 = vmatprep.subr.bf16.mxu0 %v3675_v24 }
 0x237   : > { %3283 = vmatpush3.bf16.msra.mxu0 %v3676_v17 }
 0x238   : > { %1734 = vmatpush1.bf16.msra.mxu1 %v3644_v31  ;;  %3284 = vmatprep.subr.bf16.mxu0 %v3677_v8 }
 0x239   : > { %1735 = vmatprep.subr.bf16.mxu1 %v3650_v41 }
 0x23b   : > { %1559 = vmatmul.mubr.bf16.gmra.mxu1 %v4841_v12  ;;  %1479 = vmatmul.mubr.bf16.gmra.mxu0 %v3665_v20 }
 0x23c   : > { %1568 = vmatprep.mubr.bf16.mxu1 %v4094_v28  ;;  %1736 = vmatpush1.bf16.msra.mxu1 %v3648_v4 }
 0x23d   : > { %1737 = vmatprep.subr.bf16.mxu1 %v3654_v61  ;;  %1488 = vmatprep.mubr.bf16.mxu0 %v4094_v28 }
 0x23e   : > { %3285 = vmatpush3.bf16.msra.mxu0 %v3678_v57 }
 0x23f   : > { %3286 = vmatprep.subr.bf16.mxu0 %v3679_v45 }
 0x240   : > { %1738 = vmatpush1.bf16.msra.mxu1 %v3652_v42 }
 0x241   : > { %1739 = vmatprep.subr.bf16.mxu1 %v3658_v13 }
 0x242   : > { %3287 = vmatpush3.bf16.msra.mxu0 %v3680_v58 }
 0x243   : > { %1569 = vmatmul.mubr.bf16.gmra.mxu1 %v4851_v35  ;;  %1489 = vmatmul.mubr.bf16.gmra.mxu0 %v3666_v48 }
 0x244   : > { %1578 = vmatprep.mubr.bf16.mxu1 %v4094_v28  ;;  %1740 = vmatpush1.bf16.msra.mxu1 %v3656_v21 }
 0x245   : > { %1741 = vmatprep.subr.bf16.mxu1 %v3662_v47  ;;  %1498 = vmatprep.mubr.bf16.mxu0 %v4094_v28 }
 0x246   : > { %3288 = vmatprep.subr.bf16.mxu0 %v3681_v25 }
 0x247   : > { %3289 = vmatpush3.bf16.msra.mxu0 %v3682_v62 }
 0x248   : > { %1742 = vmatpush1.bf16.msra.mxu1 %v3660_v49  ;;  %3290 = vmatprep.subr.bf16.mxu0 %v3683_v26 }
 0x24b   : > { %1579 = vmatmul.mubr.bf16.gmra.mxu1 %v4859_v36  ;;  %1499 = vmatmul.mubr.bf16.gmra.mxu0 %v3667_v50 }
 0x24c   : > { %1588 = vmatprep.mubr.bf16.mxu1 %v4094_v28  ;;  %1508 = vmatprep.mubr.bf16.mxu0 %v4094_v28 }
 0x24d   : > { %3291 = vmatpush3.bf16.msra.mxu0 %v3684_v19 }
 0x24e   : > { %3292 = vmatprep.subr.bf16.mxu0 %v3685_v43 }
 0x251   : > { %3293 = vmatpush3.bf16.msra.mxu0 %v3686_v63 }
 0x253   : > { %1589 = vmatmul.mubr.bf16.gmra.mxu1 %v4864_v23  ;;  %1509 = vmatmul.mubr.bf16.gmra.mxu0 %v3668_v22 }
 0x254   : > { %1598 = vmatprep.mubr.bf16.mxu1 %v4094_v28  ;;  %1518 = vmatprep.mubr.bf16.mxu0 %v4094_v28 }
 0x25b   : > { %1599 = vmatmul.mubr.bf16.gmra.mxu1 %v4869_v15  ;;  %1519 = vmatmul.mubr.bf16.gmra.mxu0 %v3669_v54 }
 0x25c   : > { %1608 = vmatprep.mubr.bf16.mxu1 %v4094_v28  ;;  %1528 = vmatprep.mubr.bf16.mxu0 %v4094_v28 }
 0x263   : > { %1609 = vmatmul.mubr.bf16.gmra.mxu1 %v4874_v52  ;;  %1529 = vmatmul.mubr.bf16.gmra.mxu0 %v3670_v55 }
 0x264   : > { %1759 = vmatprep.mubr.bf16.mxu1 %v4094_v28 }
 0x26b   : > { %1760 = vmatmul.mubr.bf16.vlgmr.msra.gmra.mxu1 %v4822_v18 }
 0x26c   : > { %1769 = vmatprep.mubr.bf16.mxu1 %v4094_v28 }
 0x273   : > { %1770 = vmatmul.mubr.bf16.gmra.mxu1 %v4834_v30 }
 0x274   : > { %1779 = vmatprep.mubr.bf16.mxu1 %v4094_v28 }
 0x27b   : > { %1780 = vmatmul.mubr.bf16.gmra.mxu1 %v3665_v20 }
 0x27c   : > { %1789 = vmatprep.mubr.bf16.mxu1 %v4094_v28 }
 0x283   : > { %1790 = vmatmul.mubr.bf16.gmra.mxu1 %v3666_v48 }
 0x284   : > { %1799 = vmatprep.mubr.bf16.mxu1 %v4094_v28 }
 0x28b   : > { %1800 = vmatmul.mubr.bf16.gmra.mxu1 %v3667_v50 }
 0x28c   : > { %1809 = vmatprep.mubr.bf16.mxu1 %v4094_v28 }
 0x293   : > { %1810 = vmatmul.mubr.bf16.gmra.mxu1 %v3668_v22 }
 0x294   : > { %1819 = vmatprep.mubr.bf16.mxu1 %v4094_v28 }
 0x29b   : > { %1820 = vmatmul.mubr.bf16.gmra.mxu1 %v3669_v54 }
 0x29c   : > { %1829 = vmatprep.mubr.bf16.mxu1 %v4094_v28 }
 0x2a3   : > { %1830 = vmatmul.mubr.bf16.gmra.mxu1 %v3670_v55 }
 0x2a4   : > { %1839 = vmatprep.mubr.bf16.mxu1 %v4094_v28 }
 0x2ab   : > { %1840 = vmatmul.mubr.bf16.gmra.mxu1 %v4818_v34 }
 0x2ac   : > { %1849 = vmatprep.mubr.bf16.mxu1 %v4094_v28 }
 0x2b3   : > { %1850 = vmatmul.mubr.bf16.gmra.mxu1 %v4828_v11 }
 0x2b4   : > { %1859 = vmatprep.mubr.bf16.mxu1 %v4094_v28 }
 0x2bb   : > { %1860 = vmatmul.mubr.bf16.gmra.mxu1 %v4841_v12 }
 0x2bc   : > { %1869 = vmatprep.mubr.bf16.mxu1 %v4094_v28 }
 0x2c3   : > { %1870 = vmatmul.mubr.bf16.gmra.mxu1 %v4851_v35 }
 0x2c4   : > { %1879 = vmatprep.mubr.bf16.mxu1 %v4094_v28 }
 0x2cb   : > { %1880 = vmatmul.mubr.bf16.gmra.mxu1 %v4859_v36 }
 0x2cc   : > { %1889 = vmatprep.mubr.bf16.mxu1 %v4094_v28 }
 0x2d3   : > { %1890 = vmatmul.mubr.bf16.gmra.mxu1 %v4864_v23 }
 0x2d4   : > { %1899 = vmatprep.mubr.bf16.mxu1 %v4094_v28 }
 0x2db   : > { %1900 = vmatmul.mubr.bf16.gmra.mxu1 %v4869_v15 }
 0x2dc   : > { %1909 = vmatprep.mubr.bf16.mxu1 %v4094_v28  ;;  %v4934_v28 = vrot.slane %v1238_v37, %v1246_v1 }
 0x2e3   : > { %1910 = vmatmul.mubr.bf16.gmra.mxu1 %v4874_v52 }
 0x2eb   : > { %v1540_v2 = vpop.f32.mrf.mxu1  ;;  %v4948_v7 = vpop.f32.mrf.mxu0 }
 0x2ec   : > { %v4937_v9 = vadd.f32 %v1540_v2, %v4930_v16 }
 0x2ed   : > { %v1542_v27 = vpop.f32.mrf.mxu1  ;;  %v4956_v18 = vpop.f32.mrf.mxu0 }
 0x2ee   : > { %v4940_v60 = vadd.f32 %v1542_v27, %v4934_v28 }
 0x2ef   : > { %v1544_v6 = vpop.f32.mrf.mxu1  ;;  %v4964_v51 = vpop.f32.mrf.mxu0 }
 0x2f0   : > { %v4943_v10 = vadd.f32 %v1544_v6, %v4930_v16 }
 0x2f1   : > { %v1546_v3 = vpop.f32.mrf.mxu1  ;;  %v4972_v4 = vpop.f32.mrf.mxu0 }
 0x2f2   : > { %v4946_v53 = vadd.f32 %v1546_v3, %v4934_v28 }
 0x2f3   : > { %v1550_v32 = vpop.f32.mrf.mxu1  ;;  %v4980_v35 = vpop.f32.mrf.mxu0 }
 0x2f4   : > { %v4951_v34 = vadd.f32 %v1550_v32, %v4930_v16 }
 0x2f5   : > { %v1552_v29 = vpop.f32.mrf.mxu1  ;;  %v4988_v36 = vpop.f32.mrf.mxu0 }
 0x2f6   : > { %v4954_v38 = vadd.f32 %v1552_v29, %v4934_v28 }
 0x2f7   : > { %v1554_v39 = vpop.f32.mrf.mxu1  ;;  %v4996_v54 = vpop.f32.mrf.mxu0 }
 0x2f8   : > { %v4959_v11 = vadd.f32 %v1554_v39, %v4930_v16 }
 0x2f9   : > { %v1556_v44 = vpop.f32.mrf.mxu1  ;;  %v5004_v5 = vpop.f32.mrf.mxu0 }
 0x2fa   : > { %v4962_v40 = vadd.f32 %v1556_v44, %v4934_v28 }
 0x2fb   : > { %v1560_v30 = vpop.f32.mrf.mxu1  ;;  %v5012_v57 = vpop.f32.mrf.mxu0 }
 0x2fc   : > { %v4967_v31 = vadd.f32 %v1560_v30, %v4930_v16 }
 0x2fd   : > { %v1562_v41 = vpop.f32.mrf.mxu1  ;;  %v5020_v26 = vpop.f32.mrf.mxu0 }
 0x2fe   : > { %5759 = vst [vmem:[#allocation22_spill] sm:$0xff] %v4967_v31  ;;  %v4970_v12 = vadd.f32 %v1562_v41, %v4934_v28 }
 0x2ff   : > { %v1564_v61 = vpop.f32.mrf.mxu1  ;;  %v5028_v37 = vpop.f32.mrf.mxu0 }
 0x300   : > { %5760 = vst [vmem:[#allocation23_spill] sm:$0xff] %v4970_v12  ;;  %v4975_v20 = vadd.f32 %v1564_v61, %v4930_v16 }
 0x301   : > { %v1566_v42 = vpop.f32.mrf.mxu1  ;;  %v5036_v32 = vpop.f32.mrf.mxu0 }
 0x302   : > { %5761 = vst [vmem:[#allocation24_spill] sm:$0xff] %v4975_v20  ;;  %v4978_v13 = vadd.f32 %v1566_v42, %v4934_v28 }
 0x303   : > { %v1570_v21 = vpop.f32.mrf.mxu1  ;;  %v5044_v41 = vpop.f32.mrf.mxu0 }
 0x304   : > { %5762 = vst [vmem:[#allocation25_spill] sm:$0xff] %v4978_v13  ;;  %v4983_v47 = vadd.f32 %v1570_v21, %v4930_v16 }
 0x305   : > { %v1572_v48 = vpop.f32.mrf.mxu1 }
 0x306   : > { %5763 = vst [vmem:[#allocation26_spill] sm:$0xff] %v4983_v47  ;;  %v4986_v49 = vadd.f32 %v1572_v48, %v4934_v28  ;;  %v1635_v48 = vld [vmem:[%s526_s3] sm:$0x3] }
 0x307   : > { %v1574_v50 = vpop.f32.mrf.mxu1 }
 0x308   : > { %5764 = vst [vmem:[#allocation27_spill] sm:$0xff] %v4986_v49  ;;  %v4991_v23 = vadd.f32 %v1574_v50, %v4930_v16 }
 0x309   : > { %v1576_v22 = vpop.f32.mrf.mxu1 }
 0x30a   : > { %5765 = vst [vmem:[#allocation28_spill] sm:$0xff] %v4991_v23  ;;  %v4994_v15 = vadd.f32 %v1576_v22, %v4934_v28  ;;  %v5057_v22 = vpop.f32.mrf.mxu0 }
 0x30b   : > { %v1580_v52 = vpop.f32.mrf.mxu1 }
 0x30c   : > { %5766 = vst [vmem:[#allocation29_spill] sm:$0xff] %v4994_v15  ;;  %v4999_v55 = vadd.f32 %v1580_v52, %v4930_v16 }
 0x30d   : > { %v1582_v14 = vpop.f32.mrf.mxu1 }
 0x30e   : > { %5767 = vst [vmem:[#allocation30_spill] sm:$0xff] %v4999_v55  ;;  %v5002_v59 = vadd.f32 %v1582_v14, %v4934_v28 }
 0x30f   : > { %v1584_v56 = vpop.f32.mrf.mxu1 }
 0x310   : > { %5768 = vst [vmem:[#allocation31_spill] sm:$0xff] %v5002_v59  ;;  %v5007_v24 = vadd.f32 %v1584_v56, %v4930_v16  ;;  %v5064_v56 = vrot.slane %v1635_v48, %v1242_v46 }
 0x311   : > { %v1586_v17 = vpop.f32.mrf.mxu1 }
 0x312   : > { %5769 = vst [vmem:[#allocation32_spill] sm:$0xff] %v5007_v24  ;;  %v5010_v8 = vadd.f32 %v1586_v17, %v4934_v28 }
 0x313   : > { %v1590_v45 = vpop.f32.mrf.mxu1 }
 0x314   : > { %5770 = vst [vmem:[#allocation33_spill] sm:$0xff] %v5010_v8  ;;  %v5015_v58 = vadd.f32 %v1590_v45, %v4930_v16 }
 0x315   : > { %v1592_v25 = vpop.f32.mrf.mxu1 }
 0x316   : > { %5771 = vst [vmem:[#allocation34_spill] sm:$0xff] %v5015_v58  ;;  %v5018_v62 = vadd.f32 %v1592_v25, %v4934_v28  ;;  %v5071_v25 = vrot.slane %v1635_v48, %v1246_v1 }
 0x317   : > { %v1594_v19 = vpop.f32.mrf.mxu1 }
 0x318   : > { %5772 = vst [vmem:[#allocation35_spill] sm:$0xff] %v5018_v62  ;;  %v5023_v43 = vadd.f32 %v1594_v19, %v4930_v16  ;;  %v1494_v19 = vpop.f32.mrf.mxu0 }
 0x319   : > { %v1596_v63 = vpop.f32.mrf.mxu1  ;;  %v5171_v58 = vadd.f32 %v1494_v19, %v4930_v16 }
 0x31a   : > { %5773 = vst [vmem:[#allocation36_spill] sm:$0xff] %v5023_v43  ;;  %v5026_v0 = vadd.f32 %v1596_v63, %v4934_v28  ;;  %v1496_v46 = vpop.f32.mrf.mxu0  ;;  %v5157_v43 = vadd.f32 %v5036_v32, %v4934_v28 }
 0x31b   : > { %v1600_v2 = vpop.f32.mrf.mxu1 }
 0x31c   : > { %5774 = vst [vmem:[#allocation37_spill] sm:$0xff] %v5026_v0  ;;  %v5031_v27 = vadd.f32 %v1600_v2, %v4930_v16 }
 0x31d   : > { %v1602_v6 = vpop.f32.mrf.mxu1 }
 0x31e   : > { %5775 = vst [vmem:[#allocation38_spill] sm:$0xff] %v5031_v27  ;;  %v5034_v3 = vadd.f32 %v1602_v6, %v4934_v28  ;;  %v5123_v27 = vadd.f32 %v4980_v35, %v4930_v16  ;;  %v5140_v35 = vadd.f32 %v5012_v57, %v4930_v16  ;;  %v5161_v57 = vadd.f32 %v5044_v41, %v4930_v16 }
 0x31f   : > { %v1604_v29 = vpop.f32.mrf.mxu1  ;;  %v5175_v41 = vadd.f32 %v1496_v46, %v4934_v28 }
 0x320   : > { %5776 = vst [vmem:[#allocation39_spill] sm:$0xff] %v5034_v3  ;;  %v5039_v39 = vadd.f32 %v1604_v29, %v4930_v16 }
 0x321   : > { %v1606_v44 = vpop.f32.mrf.mxu1 }
 0x322   : > { %5777 = vst [vmem:[#allocation40_spill] sm:$0xff] %v5039_v39  ;;  %v5042_v30 = vadd.f32 %v1606_v44, %v4934_v28  ;;  %v5109_v39 = vadd.f32 %v4956_v18, %v4934_v28  ;;  %v5127_v18 = vadd.f32 %v4988_v36, %v4934_v28  ;;  %v5144_v36 = vadd.f32 %v5020_v26, %v4934_v28 }
 0x323   : > { %v1610_v61 = vpop.f32.mrf.mxu1 }
 0x324   : > { %5778 = vst [vmem:[#allocation41_spill] sm:$0xff] %v5042_v30  ;;  %v5047_v42 = vadd.f32 %v1610_v61, %v4930_v16 }
 0x325   : > { %v1612_v21 = vpop.f32.mrf.mxu1 }
 0x326   : > { %5779 = vst [vmem:[#allocation42_spill] sm:$0xff] %v5047_v42  ;;  %v5055_v50 = vadd.f32 %v1612_v21, %v4934_v28 }
 0x327   : > { %v1614_v52 = vpop.f32.mrf.mxu1 }
 0x328   : > { %5781 = vst [vmem:[#allocation43_spill] sm:$0xff] %v5055_v50  ;;  %v5060_v14 = vadd.f32 %v1614_v52, %v4930_v16 }
 0x329   : > { %v1616_v17 = vpop.f32.mrf.mxu1 }
 0x32a   : > { %5782 = vst [vmem:[#allocation44_spill] sm:$0xff] %v5060_v14  ;;  %v5067_v45 = vadd.f32 %v1616_v17, %v4934_v28  ;;  %v1500_v17 = vpop.f32.mrf.mxu0 }
 0x32b   : > { %v1761_v63 = vpop.f32.mrf.mxu1  ;;  %v5179_v47 = vadd.f32 %v1500_v17, %v4930_v16 }
 0x32c   : > { %5783 = vst [vmem:[#allocation45_spill] sm:$0xff] %v5067_v45  ;;  %v5074_v2 = vadd.f32 %v1761_v63, %v5064_v56 }
 0x32d   : > { %v1763_v6 = vpop.f32.mrf.mxu1 }
 0x32e   : > { %v1984_v29 = vmul.f32 0.70710677, %v5074_v2  ;;  %v5078_v44 = vadd.f32 %v1763_v6, %v5071_v25 }
 0x32f   : > { %v1765_v61 = vpop.f32.mrf.mxu1 }
 0x330   : > { %v1985_v21 = vmul.f32 0.70710677, %v5078_v44  ;;  %v1766_v52 = vadd.f32 %v1765_v61, %v5064_v56  ;;  %3687 = verf.f32 %v1984_v29  ;;  %v5093_v61 = vpop.f32.mrf.mxu0  ;;  %v1921_v15 = vmul.f32 0.5, %v5078_v44 }
 0x331   : > { %v1767_v33 = vpop.f32.mrf.mxu1 }
 0x332   : > { %3689 = verf.f32 %v1985_v21  ;;  %v1986_v1 = vmul.f32 0.70710677, %v1766_v52  ;;  %v5083_v48 = vadd.f32 %v1767_v33, %v5071_v25  ;;  %v1504_v30 = vpop.f32.mrf.mxu0 }
 0x333   : > { %v1771_v63 = vpop.f32.mrf.mxu1 }
 0x334   : > { %3691 = verf.f32 %v1986_v1  ;;  %v1987_v45 = vmul.f32 0.70710677, %v5083_v48  ;;  %v5087_v6 = vadd.f32 %v1771_v63, %v5064_v56  ;;  %v5146_v0 = vpop.f32.mrf.mxu0  ;;  %v1923_v49 = vmul.f32 0.5, %v5083_v48 }
 0x335   : > { %v1773_v50 = vpop.f32.mrf.mxu1 }
 0x336   : > { %3693 = verf.f32 %v1987_v45  ;;  %v1988_v14 = vmul.f32 0.70710677, %v5087_v6  ;;  %v5091_v29 = vadd.f32 %v1773_v50, %v5071_v25  ;;  %v5105_v50 = vadd.f32 %v4948_v7, %v4930_v16 }
 0x337   : > { %v1775_v21 = vpop.f32.mrf.mxu1  ;;  %v1924_v12 = vmul.f32 0.5, %v5087_v6 }
 0x338   : > { %v1989_v33 = vmul.f32 0.70710677, %v5091_v29  ;;  %v5097_v42 = vadd.f32 %v1775_v21, %v5064_v56  ;;  %3695 = verf.f32 %v1988_v14  ;;  %v5113_v14 = vadd.f32 %v4964_v51, %v4930_v16 }
 0x339   : > { %v1777_v1 = vpop.f32.mrf.mxu1  ;;  %v5131_v51 = vadd.f32 %v4996_v54, %v4930_v16 }
 0x33a   : > { %3697 = verf.f32 %v1989_v33  ;;  %v1990_v63 = vmul.f32 0.70710677, %v5097_v42  ;;  %v5101_v45 = vadd.f32 %v1777_v1, %v5071_v25  ;;  %v1467_v1 = vadd.f32 %v4972_v4, %v4934_v28 }
 0x33b   : > { %v1781_v3 = vpop.f32.mrf.mxu1 }
 0x33c   : > { %3699 = verf.f32 %v1990_v63  ;;  %v1991_v21 = vmul.f32 0.70710677, %v5101_v45  ;;  %v5117_v33 = vadd.f32 %v1781_v3, %v5064_v56  ;;  %v5135_v3 = vadd.f32 %v5004_v5, %v4934_v28 }
 0x33d   : > { %v1783_v7 = vpop.f32.mrf.mxu1  ;;  %v3688_v63 = vpop.eup %3687 }
 0x33e   : > { %3701 = verf.f32 %v1991_v21  ;;  %v1992_v4 = vmul.f32 0.70710677, %v5117_v33  ;;  %v5149_v62 = vadd.f32 %v1783_v7, %v5071_v25  ;;  %v5153_v21 = vadd.f32 %v5028_v37, %v4930_v16 }
 0x33f   : > { %v3690_v54 = vpop.eup %3689  ;;  %v1785_v5 = vpop.f32.mrf.mxu1  ;;  %v5168_v7 = vadd.f32 %v5057_v22, %v4934_v28  ;;  %v2112_v8 = vadd.f32 1.0, %v3688_v63 }
 0x340   : > { %3703 = verf.f32 %v1992_v4  ;;  %v5164_v26 = vadd.f32 %v1785_v5, %v5064_v56  ;;  %v2113_v59 = vadd.f32 1.0, %v3690_v54  ;;  %v1993_v32 = vmul.f32 0.70710677, %v5149_v62  ;;  %v5181_v22 = vpop.f32.mrf.mxu0 }
 0x341   : > { %v3692_v37 = vpop.eup %3691  ;;  %v1787_v55 = vpop.f32.mrf.mxu1  ;;  %v1920_v4 = vmul.f32 0.5, %v5074_v2  ;;  %v1922_v5 = vmul.f32 0.5, %v1766_v52 }
 0x342   : > { %v2114_v24 = vadd.f32 1.0, %v3692_v37  ;;  %3705 = verf.f32 %v1993_v32  ;;  %v1994_v63 = vmul.f32 0.70710677, %v5164_v26  ;;  %v5186_v54 = vadd.f32 %v1787_v55, %v5071_v25  ;;  %v5201_v48 = vpop.f32.mrf.mxu0 }
 0x343   : > { %v3694_v19 = vpop.eup %3693  ;;  %v1791_v46 = vpop.f32.mrf.mxu1  ;;  %v2176_v17 = vmul.f32 %v2112_v8, %v1920_v4  ;;  %v2177_v23 = vmul.f32 %v2113_v59, %v1921_v15  ;;  %v5196_v55 = vadd.f32 %v5093_v61, %v4934_v28  ;;  %v1925_v15 = vmul.f32 0.5, %v5091_v29 }
 0x344   : > { %v2178_v2 = vmul.f32 %v2114_v24, %v1922_v5  ;;  %v2115_v52 = vadd.f32 1.0, %v3694_v19  ;;  %v5190_v37 = vadd.f32 %v1791_v46, %v5064_v56  ;;  %3707 = verf.f32 %v1994_v63 }
 0x345   : > { %v1995_v13 = vmul.f32 0.70710677, %v5186_v54  ;;  %v1793_v44 = vpop.f32.mrf.mxu1  ;;  %v3696_v32 = vpop.eup %3695  ;;  %v5199_v24 = vadd.f32 %v1504_v30, %v4930_v16  ;;  %v2240_v63 = vmul.f32 %v2176_v17, %v5105_v50  ;;  %v2241_v46 = vmul.f32 %v2177_v23, %v5109_v39 }
 0x346   : > { %v2179_v20 = vmul.f32 %v2115_v52, %v1923_v49  ;;  %v1996_v59 = vmul.f32 0.70710677, %v5190_v37  ;;  %v5206_v8 = vadd.f32 %v1793_v44, %v5071_v25  ;;  %v1926_v49 = vmul.f32 0.5, %v5097_v42 }
 0x347   : > { %v3698_v5 = vpop.eup %3697  ;;  %3709 = verf.f32 %v1995_v13  ;;  %v1795_v6 = vpop.f32.mrf.mxu1  ;;  %v2242_v61 = vmul.f32 %v2178_v2, %v5113_v14  ;;  %v2116_v44 = vadd.f32 1.0, %v3696_v32  ;;  %v1927_v2 = vmul.f32 0.5, %v5101_v45 }
 0x348   : > { %v2243_v4 = vmul.f32 %v2179_v20, %v1467_v1  ;;  %v2117_v19 = vadd.f32 1.0, %v3698_v5  ;;  %v1997_v29 = vmul.f32 0.70710677, %v5206_v8  ;;  %v5214_v13 = vadd.f32 %v1795_v6, %v5064_v56  ;;  %v5219_v14 = vpop.f32.mrf.mxu0 }
 0x349   : > { %v3700_v30 = vpop.eup %3699  ;;  %v1797_v52 = vpop.f32.mrf.mxu1  ;;  %3711 = verf.f32 %v1996_v59  ;;  %v2336_v17 = vpack.c.bf16 %v2242_v61, %v2240_v63  ;;  %v1928_v61 = vmul.f32 0.5, %v5117_v33 }
 0x34a   : > { %v2118_v31 = vadd.f32 1.0, %v3700_v30  ;;  %v5217_v42 = vadd.f32 %v1797_v52, %v5071_v25  ;;  %v2181_v1 = vmul.f32 %v2117_v19, %v1925_v15  ;;  %3713 = verf.f32 %v1997_v29 }
 0x34b   : > { %v3702_v20 = vpop.eup %3701  ;;  %v1998_v50 = vmul.f32 0.70710677, %v5214_v13  ;;  %v1801_v23 = vpop.f32.mrf.mxu1  ;;  %v2337_v39 = vpack.c.bf16 %v2243_v4, %v2241_v46  ;;  %v5229_v15 = vadd.f32 %v5146_v0, %v4934_v28  ;;  %v2180_v19 = vmul.f32 %v2116_v44, %v1924_v12 }
 0x34c   : > { %v2182_v5 = vmul.f32 %v2118_v31, %v1926_v49  ;;  %v2119_v6 = vadd.f32 1.0, %v3702_v20  ;;  %v1999_v59 = vmul.f32 0.70710677, %v5217_v42  ;;  %v5225_v30 = vadd.f32 %v1801_v23, %v5064_v56  ;;  %v1516_v49 = vpop.f32.mrf.mxu0 }
 0x34d   : > { %v3704_v32 = vpop.eup %3703  ;;  %3715 = verf.f32 %v1998_v50  ;;  %2528 = vmatprep.mubr.bf16.mxu0 %v2337_v39  ;;  %v1803_v52 = vpop.f32.mrf.mxu1  ;;  %v5236_v31 = vadd.f32 %v5181_v22, %v4930_v16  ;;  %v2245_v63 = vmul.f32 %v2181_v1, %v5127_v18  ;;  %v1929_v22 = vmul.f32 0.5, %v5149_v62 }
 0x34e   : > { %v2183_v4 = vmul.f32 %v2119_v6, %v1927_v2  ;;  %v5232_v45 = vadd.f32 %v1803_v52, %v5071_v25  ;;  %2529 = vmatmul.mubr.bf16.vlgmr.msra.gmra.mxu0 %v2336_v17  ;;  %3717 = verf.f32 %v1999_v59  ;;  %v2120_v46 = vadd.f32 1.0, %v3704_v32  ;;  %v1520_v17 = vpop.f32.mrf.mxu0 }
 0x34f   : > { %v1805_v29 = vpop.f32.mrf.mxu1  ;;  %v3706_v0 = vpop.eup %3705  ;;  %v2246_v12 = vmul.f32 %v2182_v5, %v5131_v51  ;;  %v2000_v20 = vmul.f32 0.70710677, %v5225_v30  ;;  %v1930_v23 = vmul.f32 0.5, %v5164_v26  ;;  %v2244_v2 = vmul.f32 %v2180_v19, %v5123_v27 }
 0x350   : > { %v2247_v44 = vmul.f32 %v2183_v4, %v5135_v3  ;;  %v2001_v50 = vmul.f32 0.70710677, %v5232_v45  ;;  %v2121_v39 = vadd.f32 1.0, %v3706_v0  ;;  %v5247_v33 = vadd.f32 %v1805_v29, %v5064_v56 }
 0x351   : > { %v1807_v18 = vpop.f32.mrf.mxu1  ;;  %v3708_v1 = vpop.eup %3707  ;;  %v1931_v5 = vmul.f32 0.5, %v5186_v54  ;;  %v2184_v6 = vmul.f32 %v2120_v46, %v1928_v61  ;;  %v2338_v27 = vpack.c.bf16 %v2246_v12, %v2244_v2  ;;  %v5264_v61 = vadd.f32 %v5201_v48, %v4934_v28 }
 0x352   : > { %3719 = verf.f32 %v2001_v50  ;;  %v5251_v51 = vadd.f32 %v1807_v18, %v5071_v25  ;;  %v2339_v3 = vpack.c.bf16 %v2247_v44, %v2245_v63  ;;  %v2122_v62 = vadd.f32 1.0, %v3708_v1  ;;  %v1522_v44 = vpop.f32.mrf.mxu0 }
 0x353   : > { %v2002_v26 = vmul.f32 0.70710677, %v5247_v33  ;;  %v1811_v32 = vpop.f32.mrf.mxu1  ;;  %3721 = verf.f32 %v2000_v20  ;;  %v2185_v19 = vmul.f32 %v2121_v39, %v1929_v22  ;;  %v5268_v46 = vadd.f32 %v5219_v14, %v4930_v16 }
 0x354   : > { %v3710_v59 = vpop.eup %3709  ;;  %v2003_v52 = vmul.f32 0.70710677, %v5251_v51  ;;  %v5257_v4 = vadd.f32 %v1811_v32, %v5064_v56  ;;  %2536 = vmatprep.mubr.bf16.mxu0 %v2339_v3  ;;  %v2186_v29 = vmul.f32 %v2122_v62, %v1930_v23  ;;  %v5272_v23 = vadd.f32 %v1516_v49, %v4934_v28 }
 0x355   : > { %3723 = verf.f32 %v2002_v26  ;;  %v2123_v63 = vadd.f32 1.0, %v3710_v59  ;;  %v1813_v0 = vpop.f32.mrf.mxu1  ;;  %v5275_v39 = vadd.f32 %v1520_v17, %v4930_v16  ;;  %v1932_v48 = vmul.f32 0.5, %v5190_v37  ;;  %v1524_v59 = vpop.f32.mrf.mxu0 }
 0x356   : > { %3725 = verf.f32 %v2003_v52  ;;  %v5260_v54 = vadd.f32 %v1813_v0, %v5071_v25  ;;  %2537 = vmatmul.mubr.bf16.gmra.mxu0 %v2338_v27  ;;  %v3712_v12 = vpop.eup %3711  ;;  %v2004_v50 = vmul.f32 0.70710677, %v5257_v4  ;;  %v2250_v1 = vmul.f32 %v2186_v29, %v5153_v21 }
 0x357   : > { %v2187_v20 = vmul.f32 %v2123_v63, %v1931_v5  ;;  %v1815_v22 = vpop.f32.mrf.mxu1  ;;  %v3714_v18 = vpop.eup %3713  ;;  %v1934_v3 = vmul.f32 0.5, %v5214_v13  ;;  %v2248_v5 = vmul.f32 %v2184_v6, %v5140_v35  ;;  %v2249_v49 = vmul.f32 %v2185_v19, %v5144_v36 }
 0x358   : > { %v2005_v14 = vmul.f32 0.70710677, %v5260_v54  ;;  %v5281_v2 = vadd.f32 %v1815_v22, %v5064_v56  ;;  %v2124_v32 = vadd.f32 1.0, %v3712_v12  ;;  %v2125_v52 = vadd.f32 1.0, %v3714_v18 }
 0x359   : > { %v2251_v62 = vmul.f32 %v2187_v20, %v5157_v43  ;;  %v1817_v17 = vpop.f32.mrf.mxu1  ;;  %v2340_v6 = vpack.c.bf16 %v2250_v1, %v2248_v5  ;;  %v1933_v19 = vmul.f32 0.5, %v5206_v8  ;;  %v1935_v63 = vmul.f32 0.5, %v5217_v42 }
 0x35a   : > { %v3716_v26 = vpop.eup %3715  ;;  %3727 = verf.f32 %v2005_v14  ;;  %v2006_v37 = vmul.f32 0.70710677, %v5281_v2  ;;  %v5289_v21 = vadd.f32 %v1817_v17, %v5071_v25  ;;  %v5301_v18 = vadd.f32 %v1522_v44, %v4934_v28  ;;  %v1526_v14 = vpop.f32.mrf.mxu0 }
 0x35b   : > { %3729 = verf.f32 %v2004_v50  ;;  %v2126_v27 = vadd.f32 1.0, %v3716_v26  ;;  %v1821_v13 = vpop.f32.mrf.mxu1  ;;  %v2341_v29 = vpack.c.bf16 %v2251_v62, %v2249_v49  ;;  %v3718_v35 = vpop.eup %3717  ;;  %v2188_v50 = vmul.f32 %v2124_v32, %v1932_v48 }
 0x35c   : > { %3731 = verf.f32 %v2006_v37  ;;  %v2007_v36 = vmul.f32 0.70710677, %v5289_v21  ;;  %v5293_v43 = vadd.f32 %v1821_v13, %v5064_v56  ;;  %v2127_v12 = vadd.f32 1.0, %v3718_v35 }
 0x35d   : > { %v2190_v0 = vmul.f32 %v2126_v27, %v1934_v3  ;;  %2544 = vmatprep.mubr.bf16.mxu0 %v2341_v29  ;;  %v1823_v20 = vpop.f32.mrf.mxu1  ;;  %v2189_v1 = vmul.f32 %v2125_v52, %v1933_v19  ;;  %v5305_v3 = vadd.f32 %v1524_v59, %v4930_v16  ;;  %v1936_v48 = vmul.f32 0.5, %v5225_v30 }
 0x35e   : > { %3733 = verf.f32 %v2007_v36  ;;  %v5298_v22 = vadd.f32 %v1823_v20, %v5071_v25  ;;  %2545 = vmatmul.mubr.bf16.gmra.mxu0 %v2340_v6  ;;  %v2191_v5 = vmul.f32 %v2127_v12, %v1935_v63  ;;  %v2008_v8 = vmul.f32 0.70710677, %v5293_v43 }
 0x35f   : > { %v3720_v49 = vpop.eup %3719  ;;  %v1825_v42 = vpop.f32.mrf.mxu1  ;;  %v1937_v62 = vmul.f32 0.5, %v5232_v45  ;;  %v2254_v17 = vmul.f32 %v2190_v0, %v5171_v58  ;;  %v1938_v32 = vmul.f32 0.5, %v5247_v33  ;;  %v1939_v29 = vmul.f32 0.5, %v5251_v51 }
 0x360   : > { %v2009_v26 = vmul.f32 0.70710677, %v5298_v22  ;;  %v3722_v44 = vpop.eup %3721  ;;  %v2255_v37 = vmul.f32 %v2191_v5, %v5175_v41  ;;  %v2129_v52 = vadd.f32 1.0, %v3720_v49  ;;  %v5314_v27 = vadd.f32 %v1825_v42, %v5064_v56  ;;  %v1530_v45 = vpop.f32.mrf.mxu0 }
 0x361   : > { %v1827_v13 = vpop.f32.mrf.mxu1  ;;  %v2252_v30 = vmul.f32 %v2188_v50, %v5161_v57  ;;  %v2253_v33 = vmul.f32 %v2189_v1, %v5168_v7  ;;  %v2128_v19 = vadd.f32 1.0, %v3722_v44 }
 0x362   : > { %v3724_v59 = vpop.eup %3723  ;;  %3735 = verf.f32 %v2009_v26  ;;  %v5319_v58 = vadd.f32 %v1827_v13, %v5071_v25  ;;  %v2010_v36 = vmul.f32 0.70710677, %v5314_v27  ;;  %v2193_v12 = vmul.f32 %v2129_v52, %v1937_v62  ;;  %v1532_v1 = vpop.f32.mrf.mxu0 }
 0x363   : > { %v3726_v35 = vpop.eup %3725  ;;  %3737 = verf.f32 %v2008_v8  ;;  %v2130_v41 = vadd.f32 1.0, %v3724_v59  ;;  %v1831_v6 = vpop.f32.mrf.mxu1  ;;  %v2342_v51 = vpack.c.bf16 %v2254_v17, %v2252_v30  ;;  %v2343_v20 = vpack.c.bf16 %v2255_v37, %v2253_v33 }
 0x364   : > { %v2131_v63 = vadd.f32 1.0, %v3726_v35  ;;  %v2011_v0 = vmul.f32 0.70710677, %v5319_v58  ;;  %3739 = verf.f32 %v2010_v36  ;;  %v5325_v57 = vadd.f32 %v1831_v6, %v5064_v56 }
 0x365   : > { %v1833_v50 = vpop.f32.mrf.mxu1  ;;  %v2194_v49 = vmul.f32 %v2130_v41, %v1938_v32  ;;  %2552 = vmatprep.mubr.bf16.mxu0 %v2343_v20  ;;  %v5332_v62 = vadd.f32 %v1526_v14, %v4934_v28  ;;  %v5335_v17 = vadd.f32 %v1530_v45, %v4930_v16  ;;  %v5338_v44 = vadd.f32 %v1532_v1, %v4934_v28 }
 0x366   : > { %v2195_v5 = vmul.f32 %v2131_v63, %v1939_v29  ;;  %3741 = verf.f32 %v2011_v0  ;;  %v5328_v7 = vadd.f32 %v1833_v50, %v5071_v25  ;;  %v2012_v42 = vmul.f32 0.70710677, %v5325_v57  ;;  %2553 = vmatmul.mubr.bf16.gmra.mxu0 %v2342_v51 }
 0x367   : > { %v3728_v8 = vpop.eup %3727  ;;  %v1835_v26 = vpop.f32.mrf.mxu1  ;;  %v1941_v37 = vmul.f32 0.5, %v5260_v54  ;;  %v2192_v52 = vmul.f32 %v2128_v19, %v1936_v48  ;;  %v1942_v30 = vmul.f32 0.5, %v5281_v2  ;;  %v2257_v14 = vmul.f32 %v2193_v12, %v5196_v55 }
 0x368   : > { %v3730_v32 = vpop.eup %3729  ;;  %v2259_v13 = vmul.f32 %v2195_v5, %v5229_v15  ;;  %v2133_v59 = vadd.f32 1.0, %v3728_v8  ;;  %v2013_v35 = vmul.f32 0.70710677, %v5328_v7  ;;  %v5346_v45 = vadd.f32 %v1835_v26, %v5064_v56 }
 0x369   : > { %v3732_v29 = vpop.eup %3731  ;;  %v1837_v33 = vpop.f32.mrf.mxu1  ;;  %v2258_v41 = vmul.f32 %v2194_v49, %v5199_v24  ;;  %3743 = verf.f32 %v2012_v42  ;;  %v1943_v36 = vmul.f32 0.5, %v5289_v21  ;;  %v2256_v19 = vmul.f32 %v2192_v52, %v5179_v47 }
 0x36a   : > { %v2134_v54 = vadd.f32 1.0, %v3732_v29  ;;  %v5350_v48 = vadd.f32 %v1837_v33, %v5071_v25  ;;  %3745 = verf.f32 %v2013_v35  ;;  %v2014_v2 = vmul.f32 0.70710677, %v5346_v45  ;;  %v1534_v47 = vpop.f32.mrf.mxu0 }
 0x36b   : > { %v3734_v15 = vpop.eup %3733  ;;  %v1841_v55 = vpop.f32.mrf.mxu1  ;;  %v2345_v6 = vpack.c.bf16 %v2259_v13, %v2257_v14  ;;  %v2132_v63 = vadd.f32 1.0, %v3730_v32  ;;  %v2197_v0 = vmul.f32 %v2133_v59, %v1941_v37  ;;  %v1940_v24 = vmul.f32 0.5, %v5257_v4 }
 0x36c   : > { %v2135_v51 = vadd.f32 1.0, %v3734_v15  ;;  %3747 = verf.f32 %v2014_v2  ;;  %v2015_v12 = vmul.f32 0.70710677, %v5350_v48  ;;  %v5358_v20 = vadd.f32 %v1841_v55, %v5064_v56 }
 0x36d   : > { %2560 = vmatprep.mubr.bf16.mxu0 %v2345_v6  ;;  %v1843_v21 = vpop.f32.mrf.mxu1  ;;  %v2198_v50 = vmul.f32 %v2134_v54, %v1942_v30  ;;  %v2344_v1 = vpack.c.bf16 %v2258_v41, %v2256_v19  ;;  %v1944_v42 = vmul.f32 0.5, %v5293_v43  ;;  %v5366_v32 = vadd.f32 %v1534_v47, %v4930_v16 }
 0x36e   : > { %v2199_v49 = vmul.f32 %v2135_v51, %v1943_v36  ;;  %v5361_v5 = vadd.f32 %v1843_v21, %v5071_v25  ;;  %3749 = verf.f32 %v2015_v12  ;;  %v2016_v4 = vmul.f32 0.70710677, %v5358_v20 }
 0x36f   : > { %v3736_v8 = vpop.eup %3735  ;;  %v1845_v26 = vpop.f32.mrf.mxu1  ;;  %v1945_v52 = vmul.f32 0.5, %v5298_v22  ;;  %v2196_v13 = vmul.f32 %v2132_v63, %v1940_v24  ;;  %v2261_v59 = vmul.f32 %v2197_v0, %v5264_v61  ;;  %2561 = vmatmul.mubr.bf16.gmra.mxu0 %v2344_v1  ;;  %v1946_v16 = vmul.f32 0.5, %v5314_v27 }
 0x370   : > { %v3738_v37 = vpop.eup %3737  ;;  %v2263_v29 = vmul.f32 %v2199_v49, %v5272_v23  ;;  %3751 = verf.f32 %v2016_v4  ;;  %v2137_v30 = vadd.f32 1.0, %v3736_v8  ;;  %v2017_v43 = vmul.f32 0.70710677, %v5361_v5 }
 0x371   : > { %v5373_v14 = vadd.f32 %v1845_v26, %v5064_v56  ;;  %v1847_v35 = vpop.f32.mrf.mxu1  ;;  %v3740_v33 = vpop.eup %3739  ;;  %v2262_v41 = vmul.f32 %v2198_v50, %v5268_v46  ;;  %v2136_v23 = vadd.f32 1.0, %v3738_v37  ;;  %v1947_v55 = vmul.f32 0.5, %v5319_v58 }
 0x372   : > { %v5378_v22 = vadd.f32 %v1847_v35, %v5071_v25  ;;  %v2347_v61 = vpack.c.bf16 %v2263_v29, %v2261_v59  ;;  %3753 = verf.f32 %v2017_v43  ;;  %v2138_v15 = vadd.f32 1.0, %v3740_v33  ;;  %v1536_v46 = vpop.f32.mrf.mxu0 }
 0x373   : > { %v3742_v54 = vpop.eup %3741  ;;  %v2018_v36 = vmul.f32 0.70710677, %v5373_v14  ;;  %v1851_v2 = vpop.f32.mrf.mxu1  ;;  %v2260_v6 = vmul.f32 %v2196_v13, %v5236_v31  ;;  %v2201_v63 = vmul.f32 %v2137_v30, %v1945_v52  ;;  %v1948_v31 = vmul.f32 0.5, %v5325_v57 }
 0x374   : > { %v2139_v19 = vadd.f32 1.0, %v3742_v54  ;;  %v2019_v27 = vmul.f32 0.70710677, %v5378_v22  ;;  %2568 = vmatprep.mubr.bf16.mxu0 %v2347_v61  ;;  %v2202_v0 = vmul.f32 %v2138_v15, %v1946_v16  ;;  %v5385_v51 = vadd.f32 %v1851_v2, %v5064_v56 }
 0x375   : > { %3755 = verf.f32 %v2018_v36  ;;  %v1853_v24 = vpop.f32.mrf.mxu1  ;;  %v2346_v58 = vpack.c.bf16 %v2262_v41, %v2260_v6  ;;  %v2200_v49 = vmul.f32 %v2136_v23, %v1944_v42  ;;  %v1537_v8 = vadd.f32 %v1536_v46, %v4934_v28 }
 0x376   : > { %v2203_v12 = vmul.f32 %v2139_v19, %v1947_v55  ;;  %3757 = verf.f32 %v2019_v27  ;;  %v5388_v21 = vadd.f32 %v1853_v24, %v5071_v25  ;;  %v3744_v50 = vpop.eup %3743  ;;  %v2020_v1 = vmul.f32 0.70710677, %v5385_v51 }
 0x377   : > { %v1855_v47 = vpop.f32.mrf.mxu1  ;;  %v3746_v4 = vpop.eup %3745  ;;  %v1949_v26 = vmul.f32 0.5, %v5328_v7  ;;  %2569 = vmatmul.mubr.bf16.gmra.mxu0 %v2346_v58  ;;  %v2265_v59 = vmul.f32 %v2201_v63, %v5301_v18  ;;  %v2266_v57 = vmul.f32 %v2202_v0, %v5305_v3  ;;  %v1950_v28 = vmul.f32 0.5, %v5346_v45 }
 0x378   : > { %v2267_v37 = vmul.f32 %v2203_v12, %v5332_v62  ;;  %v2021_v52 = vmul.f32 0.70710677, %v5388_v21  ;;  %v5397_v13 = vadd.f32 %v1855_v47, %v5064_v56  ;;  %3759 = verf.f32 %v2020_v1 }
 0x379   : > { %v2141_v42 = vadd.f32 1.0, %v3746_v4  ;;  %v1857_v29 = vpop.f32.mrf.mxu1  ;;  %v3748_v30 = vpop.eup %3747  ;;  %v2264_v43 = vmul.f32 %v2200_v49, %v5275_v39  ;;  %v2140_v35 = vadd.f32 1.0, %v3744_v50  ;;  %v1951_v3 = vmul.f32 0.5, %v5350_v48 }
 0x37a   : > { %3761 = verf.f32 %v2021_v52  ;;  %v2022_v7 = vmul.f32 0.70710677, %v5397_v13  ;;  %v5404_v62 = vadd.f32 %v1857_v29, %v5071_v25  ;;  %v2142_v33 = vadd.f32 1.0, %v3748_v30 }
 0x37b   : > { %v1861_v16 = vpop.f32.mrf.mxu1  ;;  %v2349_v18 = vpack.c.bf16 %v2267_v37, %v2265_v59  ;;  %v3750_v41 = vpop.eup %3749  ;;  %v1952_v54 = vmul.f32 0.5, %v5358_v20  ;;  %v2205_v23 = vmul.f32 %v2141_v42, %v1949_v26  ;;  %v2348_v39 = vpack.c.bf16 %v2266_v57, %v2264_v43 }
 0x37c   : > { %3763 = verf.f32 %v2022_v7  ;;  %v2023_v61 = vmul.f32 0.70710677, %v5404_v62  ;;  %v5410_v45 = vadd.f32 %v1861_v16, %v5064_v56  ;;  %v2143_v15 = vadd.f32 1.0, %v3750_v41 }
 0x37d   : > { %2576 = vmatprep.mubr.bf16.mxu0 %v2349_v18  ;;  %v1863_v36 = vpop.f32.mrf.mxu1  ;;  %v3752_v2 = vpop.eup %3751  ;;  %v2206_v55 = vmul.f32 %v2142_v33, %v1950_v28  ;;  %v1953_v27 = vmul.f32 0.5, %v5361_v5  ;;  %v2204_v46 = vmul.f32 %v2140_v35, %v1948_v31  ;;  %v1954_v24 = vmul.f32 0.5, %v5373_v14 }
 0x37e   : > { %3765 = verf.f32 %v2023_v61  ;;  %v2024_v6 = vmul.f32 0.70710677, %v5410_v45  ;;  %v5415_v48 = vadd.f32 %v1863_v36, %v5071_v25  ;;  %v2144_v19 = vadd.f32 1.0, %v3752_v2 }
 0x37f   : > { %v2207_v63 = vmul.f32 %v2143_v15, %v1951_v3  ;;  %v1865_v0 = vpop.f32.mrf.mxu1  ;;  %v3754_v20 = vpop.eup %3753  ;;  %2577 = vmatmul.mubr.bf16.gmra.mxu0 %v2348_v39  ;;  %v1955_v49 = vmul.f32 0.5, %v5378_v22  ;;  %v2269_v1 = vmul.f32 %v2205_v23, %v5338_v44  ;;  %v2270_v4 = vmul.f32 %v2206_v55, %v5366_v32 }
 0x380   : > { %3767 = verf.f32 %v2024_v6  ;;  %v2025_v12 = vmul.f32 0.70710677, %v5415_v48  ;;  %v5421_v58 = vadd.f32 %v1865_v0, %v5064_v56  ;;  %v2145_v50 = vadd.f32 1.0, %v3754_v20 }
 0x381   : > { %v2271_v47 = vmul.f32 %v2207_v63, %v1537_v8  ;;  %v1867_v5 = vpop.f32.mrf.mxu1  ;;  %v2208_v52 = vmul.f32 %v2144_v19, %v1952_v54  ;;  %v2268_v57 = vmul.f32 %v2204_v46, %v5335_v17  ;;  %v1956_v54 = vmul.f32 0.5, %v5385_v51 }
 0x382   : > { %v3756_v31 = vpop.eup %3755  ;;  %3769 = verf.f32 %v2025_v12  ;;  %v2026_v14 = vmul.f32 0.70710677, %v5421_v58  ;;  %v5428_v26 = vadd.f32 %v1867_v5, %v5071_v25  ;;  %v2209_v29 = vmul.f32 %v2145_v50, %v1953_v27 }
 0x383   : > { %v3758_v37 = vpop.eup %3757  ;;  %v2146_v59 = vadd.f32 1.0, %v3756_v31  ;;  %v1871_v42 = vpop.f32.mrf.mxu1  ;;  %v2351_v22 = vpack.c.bf16 %v2271_v47, %v2269_v1  ;;  %v2350_v17 = vpack.c.bf16 %v2270_v4, %v2268_v57  ;;  %v2272_v3 = vmul.f32 %v2208_v52, %v4937_v9 }
 0x384   : > { %v2147_v44 = vadd.f32 1.0, %v3758_v37  ;;  %3771 = verf.f32 %v2026_v14  ;;  %v2027_v8 = vmul.f32 0.70710677, %v5428_v26  ;;  %v5433_v32 = vadd.f32 %v1871_v42, %v5064_v56 }
 0x385   : > { %v2210_v30 = vmul.f32 %v2146_v59, %v1954_v24  ;;  %2584 = vmatprep.mubr.bf16.mxu0 %v2351_v22  ;;  %v1873_v28 = vpop.f32.mrf.mxu1  ;;  %v3760_v7 = vpop.eup %3759  ;;  %v2273_v36 = vmul.f32 %v2209_v29, %v4940_v60  ;;  %v1957_v9 = vmul.f32 0.5, %v5388_v21  ;;  %v1959_v12 = vmul.f32 0.5, %v5404_v62 }
 0x386   : > { %v2211_v43 = vmul.f32 %v2147_v44, %v1955_v49  ;;  %3773 = verf.f32 %v2027_v8  ;;  %v5436_v35 = vadd.f32 %v1873_v28, %v5071_v25  ;;  %v2148_v16 = vadd.f32 1.0, %v3760_v7 }
 0x387   : > { %v3762_v33 = vpop.eup %3761  ;;  %v2028_v18 = vmul.f32 0.70710677, %v5433_v32  ;;  %v1875_v41 = vpop.f32.mrf.mxu1  ;;  %v2274_v61 = vmul.f32 %v2210_v30, %v4943_v10  ;;  %2585 = vmatmul.mubr.bf16.gmra.mxu0 %v2350_v17  ;;  %v1958_v10 = vmul.f32 0.5, %v5397_v13  ;;  %v1960_v49 = vmul.f32 0.5, %v5410_v45 }
 0x388   : > { %v2029_v23 = vmul.f32 0.70710677, %v5436_v35  ;;  %v5444_v15 = vadd.f32 %v1875_v41, %v5064_v56  ;;  %v2149_v2 = vadd.f32 1.0, %v3762_v33  ;;  %v2275_v6 = vmul.f32 %v2211_v43, %v4946_v53 }
 0x389   : > { %v3764_v39 = vpop.eup %3763  ;;  %3775 = verf.f32 %v2028_v18  ;;  %v1877_v55 = vpop.f32.mrf.mxu1  ;;  %v2352_v19 = vpack.c.bf16 %v2274_v61, %v2272_v3  ;;  %v2212_v46 = vmul.f32 %v2148_v16, %v1956_v54  ;;  %v1961_v4 = vmul.f32 0.5, %v5415_v48 }
 0x38a   : > { %v2150_v51 = vadd.f32 1.0, %v3764_v39  ;;  %3777 = verf.f32 %v2029_v23  ;;  %v2030_v63 = vmul.f32 0.70710677, %v5444_v15  ;;  %v5452_v0 = vadd.f32 %v1877_v55, %v5071_v25  ;;  %v5784_v55 = vld [vmem:[#allocation22_spill] sm:$0xff] }
 0x38b   : > { %v3766_v27 = vpop.eup %3765  ;;  %v1881_v60 = vpop.f32.mrf.mxu1  ;;  %v2353_v20 = vpack.c.bf16 %v2275_v6, %v2273_v36  ;;  %v2213_v13 = vmul.f32 %v2149_v2, %v1957_v9  ;;  %v2276_v59 = vmul.f32 %v2212_v46, %v4951_v34  ;;  %v1962_v42 = vmul.f32 0.5, %v5421_v58 }
 0x38c   : > { %v2214_v24 = vmul.f32 %v2150_v51, %v1958_v10  ;;  %v2151_v53 = vadd.f32 1.0, %v3766_v27  ;;  %v5456_v50 = vadd.f32 %v1881_v60, %v5064_v56  ;;  %3779 = verf.f32 %v2030_v63  ;;  %v5786_v27 = vld [vmem:[#allocation23_spill] sm:$0xff] }
 0x38d   : > { %v3768_v21 = vpop.eup %3767  ;;  %v2031_v1 = vmul.f32 0.70710677, %v5452_v0  ;;  %2592 = vmatprep.mubr.bf16.mxu0 %v2353_v20  ;;  %v1883_v47 = vpop.f32.mrf.mxu1  ;;  %v2277_v8 = vmul.f32 %v2213_v13, %v4954_v38  ;;  %v1964_v13 = vmul.f32 0.5, %v5433_v32 }
 0x38e   : > { %v2215_v5 = vmul.f32 %v2151_v53, %v1959_v12  ;;  %v2152_v31 = vadd.f32 1.0, %v3768_v21  ;;  %v2032_v14 = vmul.f32 0.70710677, %v5456_v50  ;;  %v5463_v37 = vadd.f32 %v1883_v47, %v5071_v25 }
 0x38f   : > { %v3770_v62 = vpop.eup %3769  ;;  %3781 = verf.f32 %v2031_v1  ;;  %v1885_v52 = vpop.f32.mrf.mxu1  ;;  %v2278_v45 = vmul.f32 %v2214_v24, %v4959_v11  ;;  %2593 = vmatmul.mubr.bf16.gmra.mxu0 %v2352_v19  ;;  %v1963_v11 = vmul.f32 0.5, %v5428_v26  ;;  %v5785_v19 = vld [vmem:[#allocation24_spill] sm:$0xff]  ;;  %v5787_v24 = vld [vmem:[#allocation25_spill] sm:$0xff]  ;;  %v1966_v47 = vmul.f32 0.5, %v5444_v15 }
 0x390   : > { %v2153_v57 = vadd.f32 1.0, %v3770_v62  ;;  %3783 = verf.f32 %v2032_v14  ;;  %v5469_v22 = vadd.f32 %v1885_v52, %v5064_v56  ;;  %v2033_v29 = vmul.f32 0.70710677, %v5463_v37 }
 0x391   : > { %v3772_v48 = vpop.eup %3771  ;;  %v1887_v44 = vpop.f32.mrf.mxu1  ;;  %v2279_v30 = vmul.f32 %v2215_v5, %v4962_v40  ;;  %v2354_v28 = vpack.c.bf16 %v2278_v45, %v2276_v59  ;;  %v2216_v34 = vmul.f32 %v2152_v31, %v1960_v49  ;;  %v1965_v49 = vmul.f32 0.5, %v5436_v35 }
 0x392   : > { %v2154_v7 = vadd.f32 1.0, %v3772_v48  ;;  %v2034_v58 = vmul.f32 0.70710677, %v5469_v22  ;;  %v2217_v17 = vmul.f32 %v2153_v57, %v1961_v4  ;;  %3785 = verf.f32 %v2033_v29 }
 0x393   : > { %v3774_v43 = vpop.eup %3773  ;;  %v5477_v33 = vadd.f32 %v1887_v44, %v5071_v25  ;;  %v1891_v16 = vpop.f32.mrf.mxu1  ;;  %v2355_v18 = vpack.c.bf16 %v2279_v30, %v2277_v8  ;;  %v2280_v6 = vmul.f32 %v2216_v34, %v5784_v55  ;;  %v1967_v59 = vmul.f32 0.5, %v5452_v0  ;;  %v5788_v34 = vld [vmem:[#allocation28_spill] sm:$0xff] }
 0x394   : > { %v2218_v41 = vmul.f32 %v2154_v7, %v1962_v42  ;;  %v2155_v3 = vadd.f32 1.0, %v3774_v43  ;;  %3787 = verf.f32 %v2034_v58  ;;  %v5480_v38 = vadd.f32 %v1891_v16, %v5064_v56 }
 0x395   : > { %v2035_v40 = vmul.f32 0.70710677, %v5477_v33  ;;  %2600 = vmatprep.mubr.bf16.mxu0 %v2355_v18  ;;  %v1893_v26 = vpop.f32.mrf.mxu1  ;;  %v2281_v46 = vmul.f32 %v2217_v17, %v5786_v27  ;;  %v1968_v29 = vmul.f32 0.5, %v5456_v50  ;;  %v1969_v58 = vmul.f32 0.5, %v5463_v37  ;;  %v5789_v50 = vld [vmem:[#allocation27_spill] sm:$0xff] }
 0x396   : > { %v3776_v61 = vpop.eup %3775  ;;  %v2219_v54 = vmul.f32 %v2155_v3, %v1963_v11  ;;  %v2036_v23 = vmul.f32 0.70710677, %v5480_v38  ;;  %v5485_v36 = vadd.f32 %v1893_v26, %v5071_v25  ;;  %v2282_v9 = vmul.f32 %v2218_v41, %v5785_v19 }
 0x397   : > { %v3778_v39 = vpop.eup %3777  ;;  %3789 = verf.f32 %v2035_v40  ;;  %v1895_v2 = vpop.f32.mrf.mxu1  ;;  %2601 = vmatmul.mubr.bf16.gmra.mxu0 %v2354_v28  ;;  %v2156_v63 = vadd.f32 1.0, %v3776_v61  ;;  %v5790_v40 = vld [vmem:[#allocation29_spill] sm:$0xff]  ;;  %v5791_v61 = vld [vmem:[#allocation26_spill] sm:$0xff] }
 0x398   : > { %v2157_v10 = vadd.f32 1.0, %v3778_v39  ;;  %3791 = verf.f32 %v2036_v23  ;;  %v2037_v51 = vmul.f32 0.70710677, %v5485_v36  ;;  %v5492_v60 = vadd.f32 %v1895_v2, %v5064_v56 }
 0x399   : > { %v1897_v20 = vpop.f32.mrf.mxu1  ;;  %v2283_v12 = vmul.f32 %v2219_v54, %v5787_v24  ;;  %v2356_v53 = vpack.c.bf16 %v2282_v9, %v2280_v6  ;;  %v3780_v21 = vpop.eup %3779  ;;  %v2220_v57 = vmul.f32 %v2156_v63, %v1964_v13  ;;  %v1970_v23 = vmul.f32 0.5, %v5469_v22 }
 0x39a   : > { %3793 = verf.f32 %v2037_v51  ;;  %v5498_v1 = vadd.f32 %v1897_v20, %v5071_v25  ;;  %v2158_v5 = vadd.f32 1.0, %v3780_v21  ;;  %v2038_v31 = vmul.f32 0.70710677, %v5492_v60  ;;  %v5792_v21 = vld [vmem:[#allocation32_spill] sm:$0xff] }
 0x39b   : > { %v1901_v4 = vpop.f32.mrf.mxu1  ;;  %v2357_v14 = vpack.c.bf16 %v2283_v12, %v2281_v46  ;;  %v2221_v52 = vmul.f32 %v2157_v10, %v1965_v49  ;;  %v2284_v54 = vmul.f32 %v2220_v57, %v5791_v61  ;;  %v1971_v22 = vmul.f32 0.5, %v5477_v33 }
 0x39c   : > { %v3782_v62 = vpop.eup %3781  ;;  %v2039_v45 = vmul.f32 0.70710677, %v5498_v1  ;;  %v5505_v32 = vadd.f32 %v1901_v4, %v5064_v56  ;;  %v2222_v42 = vmul.f32 %v2158_v5, %v1966_v47  ;;  %3795 = verf.f32 %v2038_v31 }
 0x39d   : > { %v3784_v35 = vpop.eup %3783  ;;  %v2159_v48 = vadd.f32 1.0, %v3782_v62  ;;  %2608 = vmatprep.mubr.bf16.mxu0 %v2357_v14  ;;  %v1903_v15 = vpop.f32.mrf.mxu1  ;;  %v2285_v17 = vmul.f32 %v2221_v52, %v5789_v50  ;;  %v5793_v14 = vld [vmem:[#allocation30_spill] sm:$0xff]  ;;  %v1972_v62 = vmul.f32 0.5, %v5480_v38  ;;  %v1975_v50 = vmul.f32 0.5, %v5498_v1  ;;  %v5799_v1 = vld [vmem:[#allocation37_spill] sm:$0xff] }
 0x39e   : > { %3797 = verf.f32 %v2039_v45  ;;  %v2040_v44 = vmul.f32 0.70710677, %v5505_v32  ;;  %v2160_v30 = vadd.f32 1.0, %v3784_v35  ;;  %v5510_v0 = vadd.f32 %v1903_v15, %v5071_v25  ;;  %v5794_v45 = vld [vmem:[#allocation31_spill] sm:$0xff] }
 0x39f   : > { %v2223_v8 = vmul.f32 %v2159_v48, %v1967_v59  ;;  %v1905_v28 = vpop.f32.mrf.mxu1  ;;  %v2286_v7 = vmul.f32 %v2222_v42, %v5788_v34  ;;  %v3786_v11 = vpop.eup %3785  ;;  %2609 = vmatmul.mubr.bf16.gmra.mxu0 %v2356_v53  ;;  %v5795_v48 = vld [vmem:[#allocation33_spill] sm:$0xff] }
 0x3a0   : > { %3799 = verf.f32 %v2040_v44  ;;  %v5515_v43 = vadd.f32 %v1905_v28, %v5064_v56  ;;  %v2161_v18 = vadd.f32 1.0, %v3786_v11  ;;  %v2041_v41 = vmul.f32 0.70710677, %v5510_v0 }
 0x3a1   : > { %v3788_v16 = vpop.eup %3787  ;;  %v1907_v3 = vpop.f32.mrf.mxu1  ;;  %v2287_v26 = vmul.f32 %v2223_v8, %v5790_v40  ;;  %v2224_v55 = vmul.f32 %v2160_v30, %v1968_v29  ;;  %v2358_v9 = vpack.c.bf16 %v2286_v7, %v2284_v54  ;;  %v1973_v8 = vmul.f32 0.5, %v5485_v36  ;;  %v5797_v40 = vld [vmem:[#allocation36_spill] sm:$0xff] }
 0x3a2   : > { %v2162_v39 = vadd.f32 1.0, %v3788_v16  ;;  %v2042_v37 = vmul.f32 0.70710677, %v5515_v43  ;;  %v5524_v2 = vadd.f32 %v1907_v3, %v5071_v25  ;;  %3801 = verf.f32 %v2041_v41  ;;  %v5796_v3 = vld [vmem:[#allocation34_spill] sm:$0xff] }
 0x3a3   : > { %v1911_v6 = vpop.f32.mrf.mxu1  ;;  %v2359_v19 = vpack.c.bf16 %v2287_v26, %v2285_v17  ;;  %v2225_v51 = vmul.f32 %v2161_v18, %v1969_v58  ;;  %v2288_v33 = vmul.f32 %v2224_v55, %v5793_v14  ;;  %v1974_v30 = vmul.f32 0.5, %v5492_v60 }
 0x3a4   : > { %v3790_v10 = vpop.eup %3789  ;;  %v2226_v27 = vmul.f32 %v2162_v39, %v1970_v23  ;;  %3803 = verf.f32 %v2042_v37  ;;  %v2043_v46 = vmul.f32 0.70710677, %v5524_v2  ;;  %v5529_v24 = vadd.f32 %v1911_v6, %v5064_v56  ;;  %v5798_v23 = vld [vmem:[#allocation35_spill] sm:$0xff] }
 0x3a5   : > { %v3792_v63 = vpop.eup %3791  ;;  %v2163_v20 = vadd.f32 1.0, %v3790_v10  ;;  %2616 = vmatprep.mubr.bf16.mxu0 %v2359_v19  ;;  %v1913_v12 = vpop.f32.mrf.mxu1  ;;  %v2289_v35 = vmul.f32 %v2225_v51, %v5794_v45  ;;  %v1976_v54 = vmul.f32 0.5, %v5505_v32  ;;  %v1977_v6 = vmul.f32 0.5, %v5510_v0 }
 0x3a6   : > { %3805 = verf.f32 %v2043_v46  ;;  %v5532_v53 = vadd.f32 %v1913_v12, %v5071_v25  ;;  %v2290_v13 = vmul.f32 %v2226_v27, %v5792_v21  ;;  %v2164_v5 = vadd.f32 1.0, %v3792_v63 }
 0x3a7   : > { %v3794_v49 = vpop.eup %3793  ;;  %v2227_v47 = vmul.f32 %v2163_v20, %v1971_v22  ;;  %v2044_v31 = vmul.f32 0.70710677, %v5529_v24  ;;  %v1915_v4 = vpop.f32.mrf.mxu1  ;;  %2617 = vmatmul.mubr.bf16.gmra.mxu0 %v2358_v9  ;;  %v1978_v51 = vmul.f32 0.5, %v5515_v43  ;;  %v1979_v32 = vmul.f32 0.5, %v5524_v2  ;;  %v5802_v43 = vld [vmem:[#allocation39_spill] sm:$0xff] }
 0x3a8   : > { %v2165_v52 = vadd.f32 1.0, %v3794_v49  ;;  %v2045_v59 = vmul.f32 0.70710677, %v5532_v53  ;;  %v5541_v57 = vadd.f32 %v1915_v4, %v5064_v56  ;;  %v2360_v29 = vpack.c.bf16 %v2290_v13, %v2288_v33  ;;  %v5800_v49 = vld [vmem:[#allocation38_spill] sm:$0xff] }
 0x3a9   : > { %3807 = verf.f32 %v2044_v31  ;;  %v1917_v42 = vpop.f32.mrf.mxu1  ;;  %v2291_v15 = vmul.f32 %v2227_v47, %v5795_v48  ;;  %v3796_v44 = vpop.eup %3795  ;;  %v2228_v34 = vmul.f32 %v2164_v5, %v1972_v62  ;;  %v5801_v5 = vld [vmem:[#allocation40_spill] sm:$0xff]  ;;  %v5803_v62 = vld [vmem:[#allocation41_spill] sm:$0xff]  ;;  %v1980_v45 = vmul.f32 0.5, %v5529_v24  ;;  %v5806_v24 = vld [vmem:[#allocation43_spill] sm:$0xff] }
 0x3aa   : > { %3809 = verf.f32 %v2045_v59  ;;  %v1918_v38 = vadd.f32 %v1917_v42, %v5071_v25  ;;  %v2166_v7 = vadd.f32 1.0, %v3796_v44  ;;  %v2046_v11 = vmul.f32 0.70710677, %v5541_v57 }
 0x3ab   : > { %v3798_v28 = vpop.eup %3797  ;;  %v2361_v58 = vpack.c.bf16 %v2291_v15, %v2289_v35  ;;  %v2229_v56 = vmul.f32 %v2165_v52, %v1973_v8  ;;  %v2292_v25 = vmul.f32 %v2228_v34, %v5796_v3  ;;  %v1981_v35 = vmul.f32 0.5, %v5532_v53  ;;  %v5807_v53 = vld [vmem:[#allocation45_spill] sm:$0xff] }
 0x3ac   : > { %v2167_v17 = vadd.f32 1.0, %v3798_v28  ;;  %v2047_v16 = vmul.f32 0.70710677, %v1918_v38  ;;  %v2230_v41 = vmul.f32 %v2166_v7, %v1974_v30  ;;  %3811 = verf.f32 %v2046_v11  ;;  %v5804_v11 = vld [vmem:[#allocation42_spill] sm:$0xff] }
 0x3ad   : > { %v3800_v18 = vpop.eup %3799  ;;  %2624 = vmatprep.mubr.bf16.mxu0 %v2361_v58  ;;  %v2293_v39 = vmul.f32 %v2229_v56, %v5798_v23  ;;  %v1983_v30 = vmul.f32 0.5, %v1918_v38  ;;  %v5805_v56 = vld [vmem:[#allocation44_spill] sm:$0xff] }
 0x3ae   : > { %v2231_v36 = vmul.f32 %v2167_v17, %v1975_v50  ;;  %v2168_v60 = vadd.f32 1.0, %v3800_v18  ;;  %3813 = verf.f32 %v2047_v16  ;;  %v2294_v26 = vmul.f32 %v2230_v41, %v5797_v40  ;;  %v2305_v40 = vld [vmem:[#allocation3] sm:$0xff] }
 0x3af   : > { %v3802_v61 = vpop.eup %3801  ;;  %2625 = vmatmul.mubr.bf16.gmra.mxu0 %v2360_v29  ;;  %v1982_v29 = vmul.f32 0.5, %v5541_v57 }
 0x3b0   : > { %v2295_v37 = vmul.f32 %v2231_v36, %v5799_v1  ;;  %v2169_v19 = vadd.f32 1.0, %v3802_v61  ;;  %v2362_v9 = vpack.c.bf16 %v2294_v26, %v2292_v25  ;;  %v2232_v10 = vmul.f32 %v2168_v60, %v1976_v54  ;;  %v2304_v36 = vld [vmem:[#allocation3 + $0xb0] sm:$0xff] }
 0x3b1   : > { %v3804_v55 = vpop.eup %3803 }
 0x3b2   : > { %v2170_v27 = vadd.f32 1.0, %v3804_v55  ;;  %v2363_v46 = vpack.c.bf16 %v2295_v37, %v2293_v39  ;;  %v2233_v22 = vmul.f32 %v2169_v19, %v1977_v6  ;;  %v2296_v47 = vmul.f32 %v2232_v10, %v5800_v49  ;;  %v2306_v39 = vld [vmem:[#allocation3 + $0xd8] sm:$0xff] }
 0x3b3   : > { %v3806_v63 = vpop.eup %3805  ;;  %v2307_v19 = vld [vmem:[#allocation3 + $0x18] sm:$0xff] }
 0x3b4   : > { %v2234_v20 = vmul.f32 %v2170_v27, %v1978_v51  ;;  %v2171_v12 = vadd.f32 1.0, %v3806_v63  ;;  %2632 = vmatprep.mubr.bf16.mxu0 %v2363_v46  ;;  %v2297_v33 = vmul.f32 %v2233_v22, %v5802_v43  ;;  %v2308_v46 = vld [vmem:[#allocation3 + $0x50] sm:$0xff]  ;;  %v2311_v43 = vld [vmem:[#allocation3 + $0x48] sm:$0xff] }
 0x3b6   : > { %v3808_v21 = vpop.eup %3807  ;;  %v2235_v13 = vmul.f32 %v2171_v12, %v1979_v32  ;;  %v2298_v0 = vmul.f32 %v2234_v20, %v5801_v5  ;;  %v2309_v12 = vld [vmem:[#allocation3 + $0x68] sm:$0xff]  ;;  %v2310_v5 = vld [vmem:[#allocation3 + $0x30] sm:$0xff] }
 0x3b7   : > { %v3810_v31 = vpop.eup %3809  ;;  %v2172_v4 = vadd.f32 1.0, %v3808_v21  ;;  %2633 = vmatmul.mubr.bf16.gmra.mxu0 %v2362_v9 }
 0x3b8   : > { %v2173_v14 = vadd.f32 1.0, %v3810_v31  ;;  %v2299_v52 = vmul.f32 %v2235_v13, %v5803_v62  ;;  %v2364_v59 = vpack.c.bf16 %v2298_v0, %v2296_v47 }
 0x3b9   : > { %v3812_v2 = vpop.eup %3811  ;;  %v2236_v15 = vmul.f32 %v2172_v4, %v1980_v45  ;;  %v2312_v45 = vld [vmem:[#allocation3 + $0x80] sm:$0xff] }
 0x3ba   : > { %v2365_v42 = vpack.c.bf16 %v2299_v52, %v2297_v33  ;;  %v2174_v44 = vadd.f32 1.0, %v3812_v2  ;;  %v2237_v8 = vmul.f32 %v2173_v14, %v1981_v35 }
 0x3bb   : > { %v3814_v48 = vpop.eup %3813  ;;  %v2300_v58 = vmul.f32 %v2236_v15, %v5804_v11  ;;  %v2313_v15 = vld [vmem:[#allocation3 + $0x88] sm:$0xff] }
 0x3bc   : > { %v2175_v28 = vadd.f32 1.0, %v3814_v48  ;;  %2640 = vmatprep.mubr.bf16.mxu0 %v2365_v42  ;;  %v2238_v34 = vmul.f32 %v2174_v44, %v1982_v29  ;;  %v2301_v17 = vmul.f32 %v2237_v8, %v5806_v24 }
 0x3be   : > { %v2239_v7 = vmul.f32 %v2175_v28, %v1983_v30  ;;  %v2302_v50 = vmul.f32 %v2238_v34, %v5805_v56  ;;  %v2314_v28 = vld [vmem:[#allocation3 + $0xe8] sm:$0xff]  ;;  %v2315_v56 = vld [vmem:[#allocation3 + $0xb8] sm:$0xff] }
 0x3bf   : > { %2641 = vmatmul.mubr.bf16.gmra.mxu0 %v2364_v59 }
 0x3c0   : > { %v2303_v16 = vmul.f32 %v2239_v7, %v5807_v53  ;;  %v2366_v18 = vpack.c.bf16 %v2302_v50, %v2300_v58 }
 0x3c2   : > { %v2367_v41 = vpack.c.bf16 %v2303_v16, %v2301_v17  ;;  %v2316_v16 = vld [vmem:[#allocation3 + $0x60] sm:$0xff] }
 0x3c4   : > { %2648 = vmatprep.mubr.bf16.mxu0 %v2367_v41 }
 0x3c7   : > { %2649 = vmatmul.mubr.bf16.gmra.mxu0 %v2366_v18 }
 0x40e   : > { %v3294_v57 = vpop.f32.mrf.mxu0 }
 0x410   : > { %v3295_v38 = vpop.f32.mrf.mxu0 }
 0x411   : > { %v3296_v60 = vadd.f32 %v3295_v38, %v3294_v57  ;;  %v2317_v38 = vld [vmem:[#allocation3 + $0xf0] sm:$0xff] }
 0x412   : > { %v3297_v3 = vpop.f32.mrf.mxu0 }
 0x413   : > { %v2657_v25 = vadd.f32 %v3296_v60, %v2304_v36 }
 0x414   : > { %v3298_v26 = vpop.f32.mrf.mxu0 }
 0x415   : > { %2689 = vst [vmem:[#allocation3 + $0xb0] sm:$0xff] %v2657_v25  ;;  %v3299_v61 = vadd.f32 %v3298_v26, %v3297_v3  ;;  %v2318_v26 = vld [vmem:[#allocation3 + $0x8] sm:$0xff] }
 0x416   : > { %v3300_v54 = vpop.f32.mrf.mxu0 }
 0x417   : > { %v2658_v23 = vadd.f32 %v3299_v61, %v2305_v40 }
 0x418   : > { %v3301_v1 = vpop.f32.mrf.mxu0 }
 0x419   : > { %2690 = vst [vmem:[#allocation3] sm:$0xff] %v2658_v23  ;;  %v3302_v37 = vadd.f32 %v3301_v1, %v3300_v54  ;;  %v2319_v1 = vld [vmem:[#allocation3 + $0x78] sm:$0xff] }
 0x41a   : > { %v3303_v55 = vpop.f32.mrf.mxu0 }
 0x41b   : > { %v2659_v6 = vadd.f32 %v3302_v37, %v2306_v39 }
 0x41c   : > { %v3304_v9 = vpop.f32.mrf.mxu0 }
 0x41d   : > { %2691 = vst [vmem:[#allocation3 + $0xd8] sm:$0xff] %v2659_v6  ;;  %v3305_v10 = vadd.f32 %v3304_v9, %v3303_v55  ;;  %v2320_v9 = vld [vmem:[#allocation3 + $0x38] sm:$0xff] }
 0x41e   : > { %v3306_v51 = vpop.f32.mrf.mxu0 }
 0x41f   : > { %v2660_v27 = vadd.f32 %v3305_v10, %v2307_v19 }
 0x420   : > { %v3307_v63 = vpop.f32.mrf.mxu0 }
 0x421   : > { %2692 = vst [vmem:[#allocation3 + $0x18] sm:$0xff] %v2660_v27  ;;  %v3308_v22 = vadd.f32 %v3307_v63, %v3306_v51  ;;  %v2321_v63 = vld [vmem:[#allocation3 + $0x58] sm:$0xff] }
 0x422   : > { %v3309_v20 = vpop.f32.mrf.mxu0 }
 0x423   : > { %v2661_v32 = vadd.f32 %v3308_v22, %v2308_v46 }
 0x424   : > { %v3310_v21 = vpop.f32.mrf.mxu0 }
 0x425   : > { %2693 = vst [vmem:[#allocation3 + $0x50] sm:$0xff] %v2661_v32  ;;  %v3311_v13 = vadd.f32 %v3310_v21, %v3309_v20  ;;  %v2322_v21 = vld [vmem:[#allocation3 + $0x40] sm:$0xff] }
 0x426   : > { %v3312_v47 = vpop.f32.mrf.mxu0 }
 0x427   : > { %v2662_v49 = vadd.f32 %v3311_v13, %v2309_v12 }
 0x428   : > { %v3313_v0 = vpop.f32.mrf.mxu0 }
 0x429   : > { %2694 = vst [vmem:[#allocation3 + $0x68] sm:$0xff] %v2662_v49  ;;  %v3314_v31 = vadd.f32 %v3313_v0, %v3312_v47  ;;  %v2323_v0 = vld [vmem:[#allocation3 + $0xc8] sm:$0xff] }
 0x42a   : > { %v3315_v4 = vpop.f32.mrf.mxu0 }
 0x42b   : > { %v2663_v14 = vadd.f32 %v3314_v31, %v2310_v5 }
 0x42c   : > { %v3316_v33 = vpop.f32.mrf.mxu0 }
 0x42d   : > { %2695 = vst [vmem:[#allocation3 + $0x30] sm:$0xff] %v2663_v14  ;;  %v3317_v62 = vadd.f32 %v3316_v33, %v3315_v4  ;;  %v2324_v33 = vld [vmem:[#allocation3 + $0xe0] sm:$0xff] }
 0x42f   : > { %v3318_v52 = vpop.f32.mrf.mxu0  ;;  %v2664_v59 = vadd.f32 %v3317_v62, %v2311_v43 }
 0x431   : > { %v3319_v2 = vpop.f32.mrf.mxu0  ;;  %2696 = vst [vmem:[#allocation3 + $0x48] sm:$0xff] %v2664_v59 }
 0x432   : > { %v3320_v35 = vadd.f32 %v3319_v2, %v3318_v52  ;;  %v2325_v2 = vld [vmem:[#allocation3 + $0x90] sm:$0xff] }
 0x433   : > { %v3321_v42 = vpop.f32.mrf.mxu0 }
 0x434   : > { %v2665_v48 = vadd.f32 %v3320_v35, %v2312_v45 }
 0x435   : > { %v3322_v29 = vpop.f32.mrf.mxu0 }
 0x436   : > { %2697 = vst [vmem:[#allocation3 + $0x80] sm:$0xff] %v2665_v48  ;;  %v3323_v44 = vadd.f32 %v3322_v29, %v3321_v42  ;;  %v2326_v29 = vld [vmem:[#allocation3 + $0x70] sm:$0xff] }
 0x437   : > { %v3324_v8 = vpop.f32.mrf.mxu0 }
 0x438   : > { %v2666_v30 = vadd.f32 %v3323_v44, %v2313_v15 }
 0x439   : > { %v3325_v34 = vpop.f32.mrf.mxu0 }
 0x43a   : > { %2698 = vst [vmem:[#allocation3 + $0x88] sm:$0xff] %v2666_v30  ;;  %v3326_v7 = vadd.f32 %v3325_v34, %v3324_v8  ;;  %v2327_v34 = vld [vmem:[#allocation3 + $0xc0] sm:$0xff] }
 0x43b   : > { %v3327_v11 = vpop.f32.mrf.mxu0 }
 0x43c   : > { %v2667_v58 = vadd.f32 %v3326_v7, %v2314_v28 }
 0x43d   : > { %v3328_v50 = vpop.f32.mrf.mxu0 }
 0x43e   : > { %2699 = vst [vmem:[#allocation3 + $0xe8] sm:$0xff] %v2667_v58  ;;  %v3329_v24 = vadd.f32 %v3328_v50, %v3327_v11  ;;  %v2328_v50 = vld [vmem:[#allocation3 + $0xa8] sm:$0xff] }
 0x43f   : > { %v3330_v17 = vpop.f32.mrf.mxu0 }
 0x440   : > { %v2668_v53 = vadd.f32 %v3329_v24, %v2315_v56 }
 0x441   : > { %v3331_v18 = vpop.f32.mrf.mxu0 }
 0x442   : > { %2700 = vst [vmem:[#allocation3 + $0xb8] sm:$0xff] %v2668_v53  ;;  %v3332_v41 = vadd.f32 %v3331_v18, %v3330_v17  ;;  %v2329_v18 = vld [vmem:[#allocation3 + $0xd0] sm:$0xff] }
 0x443   : > { %v3333_v57 = vpop.f32.mrf.mxu0 }
 0x444   : > { %v2669_v36 = vadd.f32 %v3332_v41, %v2316_v16 }
 0x445   : > { %v3334_v60 = vpop.f32.mrf.mxu0 }
 0x446   : > { %2701 = vst [vmem:[#allocation3 + $0x60] sm:$0xff] %v2669_v36  ;;  %v3335_v3 = vadd.f32 %v3334_v60, %v3333_v57  ;;  %v2330_v60 = vld [vmem:[#allocation3 + $0x10] sm:$0xff] }
 0x447   : > { %v3336_v25 = vpop.f32.mrf.mxu0 }
 0x448   : > { %v2670_v40 = vadd.f32 %v3335_v3, %v2317_v38 }
 0x449   : > { %v3337_v61 = vpop.f32.mrf.mxu0 }
 0x44a   : > { %2702 = vst [vmem:[#allocation3 + $0xf0] sm:$0xff] %v2670_v40  ;;  %v3338_v54 = vadd.f32 %v3337_v61, %v3336_v25  ;;  %v2331_v61 = vld [vmem:[#allocation3 + $0x28] sm:$0xff] }
 0x44b   : > { %v3339_v23 = vpop.f32.mrf.mxu0 }
 0x44c   : > { %v2671_v39 = vadd.f32 %v3338_v54, %v2318_v26 }
 0x44d   : > { %v3340_v37 = vpop.f32.mrf.mxu0 }
 0x44e   : > { %2703 = vst [vmem:[#allocation3 + $0x8] sm:$0xff] %v2671_v39  ;;  %v3341_v55 = vadd.f32 %v3340_v37, %v3339_v23  ;;  %v2332_v37 = vld [vmem:[#allocation3 + $0xa0] sm:$0xff] }
 0x44f   : > { %v3342_v6 = vpop.f32.mrf.mxu0 }
 0x450   : > { %v2672_v19 = vadd.f32 %v3341_v55, %v2319_v1 }
 0x451   : > { %v3343_v10 = vpop.f32.mrf.mxu0 }
 0x452   : > { %2704 = vst [vmem:[#allocation3 + $0x78] sm:$0xff] %v2672_v19  ;;  %v3344_v51 = vadd.f32 %v3343_v10, %v3342_v6  ;;  %v2333_v10 = vld [vmem:[#allocation3 + $0xf8] sm:$0xff] }
 0x453   : > { %v3345_v27 = vpop.f32.mrf.mxu0 }
 0x454   : > { %v2673_v46 = vadd.f32 %v3344_v51, %v2320_v9 }
 0x455   : > { %v3346_v22 = vpop.f32.mrf.mxu0 }
 0x456   : > { %2705 = vst [vmem:[#allocation3 + $0x38] sm:$0xff] %v2673_v46  ;;  %v3347_v20 = vadd.f32 %v3346_v22, %v3345_v27  ;;  %v2334_v22 = vld [vmem:[#allocation3 + $0x20] sm:$0xff] }
 0x457   : > { %v3348_v32 = vpop.f32.mrf.mxu0 }
 0x458   : > { %v2674_v12 = vadd.f32 %v3347_v20, %v2321_v63 }
 0x459   : > { %v3349_v13 = vpop.f32.mrf.mxu0 }
 0x45a   : > { %2706 = vst [vmem:[#allocation3 + $0x58] sm:$0xff] %v2674_v12  ;;  %v3350_v49 = vadd.f32 %v3349_v13, %v3348_v32  ;;  %v2335_v13 = vld [vmem:[#allocation3 + $0x98] sm:$0xff] }
 0x45b   : > { %v3351_v47 = vpop.f32.mrf.mxu0 }
 0x45c   : > { %v2675_v5 = vadd.f32 %v3350_v49, %v2322_v21 }
 0x45d   : > { %v3352_v31 = vpop.f32.mrf.mxu0 }
 0x45e   : > { %2707 = vst [vmem:[#allocation3 + $0x40] sm:$0xff] %v2675_v5  ;;  %v3353_v4 = vadd.f32 %v3352_v31, %v3351_v47 }
 0x45f   : > { %v3354_v14 = vpop.f32.mrf.mxu0 }
 0x460   : > { %v2676_v43 = vadd.f32 %v3353_v4, %v2323_v0 }
 0x461   : > { %v3355_v62 = vpop.f32.mrf.mxu0 }
 0x462   : > { %2708 = vst [vmem:[#allocation3 + $0xc8] sm:$0xff] %v2676_v43  ;;  %v3356_v52 = vadd.f32 %v3355_v62, %v3354_v14 }
 0x463   : > { %v3357_v59 = vpop.f32.mrf.mxu0 }
 0x464   : > { %v2677_v45 = vadd.f32 %v3356_v52, %v2324_v33 }
 0x465   : > { %v3358_v35 = vpop.f32.mrf.mxu0 }
 0x466   : > { %2709 = vst [vmem:[#allocation3 + $0xe0] sm:$0xff] %v2677_v45  ;;  %v3359_v42 = vadd.f32 %v3358_v35, %v3357_v59 }
 0x467   : > { %v3360_v48 = vpop.f32.mrf.mxu0 }
 0x468   : > { %v2678_v15 = vadd.f32 %v3359_v42, %v2325_v2 }
 0x469   : > { %v3361_v44 = vpop.f32.mrf.mxu0 }
 0x46a   : > { %2710 = vst [vmem:[#allocation3 + $0x90] sm:$0xff] %v2678_v15  ;;  %v3362_v8 = vadd.f32 %v3361_v44, %v3360_v48 }
 0x46b   : > { %v3363_v30 = vpop.f32.mrf.mxu0 }
 0x46c   : > { %v2679_v28 = vadd.f32 %v3362_v8, %v2326_v29 }
 0x46d   : > { %v3364_v7 = vpop.f32.mrf.mxu0 }
 0x46e   : > { %2711 = vst [vmem:[#allocation3 + $0x70] sm:$0xff] %v2679_v28  ;;  %v3365_v11 = vadd.f32 %v3364_v7, %v3363_v30 }
 0x46f   : > { %v3366_v58 = vpop.f32.mrf.mxu0 }
 0x470   : > { %v2680_v56 = vadd.f32 %v3365_v11, %v2327_v34 }
 0x471   : > { %v3367_v24 = vpop.f32.mrf.mxu0 }
 0x472   : > { %2712 = vst [vmem:[#allocation3 + $0xc0] sm:$0xff] %v2680_v56  ;;  %v3368_v17 = vadd.f32 %v3367_v24, %v3366_v58 }
 0x473   : > { %v3369_v53 = vpop.f32.mrf.mxu0 }
 0x474   : > { %v2681_v16 = vadd.f32 %v3368_v17, %v2328_v50 }
 0x475   : > { %v3370_v41 = vpop.f32.mrf.mxu0 }
 0x476   : > { %2713 = vst [vmem:[#allocation3 + $0xa8] sm:$0xff] %v2681_v16  ;;  %v3371_v57 = vadd.f32 %v3370_v41, %v3369_v53 }
 0x477   : > { %v3372_v36 = vpop.f32.mrf.mxu0 }
 0x478   : > { %v2682_v38 = vadd.f32 %v3371_v57, %v2329_v18 }
 0x479   : > { %v3373_v3 = vpop.f32.mrf.mxu0 }
 0x47a   : > { %2714 = vst [vmem:[#allocation3 + $0xd0] sm:$0xff] %v2682_v38  ;;  %v3374_v25 = vadd.f32 %v3373_v3, %v3372_v36 }
 0x47b   : > { %v3375_v40 = vpop.f32.mrf.mxu0 }
 0x47c   : > { %v2683_v26 = vadd.f32 %v3374_v25, %v2330_v60 }
 0x47d   : > { %v3376_v54 = vpop.f32.mrf.mxu0 }
 0x47e   : > { %2715 = vst [vmem:[#allocation3 + $0x10] sm:$0xff] %v2683_v26  ;;  %v3377_v23 = vadd.f32 %v3376_v54, %v3375_v40 }
 0x47f   : > { %v3378_v39 = vpop.f32.mrf.mxu0 }
 0x480   : > { %v2684_v1 = vadd.f32 %v3377_v23, %v2331_v61 }
 0x481   : > { %v3379_v55 = vpop.f32.mrf.mxu0 }
 0x482   : > { %2716 = vst [vmem:[#allocation3 + $0x28] sm:$0xff] %v2684_v1  ;;  %v3380_v6 = vadd.f32 %v3379_v55, %v3378_v39 }
 0x483   : > { %v3381_v19 = vpop.f32.mrf.mxu0 }
 0x484   : > { %v2685_v9 = vadd.f32 %v3380_v6, %v2332_v37 }
 0x485   : > { %v3382_v51 = vpop.f32.mrf.mxu0 }
 0x486   : > { %2717 = vst [vmem:[#allocation3 + $0xa0] sm:$0xff] %v2685_v9  ;;  %v3383_v27 = vadd.f32 %v3382_v51, %v3381_v19 }
 0x487   : > { %v3384_v46 = vpop.f32.mrf.mxu0 }
 0x488   : > { %v2686_v63 = vadd.f32 %v3383_v27, %v2333_v10 }
 0x489   : > { %v3385_v20 = vpop.f32.mrf.mxu0 }
 0x48a   : > { %2718 = vst [vmem:[#allocation3 + $0xf8] sm:$0xff] %v2686_v63  ;;  %v3386_v32 = vadd.f32 %v3385_v20, %v3384_v46 }
 0x48b   : > { %v3387_v12 = vpop.f32.mrf.mxu0 }
 0x48c   : > { %v2687_v21 = vadd.f32 %v3386_v32, %v2334_v22 }
 0x48d   : > { %v3388_v49 = vpop.f32.mrf.mxu0 }
 0x48e   : > { %2719 = vst [vmem:[#allocation3 + $0x20] sm:$0xff] %v2687_v21  ;;  %v3389_v47 = vadd.f32 %v3388_v49, %v3387_v12  ;;  %2724 = sbr.rel (%p3139_p9) target bundleno = 1190 (0x4a6), region = 84 }
 0x490   : > { %v2688_v5 = vadd.f32 %v3389_v47, %v2335_v13 }
 0x492   : > { %2720 = vst [vmem:[#allocation3 + $0x98] sm:$0xff] %v2688_v5 }
 0x493   : > { %v2725_v0 = vld [vmem:[#allocation3 + $0xb0] sm:$0xff]  ;;  %v5572_v31 = vld [vmem:[%s5808_s6] ss:$0 sm:$0xff]  ;;  %v2727_v33 = vld [vmem:[#allocation3 + $0xd8] sm:$0xff] }
 0x494   : > { %v2726_v4 = vld [vmem:[#allocation3] sm:$0xff]  ;;  %v2764_v14 = vadd.f32 %v5572_v31, %v2725_v0  ;;  %v2728_v62 = vld [vmem:[#allocation3 + $0x18] sm:$0xff]  ;;  %v2729_v52 = vld [vmem:[#allocation3 + $0x50] sm:$0xff]  ;;  %v2766_v59 = vadd.f32 %v5572_v31, %v2727_v33 }
 0x495   : > { %v2765_v43 = vadd.f32 %v5572_v31, %v2726_v4  ;;  %v2767_v45 = vadd.f32 %v5572_v31, %v2728_v62  ;;  %v2768_v2 = vadd.f32 %v5572_v31, %v2729_v52  ;;  %v2730_v35 = vld [vmem:[#allocation3 + $0x68] sm:$0xff]  ;;  %v2731_v42 = vld [vmem:[#allocation3 + $0x30] sm:$0xff]  ;;  %v2733_v8 = vld [vmem:[#allocation3 + $0x80] sm:$0xff] }
 0x496   : > { %v2732_v48 = vld [vmem:[#allocation3 + $0x48] sm:$0xff]  ;;  %2796 = vst [vmem:[%s4405_s18] sm:$0xff] %v2764_v14  ;;  %v2769_v15 = vadd.f32 %v5572_v31, %v2730_v35  ;;  %v2770_v29 = vadd.f32 %v5572_v31, %v2731_v42  ;;  %2798 = vst [vmem:[%s4405_s18 + $0x10] sm:$0xff] %v2766_v59  ;;  %v2772_v34 = vadd.f32 %v5572_v31, %v2733_v8  ;;  %v2736_v58 = vld [vmem:[#allocation3 + $0xb8] sm:$0xff] }
 0x497   : > { %2797 = vst [vmem:[%s4405_s18 + $0x8] sm:$0xff] %v2765_v43  ;;  %v2771_v44 = vadd.f32 %v5572_v31, %v2732_v48  ;;  %v2734_v30 = vld [vmem:[#allocation3 + $0x88] sm:$0xff]  ;;  %2799 = vst [vmem:[%s4405_s18 + $0x18] sm:$0xff] %v2767_v45  ;;  %v2737_v56 = vld [vmem:[#allocation3 + $0x60] sm:$0xff]  ;;  %v2775_v24 = vadd.f32 %v5572_v31, %v2736_v58 }
 0x498   : > { %v2735_v28 = vld [vmem:[#allocation3 + $0xe8] sm:$0xff]  ;;  %2800 = vst [vmem:[%s4405_s18 + $0x20] sm:$0xff] %v2768_v2  ;;  %v2773_v7 = vadd.f32 %v5572_v31, %v2734_v30  ;;  %v2738_v50 = vld [vmem:[#allocation3 + $0xf0] sm:$0xff]  ;;  %2801 = vst [vmem:[%s4405_s18 + $0x28] sm:$0xff] %v2769_v15  ;;  %v2776_v17 = vadd.f32 %v5572_v31, %v2737_v56 }
 0x499   : > { %v2774_v11 = vadd.f32 %v5572_v31, %v2735_v28  ;;  %2802 = vst [vmem:[%s4405_s18 + $0x30] sm:$0xff] %v2770_v29  ;;  %2803 = vst [vmem:[%s4405_s18 + $0x38] sm:$0xff] %v2771_v44  ;;  %v2777_v53 = vadd.f32 %v5572_v31, %v2738_v50  ;;  %v2739_v16 = vld [vmem:[#allocation3 + $0x8] sm:$0xff]  ;;  %v2740_v18 = vld [vmem:[#allocation3 + $0x78] sm:$0xff] }
 0x49a   : > { %v2741_v41 = vld [vmem:[#allocation3 + $0x38] sm:$0xff]  ;;  %2804 = vst [vmem:[%s4405_s18 + $0x40] sm:$0xff] %v2772_v34  ;;  %2805 = vst [vmem:[%s4405_s18 + $0x48] sm:$0xff] %v2773_v7  ;;  %v2778_v57 = vadd.f32 %v5572_v31, %v2739_v16  ;;  %v2779_v36 = vadd.f32 %v5572_v31, %v2740_v18  ;;  %v2743_v3 = vld [vmem:[#allocation3 + $0x40] sm:$0xff] }
 0x49b   : > { %2806 = vst [vmem:[%s4405_s18 + $0x50] sm:$0xff] %v2774_v11  ;;  %v2780_v38 = vadd.f32 %v5572_v31, %v2741_v41  ;;  %v2742_v60 = vld [vmem:[#allocation3 + $0x58] sm:$0xff]  ;;  %v2744_v25 = vld [vmem:[#allocation3 + $0xc8] sm:$0xff]  ;;  %2807 = vst [vmem:[%s4405_s18 + $0x58] sm:$0xff] %v2775_v24  ;;  %v2782_v26 = vadd.f32 %v5572_v31, %v2743_v3 }
 0x49c   : > { %2808 = vst [vmem:[%s4405_s18 + $0x60] sm:$0xff] %v2776_v17  ;;  %2809 = vst [vmem:[%s4405_s18 + $0x68] sm:$0xff] %v2777_v53  ;;  %v2781_v40 = vadd.f32 %v5572_v31, %v2742_v60  ;;  %v2783_v61 = vadd.f32 %v5572_v31, %v2744_v25  ;;  %v2745_v54 = vld [vmem:[#allocation3 + $0xe0] sm:$0xff]  ;;  %v2746_v23 = vld [vmem:[#allocation3 + $0x90] sm:$0xff] }
 0x49d   : > { %v2747_v39 = vld [vmem:[#allocation3 + $0x70] sm:$0xff]  ;;  %2810 = vst [vmem:[%s4405_s18 + $0x70] sm:$0xff] %v2778_v57  ;;  %2811 = vst [vmem:[%s4405_s18 + $0x78] sm:$0xff] %v2779_v36  ;;  %v2784_v1 = vadd.f32 %v5572_v31, %v2745_v54  ;;  %v2785_v37 = vadd.f32 %v5572_v31, %v2746_v23  ;;  %v2748_v6 = vld [vmem:[#allocation3 + $0xc0] sm:$0xff] }
 0x49e   : > { %2812 = vst [vmem:[%s4405_s18 + $0x80] sm:$0xff] %v2780_v38  ;;  %v2786_v55 = vadd.f32 %v5572_v31, %v2747_v39  ;;  %v2749_v19 = vld [vmem:[#allocation3 + $0xa8] sm:$0xff]  ;;  %v2750_v9 = vld [vmem:[#allocation3 + $0xd0] sm:$0xff]  ;;  %2813 = vst [vmem:[%s4405_s18 + $0x88] sm:$0xff] %v2781_v40  ;;  %v2787_v10 = vadd.f32 %v5572_v31, %v2748_v6 }
 0x49f   : > { %2814 = vst [vmem:[%s4405_s18 + $0x90] sm:$0xff] %v2782_v26  ;;  %2815 = vst [vmem:[%s4405_s18 + $0x98] sm:$0xff] %v2783_v61  ;;  %v2788_v51 = vadd.f32 %v5572_v31, %v2749_v19  ;;  %v2789_v27 = vadd.f32 %v5572_v31, %v2750_v9  ;;  %v2751_v46 = vld [vmem:[#allocation3 + $0x10] sm:$0xff]  ;;  %v2752_v63 = vld [vmem:[#allocation3 + $0x28] sm:$0xff] }
 0x4a0   : > { %v2753_v22 = vld [vmem:[#allocation3 + $0xa0] sm:$0xff]  ;;  %2816 = vst [vmem:[%s4405_s18 + $0xa0] sm:$0xff] %v2784_v1  ;;  %2817 = vst [vmem:[%s4405_s18 + $0xa8] sm:$0xff] %v2785_v37  ;;  %v2790_v20 = vadd.f32 %v5572_v31, %v2751_v46  ;;  %v2791_v32 = vadd.f32 %v5572_v31, %v2752_v63  ;;  %v2754_v21 = vld [vmem:[#allocation3 + $0xf8] sm:$0xff] }
 0x4a1   : > { %2818 = vst [vmem:[%s4405_s18 + $0xb0] sm:$0xff] %v2786_v55  ;;  %v2792_v12 = vadd.f32 %v5572_v31, %v2753_v22  ;;  %v2755_v13 = vld [vmem:[#allocation3 + $0x20] sm:$0xff]  ;;  %v2756_v49 = vld [vmem:[#allocation3 + $0x98] sm:$0xff]  ;;  %2819 = vst [vmem:[%s4405_s18 + $0xb8] sm:$0xff] %v2787_v10  ;;  %v2793_v47 = vadd.f32 %v5572_v31, %v2754_v21 }
 0x4a2   : > { %2820 = vst [vmem:[%s4405_s18 + $0xc0] sm:$0xff] %v2788_v51  ;;  %2821 = vst [vmem:[%s4405_s18 + $0xc8] sm:$0xff] %v2789_v27  ;;  %v2794_v5 = vadd.f32 %v5572_v31, %v2755_v13  ;;  %v2795_v0 = vadd.f32 %v5572_v31, %v2756_v49 }
 0x4a3   : > { %2822 = vst [vmem:[%s4405_s18 + $0xd0] sm:$0xff] %v2790_v20  ;;  %2823 = vst [vmem:[%s4405_s18 + $0xd8] sm:$0xff] %v2791_v32 }
 0x4a4   : > { %2824 = vst [vmem:[%s4405_s18 + $0xe0] sm:$0xff] %v2792_v12  ;;  %2825 = vst [vmem:[%s4405_s18 + $0xe8] sm:$0xff] %v2793_v47 }
 0x4a5   : > { %2826 = vst [vmem:[%s4405_s18 + $0xf0] sm:$0xff] %v2794_v5  ;;  %2827 = vst [vmem:[%s4405_s18 + $0xf8] sm:$0xff] %v2795_v0 }
 0x4a6 PF: > { %s5809_s15 = sld [smem:[#allocation17_spill]]  ;;  %s2842_s24 = sshll.u32 %s4405_s18, 4  ;;  %s5645_s24 = int_to_ptr.vmem [resolvable:$true] %s2842_s24 }
 0x4a7   : > { %s5810_s27 = sld [smem:[#allocation52_spill]]  ;;  %s5811_s8 = sand.u32 1, %s4057_s13  }
 0x4a8   : > { %s5649_s22 = scalar_lea.sflag [#allocation6], %s5811_s8  ;;  %s3953_s23 = scalar_lea.vmem %s5645_s24, 4096 }
 0x4a9   : > { %p3954_p10 = scmp.ne.s32.totalorder %s5645_s24, %s3953_s23  ;;  %p5812_p13 = scmp.ne.s32.totalorder %s5748_s9, 0 }
 0x4aa   : > { %s4095_s16 = smov [#allocation12]  }
 0x4ab   : > { %p3955_p11 = pnand %p3954_p10, %p5812_p13  ;;  %s3957_s28 = sshll.u32 %s4095_s16, 4  ;;  %s3958_s28 = int_to_ptr.vmem [resolvable:$false] %s3957_s28 }
 0x4ac   : > { %s3182_s29 = sshll.u32 %s5809_s15, 12  ;;  %s3959_s0 = scalar_lea.vmem %s3958_s28, 8192 }
 0x4ad   : > { %s5642_s1 = scalar_lea.hbm %s5810_s27, %s3182_s29  ;;  %p3956_p0 = pneg %p3955_p11 }
 0x4ae   : > { %p3960_p5 = scmp.lt.s32.totalorder %s5645_s24, %s3958_s28  ;;  %p3961_p3 = scmp.lt.s32.totalorder %s3959_s0, %s3953_s23 }
 0x4b0   : > { %p3962_p7 = por %p3961_p3, %p3960_p5 }
 0x4b2   : > { %p3963_p4 = pnand %p3962_p7, %p3956_p0 }
 0x4b4   : > { %3966 = shalt.err (!%p3963_p4)
}
 0x4b5   : > { %s3967_s18 = scalar_lea.hbm %s5642_s1, 4096  ;;  %s3971_s5 = scalar_lea.hbm %s5810_s27, 8192 }
 0x4b6   : > { %p3968_p6 = scmp.ne.s32.totalorder %s5642_s1, %s3967_s18  ;;  %p3972_p2 = scmp.lt.s32.totalorder %s5642_s1, %s5810_s27 }
 0x4b7   : > { %p3973_p1 = scmp.lt.s32.totalorder %s3971_s5, %s3967_s18 }
 0x4b8   : > { %p3969_p8 = pnand %p3968_p6, %p5812_p13 }
 0x4b9   : > { %p3974_p9 = por %p3973_p1, %p3972_p2 }
 0x4ba   : > { %p3970_p12 = pneg %p3969_p8 }
 0x4bc   : > { %p3975_p10 = pnand %p3974_p9, %p3970_p12 }
 0x4be   : > { %3978 = shalt.err (!%p3975_p10)
}
 0x4bf   : > { %s4096_s29 = smov 128   ;;  %s4097_s21 = smov 8  }
 0x4c0   : > { %3418 = dma.vmem_to_hbm [thread:$0]  (%p5812_p13), %s5645_s24, 4096, %s5642_s1, %s5649_s22, %s4096_s29, %s4096_s29, %s4097_s21  }
 0x4c1 PF: > { %p3444_p11 = scmp.ge.s32.totalorder %s4081_s19, 2  ;;  %s2857_s3 = sand.u32 1, %s4053_s12  }
 0x4c2   : > { %p5813_p0 = scmp.ne.s32.totalorder %s5749_s30, 0  ;;  %s2858_s8 = scalar_lea.sflag [#allocation6], %s2857_s3 }
 0x4c4   : > { %p3438_p5 = pnand %p3444_p11, %p5813_p0 }
 0x4c6   : > { %p3439_p3 = pneg %p3438_p5 }
 0x4c8   : > { %4036 = dma.done.wait (%p3439_p3), %s2858_s8, 4096  }
 0x4c9   : > { %4038 = vsyncadd (%p3439_p3), %s2858_s8, 4294963200  ;;  %s26_s19 = sadd.s32 1, %s4081_s19   ;;  %s5814_s9 = sld [smem:[#allocation21_spill]] }
 0x4ca   : > { %p23_p7 = scmp.ge.s32.totalorder %s26_s19, 6   ;;  %s5815_s16 = sld [smem:[#allocation18_spill]] }
 0x4cb   : > { %s5816_s1 = sld [smem:[#allocation19_spill]]  ;;  %s5818_s30 = smov %s4045_s10 }
 0x4cc   : > { %s5817_s18 = sld [smem:[#allocation20_spill]]  ;;  %s5819_s10 = smov %s4049_s11 }
 0x4cd   : > { %s5820_s11 = smov %s4227_s26  ;;  %s5821_s12 = smov %s4057_s13 }
 0x4ce   : > { %s5822_s13 = smov %s4061_s14  ;;  %s5824_s15 = smov %s4073_s17 }
 0x4cf   : > { %s5823_s14 = smov %s5814_s9  ;;  %25 = sbr.rel (!%p23_p7) target bundleno = 18 (0x12), region = 152 }
 0x4d1   : > { %s5825_s17 = smov %s5816_s1 }
 0x4d4   :  { %2863 = vsyncpa [#allocation5], 1 }
 0x4d5   :  { %2865 = vsyncpa [#allocation5 + $0x1], 1 }
 0x4d6   :  { %2866 = vsyncpa [#allocation8], 1 }
 0x4d7   :  { %2867 = vsyncpa [#allocation6], 1 }
 0x4d8   :  { %2869 = vsyncpa [#allocation6 + $0x1], 1 }

</bundles_post_ra>
